<compile_context>
chip_gen: v7x
topology: tpu7x:2x2x1
jax: 0.10.0
libtpu: 0.0.40
codegen_flags: <defaults>
</compile_context>

<pallas_src>
import numpy as np
import jax
import jax.numpy as jnp
from jax import lax
from jax.experimental import pallas as pl
from jax.experimental.pallas import tpu as pltpu

# full-precision f32 matmuls (parity with the PyTorch/NumPy reference)
jax.config.update("jax_default_matmul_precision", "highest")

_VMEM = pl.BlockSpec(memory_space=pltpu.MemorySpace.VMEM)


def _round_up(x, m):
    return ((x + m - 1) // m) * m


# --------------------------------------------------------------------------
# Stage 1: relu(appear_linear) -> cat(box, origin_score) -> relu(feature_linear)
# (weights pre-transposed; box/origin_score pre-concatenated host-side)
# --------------------------------------------------------------------------
def _feature_kernel(feat_ref, bs_ref, w1t_ref, b1_ref, w2xt_ref, w2bt_ref,
                    b2_ref, out_ref):
    x = jnp.dot(feat_ref[...], w1t_ref[...],
                preferred_element_type=jnp.float32) + b1_ref[...]
    x = jnp.maximum(x, 0.0)                               # relu(appear_linear)
    y = (jnp.dot(x, w2xt_ref[...], preferred_element_type=jnp.float32)
         + jnp.dot(bs_ref[...], w2bt_ref[...], preferred_element_type=jnp.float32)
         + b2_ref[...])
    out_ref[...] = jnp.maximum(y, 0.0)                    # relu(feature_linear(cat))


def feature_encode(feat, box_score, kp):
    N = feat.shape[0]
    H = kp['hidden_size']
    return pl.pallas_call(
        _feature_kernel,
        out_shape=jax.ShapeDtypeStruct((N, H), jnp.float32),
        in_specs=[_VMEM] * 7,
        out_specs=_VMEM,
    )(feat, box_score, kp['w1t'], kp['b1'], kp['w2xt'], kp['w2bt'], kp['b2'])


# --------------------------------------------------------------------------
# Stage 2: whole per-class pipeline, C classes per grid step
# (bidirectional encoder GRU, "decoder" pass with the same weights seeded by the
#  encoder final hidden, dot GlobalAttention, tanh(linear_out), sigmoid(out))
# --------------------------------------------------------------------------
def _class_pipeline_kernel(len_ref,                              # SMEM prefetch
                           feat_ref, wih_ref, whh_ref, bih_ref, bhh_ref,
                           wc_ref, wd_ref, outw_ref, outb_ref,
                           out_ref,
                           xp_ref, eo_ref, do_ref):
    i = pl.program_id(0)
    C, Lmax, H = feat_ref.shape
    H2, H4, G3 = 2 * H, 4 * H, 6 * H
    R = 8                                     # sublane-padded carry rows

    # per-class valid lengths (scalars from SMEM)
    Ls = [len_ref[i * C + c] for c in range(C)]

    # lane masks, built once: "forward-direction" lanes of the fused layouts
    lane_g = lax.broadcasted_iota(jnp.int32, (1, G3), 1)
    fwd_g = (lane_g % H2) < H                 # fwd half of each r/z/n section
    lane_h = lax.broadcasted_iota(jnp.int32, (1, H2), 1)
    fwd_h = lane_h < H

    # hoisted input projections (shared by encoder + decoder passes):
    # lane layout per row: [r_f r_b | z_f z_b | n_f n_b], biases b_ih included.
    for c in range(C):
        xp_ref[c] = (jnp.dot(feat_ref[c], wih_ref[c],
                             preferred_element_type=jnp.float32) + bih_ref[c])

    xpv = [xp_ref.at[c] for c in range(C)]
    whh = [whh_ref[c] for c in range(C)]      # hoist weight loads out of the loop
    bhh = [bhh_ref[c] for c in range(C)]

    unroll = True if Lmax <= 64 else 8

    def gru_pass(out_sref, h0s):
        outv = [out_sref.at[c] for c in range(C)]

        # fwd and bwd directions of every class advance together: at loop step t
        # the fwd chain consumes time tf = t and the bwd chain tb = Lmax - 1 - t.
        def step(t, hs):
            tf = t
            tb = Lmax - 1 - t
            new_hs = []
            for c in range(C):
                h = hs[c]                                      # [R, 2H]
                x = jnp.where(fwd_g,
                              xpv[c][pl.ds(tf, 1), :],
                              xpv[c][pl.ds(tb, 1), :])         # [1, 6H]
                g = jnp.dot(h, whh[c],
                            preferred_element_type=jnp.float32) + bhh[c]
                rz = jax.nn.sigmoid(x[:, :H4] + g[:, :H4])     # fused r,z (both dirs)
                r, z = rz[:, :H2], rz[:, H2:]
                n = jnp.tanh(x[:, H4:] + r * g[:, H4:])
                h_new = (1.0 - z) * n + z * h
                keep = jnp.where(fwd_h, tf < Ls[c], tb < Ls[c])
                h_new = jnp.where(keep, h_new, h)              # freeze padded steps
                outv[c][pl.ds(tf, 1), 0:H] = h_new[0:1, 0:H]   # fwd hidden at tf
                outv[c][pl.ds(tb, 1), H:H2] = h_new[0:1, H:H2]  # bwd hidden at tb
                new_hs.append(h_new)
            return tuple(new_hs)

        return lax.fori_loop(0, Lmax, step, h0s, unroll=unroll)

    h0 = tuple(jnp.zeros((R, H2), jnp.float32) for _ in range(C))
    h_enc = gru_pass(eo_ref, h0)              # encoder pass
    gru_pass(do_ref, h_enc)                   # "decoder" pass (same encoder_rnn[j]
                                              # weights, seeded with enc final hidden)

    # GlobalAttention (attn_type='dot') + tanh(linear_out) + sigmoid(out)
    col = lax.broadcasted_iota(jnp.int32, (Lmax, Lmax), 1)
    wc, wd = wc_ref[...], wd_ref[...]
    ow, ob = outw_ref[...], outb_ref[...]
    for c in range(C):
        enc = eo_ref[c]                       # [Lmax, 2H]  (fwd | bwd)
        dec = do_ref[c]
        scores = lax.dot_general(dec, enc, (((1,), (1,)), ((), ())),
                                 preferred_element_type=jnp.float32)
        scores = jnp.where(col < Ls[c], scores, -1e30)   # mask padded key columns
        scores = scores - jnp.max(scores, axis=-1, keepdims=True)
        e = jnp.exp(scores)
        align = e / jnp.sum(e, axis=-1, keepdims=True)
        ctx = jnp.dot(align, enc, preferred_element_type=jnp.float32)
        attn_h = jnp.tanh(
            jnp.dot(ctx, wc, preferred_element_type=jnp.float32)
            + jnp.dot(dec, wd, preferred_element_type=jnp.float32))
        # lane-dense sigmoid head: all 128 lanes hold the same value
        out_ref[c] = jax.nn.sigmoid(
            jnp.dot(attn_h, ow, preferred_element_type=jnp.float32) + ob)


# --------------------------------------------------------------------------
# Full forward.  Host metadata (active classes / offsets / lengths) mirrors the
# int() casts of the PyTorch forward; two kernel launches total.
# --------------------------------------------------------------------------
def encoder_decoder_forward(kp, feat, box, score, origin_score,
                            unique_class, unique_class_len):
    del score    # all_class_box_score_variable is unused by the PyTorch forward
    H = kp['hidden_size']
    G3 = 6 * H

    uc = np.asarray(unique_class)
    ucl = np.asarray(unique_class_len)
    class_ids, starts, lengths = [], [], []
    for j in range(80):
        if uc[j] == 0:
            continue
        s, e = int(ucl[j]), int(ucl[j + 1])
        if e <= s:
            continue
        class_ids.append(j)
        starts.append(s)
        lengths.append(e - s)
    n_active = len(class_ids)
    if n_active == 0:
        return jnp.zeros((0, 1), jnp.float32)

    # quasi-static launch shape: bucketed Lmax, even padded class count,
    # C classes per grid step (keeps >= 2 grid steps for v7x's 2 TCs).
    Lmax = max(8, pl.next_power_of_2(max(lengths)))
    C = 2 if n_active >= 4 else 1
    n_pad = _round_up(n_active, 2)
    n_groups = n_pad // C

    # Stage 1 (box + origin_score concatenated host-side -> one 64-wide matmul)
    enc_feat = feature_encode(
        feat, jnp.concatenate([box, origin_score], axis=1), kp)   # [N, H]

    # aligned per-class [Lmax, H] windows; padded rows replicate the last valid
    # row of the same class (no cross-class data is ever touched by the kernel)
    idx = np.zeros((n_pad, Lmax), np.int32)
    steps = np.arange(Lmax)
    for a in range(n_active):
        idx[a] = starts[a] + np.minimum(steps, lengths[a] - 1)
    feat_g = enc_feat[jnp.asarray(idx)]                           # [n_pad, Lmax, H]

    # gather the active classes' fused GRU weights (device-side gather)
    cid = np.zeros(n_pad, np.int32)
    cid[:n_active] = class_ids
    wih_g = kp['wih_c'][cid]                                      # [n_pad, H, 6H]
    whh_g = kp['whh_c'][cid]                                      # [n_pad, 2H, 6H]
    bih_g = kp['bih_c'][cid]                                      # [n_pad, 1, 6H]
    bhh_g = kp['bhh_c'][cid]

    ln = np.zeros(n_pad, np.int32)
    ln[:n_active] = lengths
    ln = jnp.asarray(ln)

    grid_spec = pltpu.PrefetchScalarGridSpec(
        num_scalar_prefetch=1,
        grid=(n_groups,),
        in_specs=[
            pl.BlockSpec((C, Lmax, H), lambda i, l: (i, 0, 0)),      # feat windows
            pl.BlockSpec((C, H, G3), lambda i, l: (i, 0, 0)),        # fused W_ih
            pl.BlockSpec((C, 2 * H, G3), lambda i, l: (i, 0, 0)),    # block-diag W_hh
            pl.BlockSpec((C, 1, G3), lambda i, l: (i, 0, 0)),        # b_ih
            pl.BlockSpec((C, 1, G3), lambda i, l: (i, 0, 0)),        # b_hh
            pl.BlockSpec((2 * H, 2 * H), lambda i, l: (0, 0)),       # Wc^T
            pl.BlockSpec((2 * H, 2 * H), lambda i, l: (0, 0)),       # Wd^T
            pl.BlockSpec((2 * H, 128), lambda i, l: (0, 0)),         # out W (replicated)
            pl.BlockSpec((1, 128), lambda i, l: (0, 0)),             # out b
        ],
        out_specs=pl.BlockSpec((C, Lmax, 128), lambda i, l: (i, 0, 0)),
        scratch_shapes=[
            pltpu.VMEM((C, Lmax, G3), jnp.float32),      # hoisted input projections
            pltpu.VMEM((C, Lmax, 2 * H), jnp.float32),   # encoder outputs [fwd|bwd]
            pltpu.VMEM((C, Lmax, 2 * H), jnp.float32),   # decoder outputs [fwd|bwd]
        ],
    )
    out_blocks = pl.pallas_call(
        _class_pipeline_kernel,
        out_shape=jax.ShapeDtypeStruct((n_pad, Lmax, 128), jnp.float32),
        grid_spec=grid_spec,
        compiler_params=pltpu.CompilerParams(
            dimension_semantics=("parallel",)),
    )(ln, feat_g, wih_g, whh_g, bih_g, bhh_g,
      kp['wc_t'], kp['wd_t'], kp['outw'], kp['outb'])

    # TODO(synk): context_gate branch (context_type is not None) is not
    # implemented; the module's default context_type=None path is reproduced.
    rows = np.concatenate([np.arange(a * Lmax, a * Lmax + lengths[a], dtype=np.int32)
                           for a in range(n_active)])
    return out_blocks.reshape(n_pad * Lmax, 128)[jnp.asarray(rows), 0:1]


# --------------------------------------------------------------------------
# Parameter init (canonical PyTorch-like shapes) and host-side kernel layout.
# --------------------------------------------------------------------------
def init_params(key, H):
    ks = jax.random.split(key, 11)

    def unif(k, shape, fan_in):
        b = 1.0 / np.sqrt(fan_in)
        return jax.random.uniform(k, shape, jnp.float32, -b, b)

    p = {'hidden_size': H}
    p['appear_W'] = unif(ks[0], (H, 1024), 1024)          # appear_linear
    p['appear_b'] = unif(ks[1], (H,), 1024)
    p['feat_W'] = unif(ks[2], (H, H + 64), H + 64)        # feature_linear
    p['feat_b'] = unif(ks[3], (H,), H + 64)
    p['out_W'] = unif(ks[4], (1, 2 * H), 2 * H)           # out
    p['out_b'] = unif(ks[5], (1,), 2 * H)
    p['attn_W'] = unif(ks[6], (2 * H, 4 * H), 4 * H)      # atten.linear_out (no bias)
    # 80 bidirectional GRUs, PyTorch gate order (r, z, n), dir 0 = fwd, 1 = bwd
    p['gru_wih'] = unif(ks[7], (80, 2, 3 * H, H), H)
    p['gru_whh'] = unif(ks[8], (80, 2, 3 * H, H), H)
    p['gru_bih'] = unif(ks[9], (80, 2, 3 * H), H)
    p['gru_bhh'] = unif(ks[10], (80, 2, 3 * H), H)
    return p


def prepare_params(p):
    """One-time host re-layout: pre-transposed / fused kernel weights."""
    H = p['hidden_size']
    G3 = 6 * H
    kp = {'hidden_size': H}
    kp['w1t'] = jnp.asarray(np.asarray(p['appear_W']).T)              # [1024, H]
    kp['b1'] = jnp.asarray(np.asarray(p['appear_b']).reshape(1, H))
    feat_W = np.asarray(p['feat_W'])
    kp['w2xt'] = jnp.asarray(feat_W[:, :H].T)                         # [H, H]
    kp['w2bt'] = jnp.asarray(feat_W[:, H:].T)                         # [64, H]
    kp['b2'] = jnp.asarray(np.asarray(p['feat_b']).reshape(1, H))

    # fused per-class GRU weights, lane layout [r_f r_b | z_f z_b | n_f n_b];
    # W_hh is block-diagonal over the two directions so each recurrence step is
    # a single [*, 2H] x [2H, 6H] matmul covering both directions.
    wih = np.asarray(p['gru_wih'], np.float32)
    whh = np.asarray(p['gru_whh'], np.float32)
    bih = np.asarray(p['gru_bih'], np.float32)
    bhh = np.asarray(p['gru_bhh'], np.float32)
    wih_c = np.zeros((80, H, G3), np.float32)
    whh_c = np.zeros((80, 2 * H, G3), np.float32)
    bih_c = np.zeros((80, 1, G3), np.float32)
    bhh_c = np.zeros((80, 1, G3), np.float32)
    for d in range(2):              # 0 = forward, 1 = backward
        for s in range(3):          # PyTorch gate order (r, z, n)
            col = slice(s * 2 * H + d * H, s * 2 * H + (d + 1) * H)
            wih_c[:, :, col] = np.transpose(wih[:, d, s * H:(s + 1) * H, :], (0, 2, 1))
            whh_c[:, d * H:(d + 1) * H, col] = \
                np.transpose(whh[:, d, s * H:(s + 1) * H, :], (0, 2, 1))
            bih_c[:, 0, col] = bih[:, d, s * H:(s + 1) * H]
            bhh_c[:, 0, col] = bhh[:, d, s * H:(s + 1) * H]
    kp['wih_c'] = jnp.asarray(wih_c)
    kp['whh_c'] = jnp.asarray(whh_c)
    kp['bih_c'] = jnp.asarray(bih_c)
    kp['bhh_c'] = jnp.asarray(bhh_c)

    attn_W = np.asarray(p['attn_W'])
    kp['wc_t'] = jnp.asarray(attn_W[:, :2 * H].T)                     # [2H, 2H]
    kp['wd_t'] = jnp.asarray(attn_W[:, 2 * H:].T)
    out_W = np.asarray(p['out_W'])
    kp['outw'] = jnp.asarray(np.tile(out_W.T, (1, 128)))              # [2H, 128]
    kp['outb'] = jnp.asarray(np.full((1, 128), float(np.asarray(p['out_b'])[0]),
                                     np.float32))
    return kp


# --------------------------------------------------------------------------
# Pure-NumPy reference (same math as the PyTorch forward).
# --------------------------------------------------------------------------
def _sig(x):
    return 1.0 / (1.0 + np.exp(-x))


def ref_forward(p, feat, box, score, origin_score, unique_class, unique_class_len):
    del score
    H = p['hidden_size']
    pn = {k: np.asarray(v, np.float32) for k, v in p.items() if k != 'hidden_size'}

    x = np.maximum(feat @ pn['appear_W'].T + pn['appear_b'], 0.0)
    allf = np.concatenate([x, box, origin_score], axis=1)
    ef = np.maximum(allf @ pn['feat_W'].T + pn['feat_b'], 0.0)

    def gru_dir(seq, h0, Wih, Whh, bih, bhh, reverse):
        L = seq.shape[0]
        h = h0.copy()
        outs = np.zeros((L, H), np.float32)
        ts = range(L - 1, -1, -1) if reverse else range(L)
        for t in ts:
            xt = seq[t:t + 1]
            r = _sig(xt @ Wih[:H].T + bih[:H] + h @ Whh[:H].T + bhh[:H])
            z = _sig(xt @ Wih[H:2 * H].T + bih[H:2 * H]
                     + h @ Whh[H:2 * H].T + bhh[H:2 * H])
            n = np.tanh(xt @ Wih[2 * H:].T + bih[2 * H:]
                        + r * (h @ Whh[2 * H:].T + bhh[2 * H:]))
            h = (1.0 - z) * n + z * h
            outs[t] = h[0]
        return outs, h

    def gru_bi(seq, h0, j):
        of, hf = gru_dir(seq, h0[0:1], pn['gru_wih'][j, 0], pn['gru_whh'][j, 0],
                         pn['gru_bih'][j, 0], pn['gru_bhh'][j, 0], False)
        ob, hb = gru_dir(seq, h0[1:2], pn['gru_wih'][j, 1], pn['gru_whh'][j, 1],
                         pn['gru_bih'][j, 1], pn['gru_bhh'][j, 1], True)
        return np.concatenate([of, ob], 1), np.concatenate([hf, hb], 0)

    finals = []
    for j in range(80):
        if unique_class[j] == 0:
            continue
        s, e = int(unique_class_len[j]), int(unique_class_len[j + 1])
        if e <= s:
            continue
        seq = ef[s:e]
        h0 = np.zeros((2, H), np.float32)
        enc_out, enc_hid = gru_bi(seq, h0, j)
        dec_out, _ = gru_bi(seq, enc_hid, j)
        sc = dec_out @ enc_out.T
        sc = sc - sc.max(-1, keepdims=True)
        ex = np.exp(sc)
        al = ex / ex.sum(-1, keepdims=True)
        c = al @ enc_out
        finals.append(np.tanh(np.concatenate([c, dec_out], 1) @ pn['attn_W'].T))
    final = np.concatenate(finals, 0)
    return _sig(final @ pn['out_W'].T + pn['out_b'])


# --------------------------------------------------------------------------
# Test harness
# --------------------------------------------------------------------------
def _make_case(key, active, lengths):
    N = int(np.sum(lengths))
    kf, kb, ks, ko = jax.random.split(key, 4)
    feat = jax.random.normal(kf, (N, 1024), jnp.float32)
    box = jax.random.normal(kb, (N, 4), jnp.float32)
    score = jax.random.normal(ks, (N, 1), jnp.float32)           # unused in forward
    origin_score = jax.random.normal(ko, (N, 60), jnp.float32)
    unique_class = np.zeros(80, np.int32)
    counts = np.zeros(80, np.int64)
    for j, L in zip(active, lengths):
        unique_class[j] = 1
        counts[j] = L
    unique_class_len = np.zeros(81, np.int64)
    unique_class_len[1:] = np.cumsum(counts)
    return feat, box, score, origin_score, unique_class, unique_class_len


if __name__ == "__main__":
    H = 32                       # hidden_size
    key = jax.random.PRNGKey(0)
    kparam, kcase1, kcase2 = jax.random.split(key, 3)
    params = init_params(kparam, H)
    kp = prepare_params(params)

    cases = [
        # 5 active classes -> C=2 classes per grid step, one padded (len=0) slot
        ([2, 7, 11, 40, 79], [3, 5, 7, 2, 6], kcase1),
        # 2 active classes -> C=1 path
        ([3, 7], [5, 7], kcase2),
    ]
    for active, lengths, kc in cases:
        feat, box, score, origin_score, uc, ucl = _make_case(kc, active, lengths)
        out = encoder_decoder_forward(kp, feat, box, score, origin_score, uc, ucl)
        out = jax.block_until_ready(out)

        ref = ref_forward(params, np.asarray(feat), np.asarray(box),
                          np.asarray(score), np.asarray(origin_score), uc, ucl)

        assert out.shape == ref.shape, (out.shape, ref.shape)
        assert bool(np.all(np.isfinite(np.asarray(out))))
        np.testing.assert_allclose(np.asarray(out), ref, rtol=1e-2, atol=1e-2)

    print("KERNEL_OK")
</pallas_src>

<mosaic_0001>
module attributes {stable_mosaic.version = 11 : i64} {
  func.func @_feature_kernel(%arg0: memref<23x1024xf32, #tpu.memory_space<vmem>>, %arg1: memref<23x64xf32, #tpu.memory_space<vmem>>, %arg2: memref<1024x32xf32, #tpu.memory_space<vmem>>, %arg3: memref<1x32xf32, #tpu.memory_space<vmem>>, %arg4: memref<32x32xf32, #tpu.memory_space<vmem>>, %arg5: memref<64x32xf32, #tpu.memory_space<vmem>>, %arg6: memref<1x32xf32, #tpu.memory_space<vmem>>, %arg7: memref<23x32xf32, #tpu.memory_space<vmem>>) attributes {dimension_semantics = [], scalar_prefetch = 0 : i64, scratch_operands = 0 : i64, tpu.core_type = #tpu.core_type<tc>} {
    %c0 = arith.constant 0 : index
    %c0_0 = arith.constant 0 : index
    %0 = vector.load %arg0[%c0, %c0_0] : memref<23x1024xf32, #tpu.memory_space<vmem>>, vector<23x1024xf32>
    %c0_1 = arith.constant 0 : index
    %c0_2 = arith.constant 0 : index
    %1 = vector.load %arg2[%c0_1, %c0_2] : memref<1024x32xf32, #tpu.memory_space<vmem>>, vector<1024x32xf32>
    %cst = arith.constant dense<0.000000e+00> : vector<23x32xf32>
    %2 = tpu.matmul %0, %1, %cst {dimension_numbers = #tpu.dot_dimension_numbers<[1], [0], [0], [1], [0, 0, 1, 1], [], []>, precision = #tpu.contract_precision<fp32>} : vector<23x1024xf32>, vector<1024x32xf32>, vector<23x32xf32> -> vector<23x32xf32>
    %c0_3 = arith.constant 0 : index
    %c0_4 = arith.constant 0 : index
    %3 = vector.load %arg3[%c0_3, %c0_4] : memref<1x32xf32, #tpu.memory_space<vmem>>, vector<1x32xf32>
    %4 = vector.broadcast %3 : vector<1x32xf32> to vector<23x32xf32>
    %5 = arith.addf %2, %4 : vector<23x32xf32>
    %cst_5 = arith.constant 0.000000e+00 : f32
    %6 = vector.broadcast %cst_5 : f32 to vector<23x32xf32>
    %7 = arith.maximumf %5, %6 : vector<23x32xf32>
    %c0_6 = arith.constant 0 : index
    %c0_7 = arith.constant 0 : index
    %8 = vector.load %arg4[%c0_6, %c0_7] : memref<32x32xf32, #tpu.memory_space<vmem>>, vector<32x32xf32>
    %cst_8 = arith.constant dense<0.000000e+00> : vector<23x32xf32>
    %9 = tpu.matmul %7, %8, %cst_8 {dimension_numbers = #tpu.dot_dimension_numbers<[1], [0], [0], [1], [0, 0, 1, 1], [], []>, precision = #tpu.contract_precision<fp32>} : vector<23x32xf32>, vector<32x32xf32>, vector<23x32xf32> -> vector<23x32xf32>
    %c0_9 = arith.constant 0 : index
    %c0_10 = arith.constant 0 : index
    %10 = vector.load %arg1[%c0_9, %c0_10] : memref<23x64xf32, #tpu.memory_space<vmem>>, vector<23x64xf32>
    %c0_11 = arith.constant 0 : index
    %c0_12 = arith.constant 0 : index
    %11 = vector.load %arg5[%c0_11, %c0_12] : memref<64x32xf32, #tpu.memory_space<vmem>>, vector<64x32xf32>
    %cst_13 = arith.constant dense<0.000000e+00> : vector<23x32xf32>
    %12 = tpu.matmul %10, %11, %cst_13 {dimension_numbers = #tpu.dot_dimension_numbers<[1], [0], [0], [1], [0, 0, 1, 1], [], []>, precision = #tpu.contract_precision<fp32>} : vector<23x64xf32>, vector<64x32xf32>, vector<23x32xf32> -> vector<23x32xf32>
    %13 = arith.addf %9, %12 : vector<23x32xf32>
    %c0_14 = arith.constant 0 : index
    %c0_15 = arith.constant 0 : index
    %14 = vector.load %arg6[%c0_14, %c0_15] : memref<1x32xf32, #tpu.memory_space<vmem>>, vector<1x32xf32>
    %15 = vector.broadcast %14 : vector<1x32xf32> to vector<23x32xf32>
    %16 = arith.addf %13, %15 : vector<23x32xf32>
    %cst_16 = arith.constant 0.000000e+00 : f32
    %17 = vector.broadcast %cst_16 : f32 to vector<23x32xf32>
    %18 = arith.maximumf %16, %17 : vector<23x32xf32>
    %c0_17 = arith.constant 0 : index
    %c0_18 = arith.constant 0 : index
    %19 = vector.load %arg7[%c0_17, %c0_18] : memref<23x32xf32, #tpu.memory_space<vmem>>, vector<23x32xf32>
    tpu.vector_store %arg7[%c0_17, %c0_18], %18 {strides = array<i32>} : memref<23x32xf32, #tpu.memory_space<vmem>>, vector<23x32xf32>,
    return
  }
}

</mosaic_0001>

<bundles_post_ra>
// kernel: tpu_custom_call.1
= control target key start
LH: loop header
LB: loop body
LE: loop exit
PB: predicated region body
PF: predicated region fallthrough
CT: control target
= control target key end

     0   :  { %s10545_s0 = inlined_call_operand.vmem [shape: f32[23,1024], index: 0, kind: input, shape index: {}]   ;;  %s10546_s1 = inlined_call_operand.vmem [shape: f32[23,64], index: 1, kind: input, shape index: {}]   ;;  %s10547_s2 = inlined_call_operand.vmem [shape: f32[1024,32], index: 2, kind: input, shape index: {}]   ;;  %s10548_s3 = inlined_call_operand.vmem [shape: f32[1,32], index: 3, kind: input, shape index: {}]   ;;  %s10549_s4 = inlined_call_operand.vmem [shape: f32[32,32], index: 4, kind: input, shape index: {}]   ;;  %s10550_s5 = inlined_call_operand.vmem [shape: f32[64,32], index: 5, kind: input, shape index: {}]   ;;  %s10551_s6 = inlined_call_operand.vmem [shape: f32[1,32], index: 6, kind: input, shape index: {}]   ;;  %s10552_s7 = inlined_call_operand.hbm [shape: f32[23,32], index: 7, kind: output, shape index: {}]  }
   0x1   :  { %v67_v0 = vld [vmem:[%s10547_s2 + $0x80] sm:$0xff]  ;;  %v68_v1 = vld [vmem:[%s10547_s2 + $0x88] sm:$0xff]  ;;  %v69_v7 = vld [vmem:[%s10547_s2 + $0x90] sm:$0xff] }
   0x2   :  { %v51_v2 = vld [vmem:[%s10547_s2] sm:$0xff]  ;;  %v235_v3 = vand.u32 4294901760, %v67_v0  ;;  %v238_v4 = vand.u32 4294901760, %v68_v1  ;;  %v52_v5 = vld [vmem:[%s10547_s2 + $0x8] sm:$0xff]  ;;  %v70_v8 = vld [vmem:[%s10547_s2 + $0x98] sm:$0xff]  ;;  %v241_v10 = vand.u32 4294901760, %v69_v7 }
   0x3   :  { %v187_v6 = vand.u32 4294901760, %v51_v2  ;;  %v190_v9 = vand.u32 4294901760, %v52_v5  ;;  %v244_v11 = vand.u32 4294901760, %v70_v8  ;;  %v53_v12 = vld [vmem:[%s10547_s2 + $0x10] sm:$0xff]  ;;  %v54_v13 = vld [vmem:[%s10547_s2 + $0x18] sm:$0xff]  ;;  %v71_v18 = vld [vmem:[%s10547_s2 + $0xa0] sm:$0xff] }
   0x4   :  { %v7669_v14 = vpack.c.bf16 %v238_v4, %v235_v3  ;;  %v193_v16 = vand.u32 4294901760, %v53_v12  ;;  %v196_v17 = vand.u32 4294901760, %v54_v13  ;;  %v72_v19 = vld [vmem:[%s10547_s2 + $0xa8] sm:$0xff]  ;;  %v55_v23 = vld [vmem:[%s10547_s2 + $0x20] sm:$0xff]  ;;  %v7692_v25 = vsub.f32 %v69_v7, %v241_v10  ;;  %v73_v37 = vld [vmem:[%s10547_s2 + $0xb0] sm:$0xff] }
   0x5   :  { %v7671_v15 = vsub.f32 %v51_v2, %v187_v6  ;;  %v7679_v20 = vpack.c.bf16 %v190_v9, %v187_v6  ;;  %v7681_v21 = vsub.f32 %v52_v5, %v190_v9  ;;  %v7683_v22 = vpack.c.bf16 %v244_v11, %v241_v10  ;;  %v56_v24 = vld [vmem:[%s10547_s2 + $0x28] sm:$0xff]  ;;  %v74_v42 = vld [vmem:[%s10547_s2 + $0xb8] sm:$0xff]  ;;  %v57_v55 = vld [vmem:[%s10547_s2 + $0x30] sm:$0xff] }
   0x6   :  { %6694 = vmatprep.subr.bf16.mxu0 %v7669_v14  ;;  %v7694_v26 = vsub.f32 %v70_v8, %v244_v11  ;;  %v7696_v27 = vpack.c.bf16 %v196_v17, %v193_v16  ;;  %v7698_v28 = vsub.f32 %v53_v12, %v193_v16  ;;  %v247_v29 = vand.u32 4294901760, %v71_v18  ;;  %v58_v56 = vld [vmem:[%s10547_s2 + $0x38] sm:$0xff]  ;;  %v75_v5 = vld [vmem:[%s10547_s2 + $0xc0] sm:$0xff]  ;;  %v76_v6 = vld [vmem:[%s10547_s2 + $0xc8] sm:$0xff] }
   0x7   :  { %6696 = vmatpush3.bf16.msra.mxu0 %v7679_v20  ;;  %v250_v30 = vand.u32 4294901760, %v72_v19  ;;  %v7701_v31 = vsub.f32 %v67_v0, %v235_v3  ;;  %v7703_v32 = vsub.f32 %v68_v1, %v238_v4  ;;  %v199_v33 = vand.u32 4294901760, %v55_v23  ;;  %v59_v11 = vld [vmem:[%s10547_s2 + $0x40] sm:$0xff] }
   0x8   :  { %6698 = vmatprep.subr.bf16.mxu0 %v7683_v22  ;;  %v202_v34 = vand.u32 4294901760, %v56_v24  ;;  %v10569_v35 = vand.u32 4294901760, %v7671_v15  ;;  %v10568_v36 = vand.u32 4294901760, %v7681_v21  ;;  %v7711_v38 = vsub.f32 %v54_v13, %v196_v17 }
   0x9   :  { %v7713_v39 = vpack.c.bf16 %v250_v30, %v247_v29  ;;  %v7715_v40 = vsub.f32 %v71_v18, %v247_v29  ;;  %v10574_v41 = vand.u32 4294901760, %v7701_v31  ;;  %v7721_v43 = vsub.f32 %v72_v19, %v250_v30  ;;  %v60_v29 = vld [vmem:[%s10547_s2 + $0x48] sm:$0xff] }
   0xa   :  { %v10571_v44 = vand.u32 4294901760, %v7703_v32  ;;  %v7724_v45 = vpack.c.bf16 %v202_v34, %v199_v33  ;;  %v7726_v46 = vsub.f32 %v55_v23, %v199_v33  ;;  %v332_v48 = vsub.f32 %v7671_v15, %v10569_v35 }
   0xb   :  { %6700 = vmatpush3.bf16.msra.mxu0 %v7696_v27  ;;  %v444_v47 = vsub.f32 %v7701_v31, %v10574_v41  ;;  %v339_v49 = vsub.f32 %v7681_v21, %v10568_v36  ;;  %v253_v50 = vand.u32 4294901760, %v73_v37  ;;  %v256_v52 = vand.u32 4294901760, %v74_v42 }
   0xc   :  { %6702 = vmatprep.subr.bf16.mxu0 %v7713_v39  ;;  %v451_v51 = vsub.f32 %v7703_v32, %v10571_v44  ;;  %v10566_v53 = vand.u32 4294901760, %v7692_v25  ;;  %v10565_v54 = vand.u32 4294901760, %v7694_v26  ;;  %v7750_v58 = vsub.f32 %v56_v24, %v202_v34 }
   0xd   :  { %v445_v57 = vand.u32 4294901760, %v444_v47  ;;  %v333_v59 = vand.u32 4294901760, %v332_v48  ;;  %v340_v60 = vand.u32 4294901760, %v339_v49  ;;  %v7752_v62 = vpack.c.bf16 %v256_v52, %v253_v50 }
   0xe   :  { %v452_v61 = vand.u32 4294901760, %v451_v51  ;;  %v7754_v63 = vsub.f32 %v73_v37, %v253_v50  ;;  %v458_v0 = vsub.f32 %v7692_v25, %v10566_v53  ;;  %v465_v2 = vsub.f32 %v7694_v26, %v10565_v54 }
   0xf   :  { %6704 = vmatpush3.bf16.msra.mxu0 %v7724_v45  ;;  %v6727_v1 = vpack.c.bf16 %v340_v60, %v333_v59  ;;  %v205_v3 = vand.u32 4294901760, %v57_v55  ;;  %v208_v4 = vand.u32 4294901760, %v58_v56  ;;  %v10564_v9 = vand.u32 4294901760, %v7698_v28 }
  0x10   :  { %v6725_v7 = vpack.c.bf16 %v452_v61, %v445_v57  ;;  %6706 = vmatprep.subr.bf16.mxu0 %v7752_v62  ;;  %v459_v8 = vand.u32 4294901760, %v458_v0  ;;  %v10561_v10 = vand.u32 4294901760, %v7711_v38  ;;  %v7775_v12 = vsub.f32 %v74_v42, %v256_v52  ;;  %v78_v57 = vld [vmem:[%s10547_s2 + $0xd8] sm:$0xff] }
  0x11   :  { %v466_v13 = vand.u32 4294901760, %v465_v2  ;;  %v7777_v16 = vpack.c.bf16 %v208_v4, %v205_v3  ;;  %v7779_v17 = vsub.f32 %v57_v55, %v205_v3  ;;  %v346_v18 = vsub.f32 %v7698_v28, %v10564_v9 }
  0x12   :  { %6726 = vmatprep.subr.bf16.mxu1 %v6725_v7  ;;  %v353_v19 = vsub.f32 %v7711_v38, %v10561_v10  ;;  %v259_v23 = vand.u32 4294901760, %v75_v5  ;;  %v262_v24 = vand.u32 4294901760, %v76_v6  ;;  %v10559_v33 = vand.u32 4294901760, %v7715_v40 }
  0x13   :  { %6728 = vmatpush3.bf16.msra.mxu1 %v6727_v1  ;;  %v6729_v30 = vpack.c.bf16 %v466_v13, %v459_v8  ;;  %6708 = vmatpush3.bf16.msra.mxu0 %v7777_v16  ;;  %v10558_v34 = vand.u32 4294901760, %v7721_v43  ;;  %v211_v37 = vand.u32 4294901760, %v59_v11  ;;  %v7793_v42 = vsub.f32 %v58_v56, %v208_v4  ;;  %v77_v56 = vld [vmem:[%s10547_s2 + $0xd0] sm:$0xff] }
  0x14   :  { %v347_v47 = vand.u32 4294901760, %v346_v18  ;;  %v354_v48 = vand.u32 4294901760, %v353_v19  ;;  %v7795_v49 = vpack.c.bf16 %v262_v24, %v259_v23  ;;  %v7797_v50 = vsub.f32 %v75_v5, %v259_v23  ;;  %v61_v1 = vld [vmem:[%s10547_s2 + $0x50] sm:$0xff]  ;;  %v62_v18 = vld [vmem:[%s10547_s2 + $0x58] sm:$0xff] }
  0x15   :  { %6730 = vmatprep.subr.bf16.mxu1 %v6729_v30  ;;  %v472_v51 = vsub.f32 %v7715_v40, %v10559_v33  ;;  %v479_v52 = vsub.f32 %v7721_v43, %v10558_v34  ;;  %v214_v55 = vand.u32 4294901760, %v60_v29  ;;  %v7812_v60 = vsub.f32 %v76_v6, %v262_v24 }
  0x16   :  { %v6731_v59 = vpack.c.bf16 %v354_v48, %v347_v47  ;;  %6710 = vmatprep.subr.bf16.mxu0 %v7795_v49  ;;  %v10556_v61 = vand.u32 4294901760, %v7726_v46  ;;  %v10555_v0 = vand.u32 4294901760, %v7750_v58  ;;  %v7821_v5 = vsub.f32 %v59_v11, %v211_v37 }
  0x17   :  { %v473_v2 = vand.u32 4294901760, %v472_v51  ;;  %v480_v3 = vand.u32 4294901760, %v479_v52  ;;  %v7819_v4 = vpack.c.bf16 %v214_v55, %v211_v37  ;;  %v265_v8 = vand.u32 4294901760, %v77_v56 }
  0x18   :  { %6732 = vmatpush3.bf16.msra.mxu1 %v6731_v59  ;;  %v360_v6 = vsub.f32 %v7726_v46, %v10556_v61  ;;  %v367_v7 = vsub.f32 %v7750_v58, %v10555_v0  ;;  %v268_v13 = vand.u32 4294901760, %v78_v57  ;;  %v10554_v11 = vand.u32 4294901760, %v7754_v63 }
  0x19   :  { %10828 = vst [vmem:[#allocation5_spill] sm:$0xff] %v7819_v4  ;;  %v6733_v19 = vpack.c.bf16 %v480_v3, %v473_v2  ;;  %6712 = vmatpush3.bf16.msra.mxu0 %v7819_v4  ;;  %v10553_v23 = vand.u32 4294901760, %v7775_v12  ;;  %v217_v24 = vand.u32 4294901760, %v61_v1  ;;  %v7835_v30 = vsub.f32 %v60_v29, %v214_v55  ;;  %v79_v29 = vld [vmem:[%s10547_s2 + $0xe0] sm:$0xff]  ;;  %v80_v55 = vld [vmem:[%s10547_s2 + $0xe8] sm:$0xff] }
  0x1a   :  { %v361_v37 = vand.u32 4294901760, %v360_v6  ;;  %v368_v47 = vand.u32 4294901760, %v367_v7  ;;  %v7837_v48 = vpack.c.bf16 %v268_v13, %v265_v8  ;;  %v7839_v51 = vsub.f32 %v77_v56, %v265_v8 }
  0x1b   :  { %6734 = vmatprep.subr.bf16.mxu1 %v6733_v19  ;;  %v486_v52 = vsub.f32 %v7754_v63, %v10554_v11  ;;  %v493_v59 = vsub.f32 %v7775_v12, %v10553_v23  ;;  %v220_v2 = vand.u32 4294901760, %v62_v18 }
  0x1c   :  { %10829 = vst [vmem:[#allocation6_spill] sm:$0xff] %v7837_v48 }
  0x1d   :  { %12 = vsyncpa [#allocation3], 0  ;;  %v6735_v56 = vpack.c.bf16 %v368_v47, %v361_v37  ;;  %6714 = vmatprep.subr.bf16.mxu0 %v7837_v48  ;;  %v7854_v3 = vsub.f32 %v78_v57, %v268_v13  ;;  %v10557_v6 = vand.u32 4294901760, %v7779_v17  ;;  %v10560_v7 = vand.u32 4294901760, %v7793_v42  ;;  %v63_v8 = vld [vmem:[%s10547_s2 + $0x60] sm:$0xff]  ;;  %s7602_s28 = smov [#allocation2]  }
  0x1e   :  { %v487_v19 = vand.u32 4294901760, %v486_v52  ;;  %v494_v23 = vand.u32 4294901760, %v493_v59  ;;  %v7861_v11 = vpack.c.bf16 %v220_v2, %v217_v24  ;;  %v7863_v0 = vsub.f32 %v61_v1, %v217_v24  ;;  %v64_v52 = vld [vmem:[%s10547_s2 + $0x68] sm:$0xff]  ;;  %s5336_s29 = sshll.u32 %s7602_s28, 4  ;;  %s5337_s29 = int_to_ptr.vmem [resolvable:$true] %s5336_s29 }
  0x1f   :  { %6736 = vmatpush3.bf16.msra.mxu1 %v6735_v56  ;;  %v374_v57 = vsub.f32 %v7779_v17, %v10557_v6  ;;  %v381_v13 = vsub.f32 %v7793_v42, %v10560_v7  ;;  %v271_v37 = vand.u32 4294901760, %v79_v29  ;;  %v274_v47 = vand.u32 4294901760, %v80_v55  ;;  %p7580_p1 = scmp.lt.s32.totalorder %s5337_s29, %s5337_s29 }
  0x20   :  { %10830 = vst [vmem:[#allocation7_spill] sm:$0xff] %v7861_v11  ;;  %v6737_v59 = vpack.c.bf16 %v494_v23, %v487_v19  ;;  %6716 = vmatpush3.bf16.msra.mxu0 %v7861_v11  ;;  %v10563_v1 = vand.u32 4294901760, %v7797_v50  ;;  %v10562_v24 = vand.u32 4294901760, %v7812_v60  ;;  %v223_v56 = vand.u32 4294901760, %v63_v8 }
  0x21   :  { %v7877_v61 = vsub.f32 %v62_v18, %v220_v2  ;;  %v375_v6 = vand.u32 4294901760, %v374_v57  ;;  %v382_v34 = vand.u32 4294901760, %v381_v13  ;;  %v7879_v33 = vpack.c.bf16 %v274_v47, %v271_v37  ;;  %v81_v18 = vld [vmem:[%s10547_s2 + $0xf0] sm:$0xff]  ;;  %v82_v2 = vld [vmem:[%s10547_s2 + $0xf8] sm:$0xff] }
  0x22   :  { %6738 = vmatprep.subr.bf16.mxu1 %v6737_v59  ;;  %v7881_v7 = vsub.f32 %v79_v29, %v271_v37  ;;  %v500_v23 = vsub.f32 %v7797_v50, %v10563_v1  ;;  %v507_v19 = vsub.f32 %v7812_v60, %v10562_v24  ;;  %v226_v10 = vand.u32 4294901760, %v64_v52  ;;  %v65_v59 = vld [vmem:[%s10547_s2 + $0x70] sm:$0xff] }
  0x23   :  { %10831 = vst [vmem:[#allocation8_spill] sm:$0xff] %v7879_v33  ;;  %v6739_v57 = vpack.c.bf16 %v382_v34, %v375_v6  ;;  %6718 = vmatprep.subr.bf16.mxu0 %v7879_v33  ;;  %v7896_v29 = vsub.f32 %v80_v55, %v274_v47  ;;  %v10567_v13 = vand.u32 4294901760, %v7821_v5  ;;  %v10570_v37 = vand.u32 4294901760, %v7835_v30 }
  0x24   :  { %v501_v24 = vand.u32 4294901760, %v500_v23  ;;  %v508_v1 = vand.u32 4294901760, %v507_v19  ;;  %v7903_v9 = vpack.c.bf16 %v226_v10, %v223_v56  ;;  %v7905_v54 = vsub.f32 %v63_v8, %v223_v56  ;;  %v66_v23 = vld [vmem:[%s10547_s2 + $0x78] sm:$0xff] }
  0x25   :  { %6740 = vmatpush3.bf16.msra.mxu1 %v6739_v57  ;;  %v388_v34 = vsub.f32 %v7821_v5, %v10567_v13  ;;  %v395_v55 = vsub.f32 %v7835_v30, %v10570_v37  ;;  %v277_v6 = vand.u32 4294901760, %v81_v18  ;;  %v280_v47 = vand.u32 4294901760, %v82_v2 }
  0x26   :  { %10832 = vst [vmem:[#allocation9_spill] sm:$0xff] %v7903_v9  ;;  %v6741_v19 = vpack.c.bf16 %v508_v1, %v501_v24  ;;  %6720 = vmatpush3.bf16.msra.mxu0 %v7903_v9  ;;  %v10573_v8 = vand.u32 4294901760, %v7839_v51  ;;  %v10572_v56 = vand.u32 4294901760, %v7854_v3  ;;  %v229_v57 = vand.u32 4294901760, %v65_v59 }
  0x27   :  { %v7919_v53 = vsub.f32 %v64_v52, %v226_v10  ;;  %v389_v13 = vand.u32 4294901760, %v388_v34  ;;  %v396_v36 = vand.u32 4294901760, %v395_v55  ;;  %v7921_v35 = vpack.c.bf16 %v280_v47, %v277_v6  ;;  %v28_v10 = vld [vmem:[%s10545_s0 + $0x8] sm:$0xff] }
  0x28   :  { %6742 = vmatprep.subr.bf16.mxu1 %v6741_v19  ;;  %v7923_v37 = vsub.f32 %v81_v18, %v277_v6  ;;  %v514_v1 = vsub.f32 %v7839_v51, %v10573_v8  ;;  %v521_v24 = vsub.f32 %v7854_v3, %v10572_v56  ;;  %v232_v44 = vand.u32 4294901760, %v66_v23  ;;  %v27_v6 = vld [vmem:[%s10545_s0] sm:$0xff] }
  0x29   :  { %10833 = vst [vmem:[#allocation10_spill] sm:$0xff] %v7921_v35  ;;  %v6743_v52 = vpack.c.bf16 %v396_v36, %v389_v13  ;;  %6722 = vmatprep.subr.bf16.mxu0 %v7921_v35  ;;  %v7935_v34 = vsub.f32 %v82_v2, %v280_v47  ;;  %v10577_v18 = vand.u32 4294901760, %v7863_v0  ;;  %v10578_v55 = vand.u32 4294901760, %v7877_v61 }
  0x2a   :  { %v515_v19 = vand.u32 4294901760, %v514_v1  ;;  %v522_v56 = vand.u32 4294901760, %v521_v24  ;;  %v7942_v8 = vpack.c.bf16 %v232_v44, %v229_v57  ;;  %v7944_v41 = vsub.f32 %v65_v59, %v229_v57 }
  0x2b   :  { %6744 = vmatpush3.bf16.msra.mxu1 %v6743_v52  ;;  %v402_v36 = vsub.f32 %v7863_v0, %v10577_v18  ;;  %v409_v2 = vsub.f32 %v7877_v61, %v10578_v55  ;;  %v7952_v13 = vand.u32 4294901760, %v28_v10  ;;  %v10581_v47 = vand.u32 4294901760, %v7881_v7 }
  0x2c   :  { %10834 = vst [vmem:[#allocation11_spill] sm:$0xff] %v7942_v8  ;;  %v6745_v35 = vpack.c.bf16 %v522_v56, %v515_v19  ;;  %6724 = vmatpush3.bf16.msra.mxu0 %v7942_v8  ;;  %v10587_v1 = vand.u32 4294901760, %v7896_v29  ;;  %v6757_v59 = vpack.c.bf16 %v7703_v32, %v7701_v31  ;;  %v7959_v57 = vand.u32 4294901760, %v27_v6 }
  0x2d   :  { %10835 = vst [vmem:[#allocation12_spill] sm:$0xff] %v7952_v13  ;;  %v403_v24 = vand.u32 4294901760, %v402_v36  ;;  %v410_v52 = vand.u32 4294901760, %v409_v2  ;;  %v7962_v18 = vsub.f32 %v28_v10, %v7952_v13  ;;  %v528_v55 = vsub.f32 %v7881_v7, %v10581_v47  ;;  %553 = vmatprep.mubr.f32.mxu1 %v7952_v13 }
  0x2e   :  { %6746 = vmatprep.subr.bf16.mxu1 %v6745_v35  ;;  %v535_v56 = vsub.f32 %v7896_v29, %v10587_v1  ;;  %6758 = vmatprep.subr.bf16.mxu0 %v6757_v59  ;;  %v7972_v19 = vsub.f32 %v27_v6, %v7959_v57  ;;  %v10586_v36 = vand.u32 4294901760, %v7905_v54  ;;  %v10588_v10 = vand.u32 4294901760, %v7919_v53 }
  0x2f   :  { %v7976_v2 = vsub.f32 %v66_v23, %v232_v44  ;;  %v6747_v8 = vpack.c.bf16 %v410_v52, %v403_v24  ;;  %v10589_v47 = vand.u32 4294901760, %v7962_v18  ;;  %v529_v9 = vand.u32 4294901760, %v528_v55 }
  0x30   :  { %10836 = vst [vmem:[#allocation13_spill] sm:$0xff] %v7972_v19  ;;  %v536_v13 = vand.u32 4294901760, %v535_v56  ;;  %v10592_v35 = vand.u32 4294901760, %v7972_v19  ;;  %v416_v59 = vsub.f32 %v7905_v54, %v10586_v36  ;;  %v423_v6 = vsub.f32 %v7919_v53, %v10588_v10 }
  0x31   :  { %6748 = vmatpush3.bf16.msra.mxu1 %v6747_v8  ;;  %v285_v44 = vsub.f32 %v7962_v18, %v10589_v47  ;;  %v6759_v23 = vpack.c.bf16 %v7681_v21, %v7671_v15  ;;  %v10593_v55 = vand.u32 4294901760, %v7923_v37  ;;  %v10594_v24 = vand.u32 4294901760, %v7935_v34 }
  0x32   :  { %v6749_v52 = vpack.c.bf16 %v536_v13, %v529_v9  ;;  %v291_v56 = vsub.f32 %v7972_v19, %v10592_v35  ;;  %v417_v36 = vand.u32 4294901760, %v416_v59  ;;  %v424_v1 = vand.u32 4294901760, %v423_v6  ;;  %v36_v9 = vld [vmem:[%s10545_s0 + $0x48] sm:$0xff] }
  0x33   :  { %v286_v10 = vand.u32 4294901760, %v285_v44  ;;  %v542_v8 = vsub.f32 %v7923_v37, %v10593_v55  ;;  %v549_v47 = vsub.f32 %v7935_v34, %v10594_v24  ;;  %v10596_v33 = vand.u32 4294901760, %v7944_v41 }
  0x34   :  { %6750 = vmatprep.subr.bf16.mxu1 %v6749_v52  ;;  %v292_v13 = vand.u32 4294901760, %v291_v56  ;;  %v6751_v35 = vpack.c.bf16 %v424_v1, %v417_v36  ;;  %v6761_v59 = vpack.c.bf16 %v7694_v26, %v7692_v25  ;;  %v10595_v6 = vand.u32 4294901760, %v7976_v2  ;;  %v35_v1 = vld [vmem:[%s10545_s0 + $0x40] sm:$0xff] }
  0x35   :  { %287 = vmatprep.mubr.f32.mxu0 %v286_v10  ;;  %v543_v44 = vand.u32 4294901760, %v542_v8  ;;  %v550_v55 = vand.u32 4294901760, %v549_v47  ;;  %v430_v24 = vsub.f32 %v7944_v41, %v10596_v33  ;;  %v8015_v56 = vand.u32 4294901760, %v36_v9  ;;  %v43_v8 = vld [vmem:[%s10545_s0 + $0x80] sm:$0x7f] }
  0x36   :  { %293 = vmatmul.mubr.f32.vlgmr.msra.gmra.mrb[0].mxu0 %v292_v13  ;;  %6752 = vmatpush3.bf16.msra.mxu1 %v6751_v35  ;;  %v437_v52 = vsub.f32 %v7976_v2, %v10595_v6  ;;  %v6763_v47 = vpack.c.bf16 %v7711_v38, %v7698_v28  ;;  %v44_v35 = vld [vmem:[%s10545_s0 + $0x88] sm:$0x7f]  ;;  %v6765_v6 = vpack.c.bf16 %v7721_v43, %v7715_v40  ;;  %v10840_v4 = vand.u32 4294901760, %v7671_v15 }
  0x37   :  { %6760 = vmatpush3.bf16.msra.mxu0 %v6759_v23  ;;  %v6753_v36 = vpack.c.bf16 %v550_v55, %v543_v44  ;;  %v431_v10 = vand.u32 4294901760, %v430_v24  ;;  %v6767_v23 = vpack.c.bf16 %v7750_v58, %v7726_v46  ;;  %v8033_v55 = vsub.f32 %v36_v9, %v8015_v56 }
  0x38   :  { %6762 = vmatprep.subr.bf16.mxu0 %v6761_v59  ;;  %v438_v13 = vand.u32 4294901760, %v437_v52  ;;  %v8035_v24 = vand.u32 4294901760, %v35_v1  ;;  %v6769_v33 = vpack.c.bf16 %v7775_v12, %v7754_v63  ;;  %v8039_v19 = vand.u32 4294901760, %v44_v35 }
  0x39   :  { %6754 = vmatprep.subr.bf16.mxu1 %v6753_v36  ;;  %v8041_v59 = vand.u32 4294901760, %v43_v8  ;;  %v6771_v52 = vpack.c.bf16 %v7793_v42, %v7779_v17  ;;  %v10838_v9 = vand.u32 4294901760, %v7701_v31  ;;  %v10841_v36 = vand.u32 4294901760, %v7681_v21 }
  0x3a   :  { %v6755_v44 = vpack.c.bf16 %v438_v13, %v431_v10  ;;  %v8047_v11 = vsub.f32 %v35_v1, %v8035_v24  ;;  %v10839_v10 = vand.u32 4294901760, %v7703_v32  ;;  %v8056_v48 = vsub.f32 %v44_v35, %v8039_v19 }
  0x3b   :  { %10837 = vst [vmem:[#allocation14_spill] sm:$0xff] %v8041_v59  ;;  %6764 = vmatpush3.bf16.msra.mxu0 %v6763_v47  ;;  %v8059_v47 = vsub.f32 %v43_v8, %v8041_v59  ;;  %v8065_v1 = vpack.c.bf16 %v10841_v36, %v10840_v4  ;;  %v10842_v31 = vand.u32 4294901760, %v8033_v55  ;;  %v10843_v35 = vand.u32 4294901760, %v7692_v25 }
  0x3c   :  { %v8053_v13 = vpack.c.bf16 %v10839_v10, %v10838_v9  ;;  %6756 = vmatpush3.bf16.msra.mxu1 %v6755_v44  ;;  %6766 = vmatprep.subr.bf16.mxu0 %v6765_v6  ;;  %v10844_v44 = vand.u32 4294901760, %v7694_v26  ;;  %v10845_v15 = vand.u32 4294901760, %v7698_v28  ;;  %v10846_v21 = vand.u32 4294901760, %v7711_v38 }
  0x3d   :  { %6790 = vmatprep.subr.bf16.mxu1 %v7669_v14  ;;  %v300_v32 = vsub.f32 %v8033_v55, %v10842_v31  ;;  %v10606_v36 = vand.u32 4294901760, %v8056_v48  ;;  %v10605_v9 = vand.u32 4294901760, %v8059_v47  ;;  %v10847_v10 = vand.u32 4294901760, %v7715_v40 }
  0x3e   :  { %v8076_v8 = vpack.c.bf16 %v10844_v44, %v10843_v35  ;;  %v8082_v4 = vpack.c.bf16 %v10846_v21, %v10845_v15  ;;  %v10848_v31 = vand.u32 4294901760, %v7721_v43  ;;  %v10849_v25 = vand.u32 4294901760, %v7726_v46 }
  0x3f   :  { %v10850_v26 = vand.u32 4294901760, %v7750_v58  ;;  %555 = vmatmul.mubr.f32.vlgmr.msra.gmra.mrb[0].mxu1 %v7959_v57  ;;  %6768 = vmatpush3.bf16.msra.mxu0 %v6767_v23  ;;  %v301_v28 = vand.u32 4294901760, %v300_v32  ;;  %v10851_v38 = vand.u32 4294901760, %v8047_v11  ;;  %v10852_v40 = vand.u32 4294901760, %v7754_v63 }
  0x40   :  { %v8090_v6 = vpack.c.bf16 %v10848_v31, %v10847_v10  ;;  %v10853_v43 = vand.u32 4294901760, %v7775_v12  ;;  %v10854_v46 = vand.u32 4294901760, %v7779_v17  ;;  %v10855_v58 = vand.u32 4294901760, %v7793_v42  ;;  %6792 = vmatpush3.bf16.msra.mxu1 %v7679_v20  ;;  %6770 = vmatprep.subr.bf16.mxu0 %v6769_v33 }
  0x41   :  { %v8096_v35 = vpack.c.bf16 %v10850_v26, %v10849_v25  ;;  %v306_v44 = vsub.f32 %v8047_v11, %v10851_v38  ;;  %v6773_v23 = vpack.c.bf16 %v7812_v60, %v7797_v50  ;;  %v315_v63 = vsub.f32 %v8056_v48, %v10606_v36  ;;  %6794 = vmatprep.subr.bf16.mxu1 %v7683_v22 }
  0x42   :  { %v8106_v15 = vpack.c.bf16 %v10853_v43, %v10852_v40  ;;  %v8112_v21 = vpack.c.bf16 %v10855_v58, %v10854_v46  ;;  %v10856_v12 = vand.u32 4294901760, %v7797_v50  ;;  %v10857_v32 = vand.u32 4294901760, %v7812_v60  ;;  %302 = vmatprep.mubr.f32.mxu0 %v301_v28  ;;  %560 = vmatprep.mubr.f32.mxu1 %v8015_v56  ;;  %v10861_v43 = vld [vmem:[#allocation5_spill] sm:$0xff]  ;;  %v10863_v46 = vld [vmem:[#allocation7_spill] sm:$0xff]  ;;  %v99_v58 = vld [vmem:[%s10547_s2 + $0x180] sm:$0xff] }
  0x43   :  { %v307_v17 = vand.u32 4294901760, %v306_v44  ;;  %v321_v33 = vsub.f32 %v8059_v47, %v10605_v9  ;;  %v10858_v42 = vand.u32 4294901760, %v7821_v5  ;;  %v10859_v31 = vand.u32 4294901760, %v7835_v30  ;;  %6772 = vmatpush3.bf16.msra.mxu0 %v6771_v52  ;;  %562 = vmatmul.mubr.f32.gmra.mrb[2].mxu1 %v8035_v24 }
  0x44   :  { %v8124_v10 = vpack.c.bf16 %v10857_v32, %v10856_v12  ;;  %v316_v26 = vand.u32 4294901760, %v315_v63  ;;  %v6775_v50 = vpack.c.bf16 %v7835_v30, %v7821_v5  ;;  %6796 = vmatpush3.bf16.msra.mxu1 %v7696_v27  ;;  %6774 = vmatprep.subr.bf16.mxu0 %v6773_v23  ;;  %v6777_v60 = vpack.c.bf16 %v7854_v3, %v7839_v51  ;;  %v10864_v23 = vld [vmem:[#allocation8_spill] sm:$0xff]  ;;  %v100_v63 = vld [vmem:[%s10547_s2 + $0x188] sm:$0xff]  ;;  %v83_v12 = vld [vmem:[%s10547_s2 + $0x100] sm:$0xff] }
  0x45   :  { %v8134_v25 = vpack.c.bf16 %v10859_v31, %v10858_v42  ;;  %6798 = vmatprep.subr.bf16.mxu1 %v7713_v39  ;;  %308 = vmatmul.mubr.f32.gmra.mrb[2].mxu0 %v307_v17  ;;  %v322_v28 = vand.u32 4294901760, %v321_v33  ;;  %v6779_v52 = vpack.c.bf16 %v7877_v61, %v7863_v0  ;;  %v6781_v5 = vpack.c.bf16 %v7896_v29, %v7881_v7  ;;  %v84_v32 = vld [vmem:[%s10547_s2 + $0x108] sm:$0xff]  ;;  %v10865_v17 = vld [vmem:[#allocation13_spill] sm:$0xff] }
  0x46   :  { %317 = vmatprep.mubr.f32.mxu0 %v316_v26  ;;  %567 = vmatprep.mubr.f32.mxu1 %v8039_v19  ;;  %v10860_v30 = vand.u32 4294901760, %v7962_v18  ;;  %v6783_v38 = vpack.c.bf16 %v7919_v53, %v7905_v54  ;;  %v6785_v44 = vpack.c.bf16 %v7935_v34, %v7923_v37  ;;  %v6787_v40 = vpack.c.bf16 %v7976_v2, %v7944_v41  ;;  %v10866_v33 = vld [vmem:[#allocation9_spill] sm:$0xff] }
  0x47   :  { %6776 = vmatpush3.bf16.msra.mxu0 %v6775_v50  ;;  %569 = vmatmul.mubr.f32.gmra.mrb[4].mxu1 %v8041_v59  ;;  %v1212_v42 = vand.u32 4294901760, %v100_v63  ;;  %v1161_v31 = vand.u32 4294901760, %v83_v12  ;;  %v1164_v26 = vand.u32 4294901760, %v84_v32  ;;  %v10867_v50 = vld [vmem:[#allocation10_spill] sm:$0xff]  ;;  %v10873_v36 = vand.u32 4294901760, %v7881_v7 }
  0x48   :  { %6800 = vmatpush3.bf16.msra.mxu1 %v7724_v45  ;;  %6778 = vmatprep.subr.bf16.mxu0 %v6777_v60  ;;  %v101_v60 = vld [vmem:[%s10547_s2 + $0x190] sm:$0xff]  ;;  %v10874_v59 = vand.u32 4294901760, %v7896_v29  ;;  %v104_v29 = vld [vmem:[%s10547_s2 + $0x1a8] sm:$0xff]  ;;  %vm4100_vm0 = vcmask 523264   ;;  %vm7600_vm1 = vmmov 0   ;;  %vm4733_vm2 = vcmask 261120  }
  0x49   :  { %6802 = vmatprep.subr.bf16.mxu1 %v7752_v62  ;;  %323 = vmatmul.mubr.f32.gmra.mrb[4].mxu0 %v322_v28  ;;  %v10868_v28 = vld [vmem:[#allocation11_spill] sm:$0xff]  ;;  %vm5329_vm3 = vcmask 260096  }
  0x4a   :  { %704 = vmatprep.mubr.f32.mxu0 %v7962_v18  ;;  %829 = vmatprep.mubr.f32.mxu1 %v10860_v30  ;;  %v10862_v18 = vld [vmem:[#allocation6_spill] sm:$0xff]  ;;  %v8203_v30 = vsub.f32 %v84_v32, %v1164_v26  ;;  %v10872_v32 = vand.u32 4294901760, %v7877_v61  ;;  %v10877_v61 = vand.u32 4294901760, %v7919_v53 }
  0x4b   :  { %6780 = vmatpush3.bf16.msra.mxu0 %v6779_v52  ;;  %v8199_v52 = vsub.f32 %v100_v63, %v1212_v42 }
  0x4c   :  { %6804 = vmatpush3.bf16.msra.mxu1 %v7777_v16  ;;  %6782 = vmatprep.subr.bf16.mxu0 %v6781_v5  ;;  %v8201_v5 = vsub.f32 %v83_v12, %v1161_v31  ;;  %v10871_v12 = vand.u32 4294901760, %v7863_v0  ;;  %v10876_v0 = vand.u32 4294901760, %v7905_v54  ;;  %v10880_v54 = vand.u32 4294901760, %v7935_v34 }
  0x4d   :  { %6806 = vmatprep.subr.bf16.mxu1 %v7795_v49 }
  0x4e   :  { %v8221_v9 = vpack.c.bf16 %v10872_v32, %v10871_v12  ;;  %v10614_v12 = vand.u32 4294901760, %v8201_v5  ;;  %v10609_v32 = vand.u32 4294901760, %v8203_v30 }
  0x4f   :  { %6784 = vmatpush3.bf16.msra.mxu0 %v6783_v38  ;;  %v85_v38 = vld [vmem:[%s10547_s2 + $0x110] sm:$0xff] }
  0x50   :  { %6808 = vmatpush3.bf16.msra.mxu1 %v10861_v43  ;;  %6786 = vmatprep.subr.bf16.mxu0 %v6785_v44  ;;  %v1215_v44 = vand.u32 4294901760, %v101_v60  ;;  %v1167_v7 = vand.u32 4294901760, %v85_v38 }
  0x51   :  { %6810 = vmatprep.subr.bf16.mxu1 %v10862_v18 }
  0x53   :  { %6788 = vmatpush3.bf16.msra.mxu0 %v6787_v40 }
  0x54   :  { %6812 = vmatpush3.bf16.msra.mxu1 %v10863_v46  ;;  %6822 = vmatprep.subr.bf16.mxu0 %v8053_v13  ;;  %v1209_v13 = vand.u32 4294901760, %v99_v58 }
  0x55   :  { %6814 = vmatprep.subr.bf16.mxu1 %v10864_v23 }
  0x56   :  { %707 = vmatmul.mubr.f32.vlgmr.msra.gmra.mrb[6].mxu0 %v10865_v17 }
  0x57   :  { %6824 = vmatpush3.bf16.msra.mxu0 %v8065_v1  ;;  %713 = vmatprep.mubr.f32.mxu0 %v8033_v55  ;;  %v102_v1 = vld [vmem:[%s10547_s2 + $0x198] sm:$0xff] }
  0x58   :  { %6816 = vmatpush3.bf16.msra.mxu1 %v10866_v33  ;;  %6826 = vmatprep.subr.bf16.mxu0 %v8076_v8  ;;  %v8195_v8 = vsub.f32 %v99_v58, %v1209_v13  ;;  %v1218_v40 = vand.u32 4294901760, %v102_v1  ;;  %v10870_v58 = vand.u32 4294901760, %v7854_v3  ;;  %v8239_v3 = vpack.c.bf16 %v10877_v61, %v10876_v0  ;;  %v88_v61 = vld [vmem:[%s10547_s2 + $0x128] sm:$0xff] }
  0x59   :  { %6818 = vmatprep.subr.bf16.mxu1 %v10867_v50 }
  0x5a   :  { %716 = vmatmul.mubr.f32.gmra.mrb[8].mxu0 %v8047_v11 }
  0x5b   :  { %6828 = vmatpush3.bf16.msra.mxu0 %v8082_v4  ;;  %722 = vmatprep.mubr.f32.mxu0 %v8056_v48  ;;  %v86_v4 = vld [vmem:[%s10547_s2 + $0x118] sm:$0xff] }
  0x5c   :  { %6820 = vmatpush3.bf16.msra.mxu1 %v10868_v28  ;;  %6830 = vmatprep.subr.bf16.mxu0 %v8090_v6  ;;  %v10869_v6 = vand.u32 4294901760, %v7839_v51  ;;  %v103_v28 = vld [vmem:[%s10547_s2 + $0x1a0] sm:$0xff]  ;;  %v10875_v51 = vand.u32 4294901760, %v10865_v17  ;;  %v10615_v17 = vand.u32 4294901760, %v8199_v52 }
  0x5d   :  { %6854 = vmatprep.subr.bf16.mxu1 %v7669_v14  ;;  %v8227_v14 = vpack.c.bf16 %v10874_v59, %v10873_v36  ;;  %v10619_v59 = vand.u32 4294901760, %v8195_v8  ;;  %v10878_v36 = vand.u32 4294901760, %v8033_v55  ;;  %v8268_v55 = vsub.f32 %v101_v60, %v1215_v44 }
  0x5e   :  { %725 = vmatmul.mubr.f32.gmra.mrb[10].mxu0 %v8059_v47  ;;  %v6841_v63 = vpack.c.bf16 %v10870_v58, %v10869_v6  ;;  %v1170_v6 = vand.u32 4294901760, %v86_v4  ;;  %v87_v58 = vld [vmem:[%s10547_s2 + $0x120] sm:$0xff]  ;;  %v1221_v0 = vand.u32 4294901760, %v103_v28  ;;  %v8285_v60 = vsub.f32 %v85_v38, %v1167_v7 }
  0x5f   :  { %833 = vmatmul.mubr.f32.vlgmr.msra.gmra.mrb[6].mxu1 %v10875_v51  ;;  %6832 = vmatpush3.bf16.msra.mxu0 %v8096_v35  ;;  %v10879_v35 = vand.u32 4294901760, %v7923_v37  ;;  %v10882_v37 = vand.u32 4294901760, %v7976_v2  ;;  %v8270_v51 = vsub.f32 %v102_v1, %v1218_v40  ;;  %v1224_v2 = vand.u32 4294901760, %v104_v29 }
  0x60   :  { %6856 = vmatpush3.bf16.msra.mxu1 %v7679_v20  ;;  %840 = vmatprep.mubr.f32.mxu1 %v10878_v36  ;;  %v10881_v20 = vand.u32 4294901760, %v7944_v41  ;;  %v10883_v36 = vld [vmem:[#allocation12_spill] sm:$0xff]  ;;  %v8280_v41 = vpack.c.bf16 %v1218_v40, %v1215_v44  ;;  %v8287_v1 = vsub.f32 %v86_v4, %v1170_v6  ;;  %v1306_v38 = vsub.f32 %v8201_v5, %v10614_v12 }
  0x61   :  { %v8252_v53 = vpack.c.bf16 %v10880_v54, %v10879_v35  ;;  %6834 = vmatprep.subr.bf16.mxu0 %v8106_v15  ;;  %6858 = vmatprep.subr.bf16.mxu1 %v7683_v22  ;;  %v8276_v15 = vpack.c.bf16 %v1212_v42, %v1209_v13  ;;  %v8278_v22 = vpack.c.bf16 %v1164_v26, %v1161_v31  ;;  %v10886_v35 = vand.u32 4294901760, %v8047_v11  ;;  %v105_v42 = vld [vmem:[%s10547_s2 + $0x1b0] sm:$0xff]  ;;  %v106_v11 = vld [vmem:[%s10547_s2 + $0x1b8] sm:$0xff] }
  0x62   :  { %v8266_v34 = vpack.c.bf16 %v10882_v37, %v10881_v20  ;;  %1021 = vmatprep.mubr.f32.mxu0 %v10883_v36  ;;  %10885 = vst [vmem:[#allocation6_spill] sm:$0xff] %v8280_v41  ;;  %v1418_v54 = vsub.f32 %v8195_v8, %v10619_v59  ;;  %v1173_v13 = vand.u32 4294901760, %v87_v58  ;;  %v1425_v31 = vsub.f32 %v8199_v52, %v10615_v17 }
  0x63   :  { %10884 = vst [vmem:[#allocation5_spill] sm:$0xff] %v8278_v22  ;;  %844 = vmatmul.mubr.f32.gmra.mrb[8].mxu1 %v10886_v35  ;;  %6836 = vmatpush3.bf16.msra.mxu0 %v8112_v21  ;;  %v10887_v21 = vand.u32 4294901760, %v8056_v48  ;;  %v1176_v26 = vand.u32 4294901760, %v88_v61  ;;  %v1313_v4 = vsub.f32 %v8203_v30, %v10609_v32  ;;  %v8314_v48 = vsub.f32 %v103_v28, %v1221_v0  ;;  %v89_v28 = vld [vmem:[%s10547_s2 + $0x130] sm:$0xff] }
  0x64   :  { %6860 = vmatpush3.bf16.msra.mxu1 %v7696_v27  ;;  %6838 = vmatprep.subr.bf16.mxu0 %v8124_v10  ;;  %v8312_v27 = vpack.c.bf16 %v1170_v6, %v1167_v7  ;;  %v10613_v44 = vand.u32 4294901760, %v8268_v55  ;;  %v10612_v40 = vand.u32 4294901760, %v8270_v51  ;;  %v8318_v20 = vpack.c.bf16 %v1224_v2, %v1221_v0  ;;  %v90_v7 = vld [vmem:[%s10547_s2 + $0x138] sm:$0xff] }
  0x65   :  { %851 = vmatprep.mubr.f32.mxu1 %v10887_v21  ;;  %6862 = vmatprep.subr.bf16.mxu1 %v7713_v39  ;;  %v8320_v37 = vsub.f32 %v104_v29, %v1224_v2  ;;  %v1227_v35 = vand.u32 4294901760, %v105_v42  ;;  %v1230_v21 = vand.u32 4294901760, %v106_v11  ;;  %v10890_v32 = vand.u32 4294901760, %v8059_v47 }
  0x66   :  { %10888 = vst [vmem:[#allocation7_spill] sm:$0xff] %v8312_v27  ;;  %10889 = vst [vmem:[#allocation8_spill] sm:$0xff] %v8318_v20  ;;  %v1419_v39 = vand.u32 4294901760, %v1418_v54  ;;  %v8325_v10 = vsub.f32 %v87_v58, %v1173_v13  ;;  %v10611_v6 = vand.u32 4294901760, %v8285_v60  ;;  %v10610_v29 = vand.u32 4294901760, %v8287_v1 }
  0x67   :  { %855 = vmatmul.mubr.f32.gmra.mrb[10].mxu1 %v10890_v32  ;;  %6840 = vmatpush3.bf16.msra.mxu0 %v8134_v25  ;;  %v1426_v47 = vand.u32 4294901760, %v1425_v31  ;;  %v8336_v25 = vpack.c.bf16 %v1176_v26, %v1173_v13  ;;  %v1307_v58 = vand.u32 4294901760, %v1306_v38  ;;  %v1314_v32 = vand.u32 4294901760, %v1313_v4  ;;  %v30_v4 = vld [vmem:[%s10545_s0 + $0x18] sm:$0xff] }
  0x68   :  { %6864 = vmatpush3.bf16.msra.mxu1 %v7724_v45  ;;  %6842 = vmatprep.subr.bf16.mxu0 %v6841_v63  ;;  %v8340_v0 = vsub.f32 %v88_v61, %v1176_v26  ;;  %v1432_v2 = vsub.f32 %v8268_v55, %v10613_v44  ;;  %v1439_v45 = vsub.f32 %v8270_v51, %v10612_v40  ;;  %v1179_v13 = vand.u32 4294901760, %v89_v28  ;;  %v108_v61 = vld [vmem:[%s10547_s2 + $0x1c8] sm:$0xff] }
  0x69   :  { %10891 = vst [vmem:[#allocation13_spill] sm:$0xff] %v8336_v25  ;;  %6866 = vmatprep.subr.bf16.mxu1 %v7752_v62  ;;  %1139 = vmatprep.mubr.f32.mxu1 %v10883_v36  ;;  %v8348_v63 = vpack.c.bf16 %v1230_v21, %v1227_v35  ;;  %v8350_v54 = vsub.f32 %v105_v42, %v1227_v35  ;;  %v1182_v31 = vand.u32 4294901760, %v90_v7  ;;  %v107_v62 = vld [vmem:[%s10547_s2 + $0x1c0] sm:$0xff]  ;;  %v10618_v38 = vand.u32 4294901760, %v8314_v48 }
  0x6a   :  { %v8359_v36 = vsub.f32 %v106_v11, %v1230_v21  ;;  %v1320_v26 = vsub.f32 %v8285_v60, %v10611_v6  ;;  %v1327_v42 = vsub.f32 %v8287_v1, %v10610_v29  ;;  %v8375_v11 = vpack.c.bf16 %v1314_v32, %v1307_v58  ;;  %v91_v21 = vld [vmem:[%s10547_s2 + $0x140] sm:$0xff] }
  0x6b   :  { %10892 = vst [vmem:[#allocation9_spill] sm:$0xff] %v8348_v63  ;;  %6844 = vmatpush3.bf16.msra.mxu0 %v8221_v9  ;;  %v8373_v9 = vpack.c.bf16 %v1426_v47, %v1419_v39  ;;  %v10616_v35 = vand.u32 4294901760, %v8320_v37  ;;  %v10617_v29 = vand.u32 4294901760, %v8325_v10  ;;  %v1433_v6 = vand.u32 4294901760, %v1432_v2 }
  0x6c   :  { %10893 = vst [vmem:[#allocation10_spill] sm:$0xff] %v8359_v36  ;;  %6868 = vmatpush3.bf16.msra.mxu1 %v7777_v16  ;;  %6846 = vmatprep.subr.bf16.mxu0 %v8227_v14  ;;  %v1440_v40 = vand.u32 4294901760, %v1439_v45  ;;  %v1233_v44 = vand.u32 4294901760, %v107_v62  ;;  %v1236_v16 = vand.u32 4294901760, %v108_v61  ;;  %v92_v14 = vld [vmem:[%s10547_s2 + $0x148] sm:$0xff]  ;;  %v8386_v39 = vpack.c.bf16 %v1182_v31, %v1179_v13 }
  0x6d   :  { %6870 = vmatprep.subr.bf16.mxu1 %v7795_v49  ;;  %v8388_v47 = vsub.f32 %v89_v28, %v1179_v13  ;;  %v10620_v58 = vand.u32 4294901760, %v8340_v0  ;;  %v8391_v32 = vand.u32 4294901760, %v30_v4  ;;  %v1321_v12 = vand.u32 4294901760, %v1320_v26  ;;  %v109_v26 = vld [vmem:[%s10547_s2 + $0x1d0] sm:$0xff] }
  0x6e   :  { %10894 = vst [vmem:[#allocation12_spill] sm:$0xff] %v8386_v39  ;;  %v1328_v49 = vand.u32 4294901760, %v1327_v42  ;;  %v1446_v2 = vsub.f32 %v8314_v48, %v10618_v38  ;;  %v1185_v45 = vand.u32 4294901760, %v91_v21  ;;  %v8399_v17 = vsub.f32 %v90_v7, %v1182_v31  ;;  %v110_v7 = vld [vmem:[%s10547_s2 + $0x1d8] sm:$0xff] }
  0x6f   :  { %10895 = vst [vmem:[#allocation15_spill] sm:$0xff] %v8391_v32  ;;  %6848 = vmatpush3.bf16.msra.mxu0 %v8239_v3  ;;  %v1453_v28 = vsub.f32 %v8320_v37, %v10616_v35  ;;  %v1188_v13 = vand.u32 4294901760, %v92_v14  ;;  %v1334_v3 = vsub.f32 %v8325_v10, %v10617_v29  ;;  %v10621_v42 = vand.u32 4294901760, %v8359_v36 }
  0x70   :  { %6872 = vmatpush3.bf16.msra.mxu1 %v10861_v43  ;;  %6850 = vmatprep.subr.bf16.mxu0 %v8252_v53  ;;  %10896 = vst [vmem:[#allocation16_spill] sm:$0xff] %v8399_v17  ;;  %v8411_v43 = vpack.c.bf16 %v1440_v40, %v1433_v6  ;;  %v8413_v53 = vpack.c.bf16 %v1236_v16, %v1233_v44  ;;  %v1447_v38 = vand.u32 4294901760, %v1446_v2  ;;  %v1239_v31 = vand.u32 4294901760, %v109_v26 }
  0x71   :  { %6874 = vmatprep.subr.bf16.mxu1 %v10862_v18  ;;  %v8420_v35 = vsub.f32 %v107_v62, %v1233_v44  ;;  %v8422_v29 = vsub.f32 %v108_v61, %v1236_v16  ;;  %v1341_v18 = vsub.f32 %v8340_v0, %v10620_v58  ;;  %v8428_v40 = vsub.f32 %v30_v4, %v8391_v32  ;;  %v93_v44 = vld [vmem:[%s10547_s2 + $0x150] sm:$0xff]  ;;  %v94_v62 = vld [vmem:[%s10547_s2 + $0x158] sm:$0xff] }
  0x72   :  { %v8431_v6 = vpack.c.bf16 %v1328_v49, %v1321_v12  ;;  %v8433_v59 = vsub.f32 %v91_v21, %v1185_v45  ;;  %v1454_v61 = vand.u32 4294901760, %v1453_v28  ;;  %v1335_v12 = vand.u32 4294901760, %v1334_v3 }
  0x73   :  { %10897 = vst [vmem:[#allocation17_spill] sm:$0xff] %v8420_v35  ;;  %10898 = vst [vmem:[#allocation18_spill] sm:$0xff] %v8422_v29  ;;  %6852 = vmatpush3.bf16.msra.mxu0 %v8266_v34  ;;  %v8443_v34 = vpack.c.bf16 %v1188_v13, %v1185_v45  ;;  %v1242_v4 = vand.u32 4294901760, %v110_v7  ;;  %v10901_v21 = vand.u32 4294901760, %v8350_v54  ;;  %v1467_v49 = vsub.f32 %v8359_v36, %v10621_v42  ;;  %v111_v45 = vld [vmem:[%s10547_s2 + $0x1e0] sm:$0xff] }
  0x74   :  { %10899 = vst [vmem:[#allocation19_spill] sm:$0xff] %v8428_v40  ;;  %6876 = vmatpush3.bf16.msra.mxu1 %v10863_v46  ;;  %6886 = vmatprep.subr.bf16.mxu0 %v8276_v15  ;;  %v1342_v28 = vand.u32 4294901760, %v1341_v18  ;;  %v1194_v3 = vand.u32 4294901760, %v94_v62  ;;  %v8463_v42 = vsub.f32 %v109_v26, %v1239_v31  ;;  %v8469_v18 = vpack.c.bf16 %v1454_v61, %v1447_v38 }
  0x75   :  { %10900 = vst [vmem:[#allocation20_spill] sm:$0xff] %v8443_v34  ;;  %6878 = vmatprep.subr.bf16.mxu1 %v10864_v23  ;;  %v1460_v16 = vsub.f32 %v8350_v54, %v10901_v21  ;;  %v1191_v23 = vand.u32 4294901760, %v93_v44  ;;  %v8461_v21 = vsub.f32 %v92_v14, %v1188_v13  ;;  %v8471_v36 = vpack.c.bf16 %v1242_v4, %v1239_v31  ;;  %v112_v14 = vld [vmem:[%s10547_s2 + $0x1e8] sm:$0xff] }
  0x76   :  { %1023 = vmatmul.mubr.f32.vlgmr.msra.gmra.mrb[12].mxu0 %v7959_v57  ;;  %v8473_v58 = vsub.f32 %v110_v7, %v1242_v4  ;;  %v1245_v13 = vand.u32 4294901760, %v111_v45  ;;  %v1468_v46 = vand.u32 4294901760, %v1467_v49  ;;  %v10903_v2 = vand.u32 4294901760, %v8388_v47  ;;  %v95_v7 = vld [vmem:[%s10547_s2 + $0x160] sm:$0xff] }
  0x77   :  { %6888 = vmatpush3.bf16.msra.mxu0 %v8278_v22  ;;  %1028 = vmatprep.mubr.f32.mxu0 %v8015_v56  ;;  %10902 = vst [vmem:[#allocation21_spill] sm:$0xff] %v8471_v36  ;;  %v1461_v26 = vand.u32 4294901760, %v1460_v16  ;;  %v10904_v38 = vand.u32 4294901760, %v8399_v17  ;;  %v8489_v61 = vpack.c.bf16 %v1342_v28, %v1335_v12  ;;  %v8491_v4 = vpack.c.bf16 %v1194_v3, %v1191_v23  ;;  %v96_v16 = vld [vmem:[%s10547_s2 + $0x168] sm:$0xff]  ;;  %v113_v22 = vld [vmem:[%s10547_s2 + $0x1f0] sm:$0xff] }
  0x78   :  { %6880 = vmatpush3.bf16.msra.mxu1 %v10866_v33  ;;  %6890 = vmatprep.subr.bf16.mxu0 %v8280_v41  ;;  %v1348_v33 = vsub.f32 %v8388_v47, %v10903_v2  ;;  %v10906_v49 = vand.u32 4294901760, %v8428_v40  ;;  %v1248_v12 = vand.u32 4294901760, %v112_v14  ;;  %v10907_v28 = vand.u32 4294901760, %v8420_v35 }
  0x79   :  { %6882 = vmatprep.subr.bf16.mxu1 %v10867_v50  ;;  %v1355_v31 = vsub.f32 %v8399_v17, %v10904_v38  ;;  %10905 = vst [vmem:[#allocation22_spill] sm:$0xff] %v8491_v4  ;;  %v8493_v50 = vsub.f32 %v93_v44, %v1191_v23  ;;  %v8503_v38 = vsub.f32 %v94_v62, %v1194_v3  ;;  %v10908_v23 = vand.u32 4294901760, %v8422_v29  ;;  %v10910_v17 = vld [vmem:[#allocation14_spill] sm:$0xff]  ;;  %v29_v3 = vld [vmem:[%s10545_s0 + $0x10] sm:$0xff] }
  0x7a   :  { %1030 = vmatmul.mubr.f32.gmra.mrb[14].mxu0 %v8035_v24  ;;  %v1259_v2 = vsub.f32 %v8428_v40, %v10906_v49  ;;  %v1474_v44 = vsub.f32 %v8420_v35, %v10907_v28  ;;  %v10909_v49 = vld [vmem:[#allocation11_spill] sm:$0xff]  ;;  %v1197_v62 = vand.u32 4294901760, %v95_v7  ;;  %v8521_v28 = vpack.c.bf16 %v1468_v46, %v1461_v26 }
  0x7b   :  { %6892 = vmatpush3.bf16.msra.mxu0 %v8312_v27  ;;  %1035 = vmatprep.mubr.f32.mxu0 %v8039_v19  ;;  %v1481_v41 = vsub.f32 %v8422_v29, %v10908_v23  ;;  %v8516_v27 = vsub.f32 %v111_v45, %v1245_v13  ;;  %v1349_v23 = vand.u32 4294901760, %v1348_v33  ;;  %v1356_v29 = vand.u32 4294901760, %v1355_v31 }
  0x7c   :  { %6884 = vmatpush3.bf16.msra.mxu1 %v10909_v49  ;;  %6894 = vmatprep.subr.bf16.mxu0 %v8318_v20  ;;  %v1200_v35 = vand.u32 4294901760, %v96_v16  ;;  %v114_v49 = vld [vmem:[%s10547_s2 + $0x1f8] sm:$0xff]  ;;  %v1251_v45 = vand.u32 4294901760, %v113_v22  ;;  %v1260_v46 = vand.u32 4294901760, %v1259_v2  ;;  %v8536_v26 = vpack.c.bf16 %v1248_v12, %v1245_v13 }
  0x7d   :  { %6918 = vmatprep.subr.bf16.mxu1 %v8373_v9  ;;  %v8532_v9 = vld [vmem:[%s10547_s2 + $0x170] sm:$0xff]  ;;  %v8538_v33 = vsub.f32 %v112_v14, %v1248_v12  ;;  %v1475_v31 = vand.u32 4294901760, %v1474_v44  ;;  %v1482_v40 = vand.u32 4294901760, %v1481_v41  ;;  %v8545_v20 = vsub.f32 %v95_v7, %v1197_v62  ;;  %v38_v41 = vld [vmem:[%s10545_s0 + $0x58] sm:$0xff] }
  0x7e   :  { %1037 = vmatmul.mubr.f32.gmra.mrb[16].mxu0 %v10910_v17  ;;  %10911 = vst [vmem:[#allocation11_spill] sm:$0xff] %v8536_v26  ;;  %v10913_v13 = vand.u32 4294901760, %v8461_v21  ;;  %v1254_v12 = vand.u32 4294901760, %v114_v49  ;;  %v8560_v7 = vsub.f32 %v96_v16, %v1200_v35  ;;  %v8565_v44 = vld [vmem:[%s10547_s2 + $0x178] sm:$0xff] }
  0x7f   :  { %1141 = vmatmul.mubr.f32.vlgmr.msra.gmra.mrb[12].mxu1 %v7959_v57  ;;  %6896 = vmatpush3.bf16.msra.mxu0 %v8336_v25  ;;  %v10912_v57 = vand.u32 4294901760, %v8433_v59  ;;  %v10915_v25 = vand.u32 4294901760, %v8463_v42  ;;  %v6933_v16 = vpack.c.bf16 %v1482_v40, %v1475_v31  ;;  %v1206_v40 = vand.u32 4294901760, %v8565_v44  ;;  %v46_v31 = vld [vmem:[%s10545_s0 + $0x98] sm:$0x7f] }
  0x80   :  { %6920 = vmatpush3.bf16.msra.mxu1 %v8375_v11  ;;  %1146 = vmatprep.mubr.f32.mxu1 %v8015_v56  ;;  %v1369_v14 = vsub.f32 %v8461_v21, %v10913_v13  ;;  %v6931_v56 = vpack.c.bf16 %v1356_v29, %v1349_v23  ;;  %v8558_v11 = vpack.c.bf16 %v1200_v35, %v1197_v62  ;;  %v8576_v35 = vand.u32 4294901760, %v29_v3 }
  0x81   :  { %v1362_v2 = vsub.f32 %v8433_v59, %v10912_v57  ;;  %6898 = vmatprep.subr.bf16.mxu0 %v8348_v63  ;;  %6922 = vmatprep.subr.bf16.mxu1 %v8411_v43  ;;  %v10646_v57 = vand.u32 4294901760, %v8532_v9  ;;  %v8568_v13 = vsub.f32 %v113_v22, %v1251_v45  ;;  %v1488_v63 = vsub.f32 %v8463_v42, %v10915_v25  ;;  %v37_v25 = vld [vmem:[%s10545_s0 + $0x50] sm:$0xff] }
  0x82   :  { %10914 = vst [vmem:[#allocation14_spill] sm:$0xff] %v8558_v11  ;;  %v10916_v43 = vand.u32 4294901760, %v8473_v58  ;;  %1261 = vmatprep.mubr.f32.mxu0 %v1260_v46  ;;  %10917 = vst [vmem:[#allocation23_spill] sm:$0xff] %v8576_v35  ;;  %v8582_v23 = vand.u32 4294901760, %v38_v41  ;;  %v8597_v22 = vsub.f32 %v114_v49, %v1254_v12  ;;  %v8607_v62 = vsub.f32 %v29_v3, %v8576_v35  ;;  %v45_v3 = vld [vmem:[%s10545_s0 + $0x90] sm:$0x7f] }
  0x83   :  { %1148 = vmatmul.mubr.f32.gmra.mrb[14].mxu1 %v8035_v24  ;;  %6900 = vmatpush3.bf16.msra.mxu0 %v8386_v39  ;;  %v1363_v46 = vand.u32 4294901760, %v1362_v2  ;;  %v8589_v24 = vpack.c.bf16 %v1254_v12, %v1251_v45  ;;  %v1489_v2 = vand.u32 4294901760, %v1488_v63  ;;  %v8609_v39 = vand.u32 4294901760, %v37_v25 }
  0x84   :  { %v1495_v29 = vsub.f32 %v8473_v58, %v10916_v43  ;;  %10918 = vst [vmem:[#allocation24_spill] sm:$0xff] %v8582_v23  ;;  %6924 = vmatpush3.bf16.msra.mxu1 %v8431_v6  ;;  %1153 = vmatprep.mubr.f32.mxu1 %v8039_v19  ;;  %v1370_v43 = vand.u32 4294901760, %v1369_v14  ;;  %v8602_v19 = vsub.f32 %v8532_v9, %v10646_v57  ;;  %v10651_v6 = vand.u32 4294901760, %v8516_v27 }
  0x85   :  { %10919 = vst [vmem:[#allocation25_spill] sm:$0xff] %v8589_v24  ;;  %6902 = vmatprep.subr.bf16.mxu0 %v8413_v53  ;;  %6926 = vmatprep.subr.bf16.mxu1 %v8469_v18  ;;  %10920 = vst [vmem:[#allocation26_spill] sm:$0xff] %v8607_v62  ;;  %v10922_v18 = vand.u32 4294901760, %v8493_v50  ;;  %v10923_v12 = vand.u32 4294901760, %v8503_v38  ;;  %v8620_v63 = vsub.f32 %v38_v41, %v8582_v23 }
  0x86   :  { %v1496_v14 = vand.u32 4294901760, %v1495_v29  ;;  %10921 = vst [vmem:[#allocation27_spill] sm:$0xff] %v8609_v39  ;;  %v8622_v29 = vand.u32 4294901760, %v46_v31  ;;  %v1502_v41 = vsub.f32 %v8516_v27, %v10651_v6 }
  0x87   :  { %1155 = vmatmul.mubr.f32.gmra.mrb[16].mxu1 %v10910_v17  ;;  %6904 = vmatpush3.bf16.msra.mxu0 %v8443_v34  ;;  %v1376_v49 = vsub.f32 %v8493_v50, %v10922_v18  ;;  %v1383_v57 = vsub.f32 %v8503_v38, %v10923_v12  ;;  %v6935_v17 = vpack.c.bf16 %v1370_v43, %v1363_v46  ;;  %v10925_v34 = vand.u32 4294901760, %v8538_v33 }
  0x88   :  { %10924 = vst [vmem:[#allocation28_spill] sm:$0xff] %v8622_v29  ;;  %6928 = vmatpush3.bf16.msra.mxu1 %v8489_v61  ;;  %6906 = vmatprep.subr.bf16.mxu0 %v8471_v36  ;;  %v8630_v18 = vsub.f32 %v8565_v44, %v1206_v40  ;;  %v6937_v44 = vpack.c.bf16 %v1496_v14, %v1489_v2  ;;  %v10927_v2 = vand.u32 4294901760, %v8545_v20 }
  0x89   :  { %6930 = vmatprep.subr.bf16.mxu1 %v8521_v28  ;;  %v1509_v61 = vsub.f32 %v8538_v33, %v10925_v34  ;;  %1527 = vmatprep.mubr.f32.mxu1 %v8391_v32  ;;  %v8646_v12 = vsub.f32 %v37_v25, %v8609_v39  ;;  %v8648_v28 = vand.u32 4294901760, %v45_v3  ;;  %v1377_v6 = vand.u32 4294901760, %v1376_v49 }
  0x8a   :  { %v1384_v45 = vand.u32 4294901760, %v1383_v57  ;;  %v8653_v36 = vsub.f32 %v46_v31, %v8622_v29  ;;  %v1390_v14 = vsub.f32 %v8545_v20, %v10927_v2  ;;  %v10928_v25 = vand.u32 4294901760, %v8560_v7 }
  0x8b   :  { %10926 = vst [vmem:[#allocation29_spill] sm:$0xff] %v8648_v28  ;;  %6908 = vmatpush3.bf16.msra.mxu0 %v8491_v4  ;;  %v10665_v57 = vand.u32 4294901760, %v8630_v18  ;;  %v1503_v49 = vand.u32 4294901760, %v1502_v41  ;;  %v1510_v34 = vand.u32 4294901760, %v1509_v61  ;;  %v10929_v31 = vand.u32 4294901760, %v8568_v13 }
  0x8c   :  { %6932 = vmatpush3.bf16.msra.mxu1 %v6931_v56  ;;  %6910 = vmatprep.subr.bf16.mxu0 %v8536_v26  ;;  %v1397_v43 = vsub.f32 %v8560_v7, %v10928_v25  ;;  %v10930_v32 = vand.u32 4294901760, %v8597_v22  ;;  %v10931_v2 = vand.u32 4294901760, %v8532_v9  ;;  %v10933_v25 = vand.u32 4294901760, %v8607_v62 }
  0x8d   :  { %6934 = vmatprep.subr.bf16.mxu1 %v6933_v16  ;;  %v1516_v56 = vsub.f32 %v8568_v13, %v10929_v31  ;;  %v8679_v41 = vsub.f32 %v45_v3, %v8648_v28  ;;  %v6939_v61 = vpack.c.bf16 %v1384_v45, %v1377_v6  ;;  %v6949_v31 = vpack.c.bf16 %v8199_v52, %v8195_v8 }
  0x8e   :  { %v1523_v26 = vsub.f32 %v8597_v22, %v10930_v32  ;;  %v8672_v4 = vpack.c.bf16 %v1206_v40, %v10931_v2  ;;  %v1265_v46 = vsub.f32 %v8607_v62, %v10933_v25  ;;  %v10934_v32 = vand.u32 4294901760, %v8620_v63 }
  0x8f   :  { %6912 = vmatpush3.bf16.msra.mxu0 %v8558_v11  ;;  %v1391_v2 = vand.u32 4294901760, %v1390_v14  ;;  %v1398_v25 = vand.u32 4294901760, %v1397_v43  ;;  %v10935_v3 = vand.u32 4294901760, %v8602_v19  ;;  %v1411_v6 = vsub.f32 %v8630_v18, %v10665_v57 }
  0x90   :  { %10932 = vst [vmem:[#allocation30_spill] sm:$0xff] %v8672_v4  ;;  %v1274_v9 = vsub.f32 %v8620_v63, %v10934_v32  ;;  %6936 = vmatpush3.bf16.msra.mxu1 %v6935_v17  ;;  %6914 = vmatprep.subr.bf16.mxu0 %v8589_v24  ;;  %v6941_v45 = vpack.c.bf16 %v1510_v34, %v1503_v49  ;;  %v1517_v11 = vand.u32 4294901760, %v1516_v56  ;;  %v1524_v62 = vand.u32 4294901760, %v1523_v26 }
  0x91   :  { %v1404_v16 = vsub.f32 %v8602_v19, %v10935_v3  ;;  %6938 = vmatprep.subr.bf16.mxu1 %v6937_v44  ;;  %v1266_v32 = vand.u32 4294901760, %v1265_v46  ;;  %v10936_v40 = vand.u32 4294901760, %v8646_v12  ;;  %v10664_v14 = vand.u32 4294901760, %v8679_v41 }
  0x92   :  { %v6951_v43 = vpack.c.bf16 %v8203_v30, %v8201_v5  ;;  %v1275_v3 = vand.u32 4294901760, %v1274_v9  ;;  %v10937_v24 = vand.u32 4294901760, %v8653_v36  ;;  %v6943_v26 = vpack.c.bf16 %v1398_v25, %v1391_v2  ;;  %v10938_v2 = vld [vmem:[#allocation10_spill] sm:$0xff] }
  0x93   :  { %v1280_v17 = vsub.f32 %v8646_v12, %v10936_v40  ;;  %6916 = vmatpush3.bf16.msra.mxu0 %v8672_v4  ;;  %v6953_v46 = vpack.c.bf16 %v8270_v51, %v8268_v55  ;;  %v1405_v34 = vand.u32 4294901760, %v1404_v16  ;;  %v1412_v49 = vand.u32 4294901760, %v1411_v6  ;;  %v10939_v6 = vld [vmem:[#allocation16_spill] sm:$0xff] }
  0x94   :  { %v1289_v44 = vsub.f32 %v8653_v36, %v10937_v24  ;;  %6940 = vmatpush3.bf16.msra.mxu1 %v6939_v61  ;;  %6950 = vmatprep.subr.bf16.mxu0 %v6949_v31  ;;  %v6945_v56 = vpack.c.bf16 %v1524_v62, %v1517_v11  ;;  %v1295_v9 = vsub.f32 %v8679_v41, %v10664_v14  ;;  %v10965_v14 = vand.u32 4294901760, %v8314_v48 }
  0x95   :  { %6942 = vmatprep.subr.bf16.mxu1 %v6941_v45  ;;  %v1281_v40 = vand.u32 4294901760, %v1280_v17  ;;  %v6955_v24 = vpack.c.bf16 %v8287_v1, %v8285_v60  ;;  %v6947_v31 = vpack.c.bf16 %v1412_v49, %v1405_v34  ;;  %v6957_v16 = vpack.c.bf16 %v8320_v37, %v8314_v48  ;;  %v10941_v17 = vld [vmem:[#allocation6_spill] sm:$0xff]  ;;  %v10945_v34 = vld [vmem:[#allocation7_spill] sm:$0xff] }
  0x96   :  { %1267 = vmatmul.mubr.f32.vlgmr.msra.gmra.mrb[18].mxu0 %v1266_v32  ;;  %v1290_v61 = vand.u32 4294901760, %v1289_v44  ;;  %v1296_v11 = vand.u32 4294901760, %v1295_v9  ;;  %v6959_v62 = vpack.c.bf16 %v8340_v0, %v8325_v10  ;;  %v6961_v25 = vpack.c.bf16 %v10938_v2, %v8350_v54  ;;  %v10940_v32 = vld [vmem:[#allocation5_spill] sm:$0xff] }
  0x97   :  { %6952 = vmatpush3.bf16.msra.mxu0 %v6951_v43  ;;  %1276 = vmatprep.mubr.f32.mxu0 %v1275_v3  ;;  %v6963_v45 = vpack.c.bf16 %v10939_v6, %v8388_v47  ;;  %v10942_v43 = vld [vmem:[#allocation17_spill] sm:$0xff]  ;;  %v10943_v3 = vld [vmem:[#allocation18_spill] sm:$0xff]  ;;  %v6969_v49 = vpack.c.bf16 %v8473_v58, %v8463_v42  ;;  %v10966_v57 = vand.u32 4294901760, %v8320_v37 }
  0x98   :  { %6944 = vmatpush3.bf16.msra.mxu1 %v6943_v26  ;;  %6954 = vmatprep.subr.bf16.mxu0 %v6953_v46  ;;  %v6965_v44 = vpack.c.bf16 %v10943_v3, %v10942_v43  ;;  %v10944_v26 = vld [vmem:[#allocation19_spill] sm:$0xff]  ;;  %v6967_v46 = vpack.c.bf16 %v8461_v21, %v8433_v59  ;;  %v10947_v9 = vld [vmem:[#allocation13_spill] sm:$0xff] }
  0x99   :  { %6946 = vmatprep.subr.bf16.mxu1 %v6945_v56  ;;  %v10946_v56 = vld [vmem:[#allocation8_spill] sm:$0xff] }
  0x9a   :  { %1282 = vmatmul.mubr.f32.gmra.mrb[20].mxu0 %v1281_v40  ;;  %v6971_v40 = vpack.c.bf16 %v8503_v38, %v8493_v50 }
  0x9b   :  { %6956 = vmatpush3.bf16.msra.mxu0 %v6955_v24  ;;  %1291 = vmatprep.mubr.f32.mxu0 %v1290_v61  ;;  %v6973_v24 = vpack.c.bf16 %v8538_v33, %v8516_v27  ;;  %v10948_v61 = vld [vmem:[#allocation9_spill] sm:$0xff] }
  0x9c   :  { %6948 = vmatpush3.bf16.msra.mxu1 %v6947_v31  ;;  %6958 = vmatprep.subr.bf16.mxu0 %v6957_v16  ;;  %v10949_v31 = vand.u32 4294901760, %v10944_v26  ;;  %v6975_v16 = vpack.c.bf16 %v8560_v7, %v8545_v20 }
  0x9d   :  { %6982 = vmatprep.subr.bf16.mxu1 %v8276_v15 }
  0x9e   :  { %1297 = vmatmul.mubr.f32.gmra.mrb[22].mxu0 %v1296_v11  ;;  %v10950_v11 = vld [vmem:[#allocation12_spill] sm:$0xff] }
  0x9f   :  { %1529 = vmatmul.mubr.f32.vlgmr.msra.gmra.mrb[18].mxu1 %v8576_v35  ;;  %6960 = vmatpush3.bf16.msra.mxu0 %v6959_v62  ;;  %v6977_v62 = vpack.c.bf16 %v8597_v22, %v8568_v13  ;;  %v10977_v35 = vand.u32 4294901760, %v8461_v21  ;;  %v136_v21 = vld [vmem:[%s10547_s2 + $0x2a8] sm:$0xff] }
  0xa0   :  { %6984 = vmatpush3.bf16.msra.mxu1 %v10940_v32  ;;  %1534 = vmatprep.mubr.f32.mxu1 %v8582_v23  ;;  %v10976_v23 = vand.u32 4294901760, %v8433_v59  ;;  %v135_v59 = vld [vmem:[%s10547_s2 + $0x2a0] sm:$0xff] }
  0xa1   :  { %6962 = vmatprep.subr.bf16.mxu0 %v6961_v25  ;;  %6986 = vmatprep.subr.bf16.mxu1 %v10941_v17  ;;  %v6979_v25 = vpack.c.bf16 %v8630_v18, %v8602_v19 }
  0xa2   :  { %1678 = vmatprep.mubr.f32.mxu0 %v10944_v26  ;;  %v10953_v26 = vand.u32 4294901760, %v8199_v52  ;;  %v10957_v52 = vld [vmem:[#allocation22_spill] sm:$0xff] }
  0xa3   :  { %1536 = vmatmul.mubr.f32.gmra.mrb[20].mxu1 %v8609_v39  ;;  %6964 = vmatpush3.bf16.msra.mxu0 %v6963_v45  ;;  %v10951_v45 = vld [vmem:[#allocation20_spill] sm:$0xff] }
  0xa4   :  { %6988 = vmatpush3.bf16.msra.mxu1 %v10945_v34  ;;  %1541 = vmatprep.mubr.f32.mxu1 %v8622_v29 }
  0xa5   :  { %6966 = vmatprep.subr.bf16.mxu0 %v6965_v44  ;;  %6990 = vmatprep.subr.bf16.mxu1 %v10946_v56  ;;  %v10952_v44 = vand.u32 4294901760, %v8195_v8  ;;  %v8771_v8 = vld [vmem:[%s10547_s2 + $0x288] sm:$0xff] }
  0xa7   :  { %1543 = vmatmul.mubr.f32.gmra.mrb[22].mxu1 %v8648_v28  ;;  %6968 = vmatpush3.bf16.msra.mxu0 %v6967_v46  ;;  %v7013_v46 = vpack.c.bf16 %v10953_v26, %v10952_v44  ;;  %v8782_v44 = vld [vmem:[%s10547_s2 + $0x200] sm:$0xff]  ;;  %v8787_v26 = vld [vmem:[%s10547_s2 + $0x208] sm:$0xff]  ;;  %v7021_v28 = vpack.c.bf16 %v10966_v57, %v10965_v14  ;;  %v10968_v57 = vand.u32 4294901760, %v8325_v10  ;;  %v10969_v14 = vand.u32 4294901760, %v8340_v0  ;;  %v118_v10 = vld [vmem:[%s10547_s2 + $0x218] sm:$0xff] }
  0xa8   :  { %6992 = vmatpush3.bf16.msra.mxu1 %v10947_v9  ;;  %6970 = vmatprep.subr.bf16.mxu0 %v6969_v49  ;;  %v10954_v49 = vld [vmem:[#allocation21_spill] sm:$0xff]  ;;  %v2135_v29 = vand.u32 4294901760, %v8782_v44  ;;  %v2138_v39 = vand.u32 4294901760, %v8787_v26  ;;  %v10970_v0 = vand.u32 4294901760, %v8350_v54  ;;  %v10978_v54 = vand.u32 4294901760, %v8463_v42 }
  0xa9   :  { %6994 = vmatprep.subr.bf16.mxu1 %v10948_v61  ;;  %1803 = vmatprep.mubr.f32.mxu1 %v10949_v31 }
  0xab   :  { %6972 = vmatpush3.bf16.msra.mxu0 %v6971_v40  ;;  %v10955_v40 = vand.u32 4294901760, %v8201_v5  ;;  %v10959_v5 = vand.u32 4294901760, %v8270_v51  ;;  %v10962_v51 = vand.u32 4294901760, %v8285_v60  ;;  %v133_v60 = vld [vmem:[%s10547_s2 + $0x290] sm:$0xff] }
  0xac   :  { %6996 = vmatpush3.bf16.msra.mxu1 %v10950_v11  ;;  %6974 = vmatprep.subr.bf16.mxu0 %v6973_v24  ;;  %v10956_v24 = vand.u32 4294901760, %v8203_v30  ;;  %v10960_v30 = vld [vmem:[#allocation11_spill] sm:$0xff] }
  0xad   :  { %6998 = vmatprep.subr.bf16.mxu1 %v8413_v53 }
  0xae   :  { %v7015_v31 = vpack.c.bf16 %v10956_v24, %v10955_v40  ;;  %v10961_v40 = vld [vmem:[#allocation26_spill] sm:$0xff]  ;;  %v10963_v24 = vand.u32 4294901760, %v8287_v1  ;;  %v134_v1 = vld [vmem:[%s10547_s2 + $0x298] sm:$0xff] }
  0xaf   :  { %6976 = vmatpush3.bf16.msra.mxu0 %v6975_v16  ;;  %v8766_v16 = vld [vmem:[%s10547_s2 + $0x280] sm:$0xff] }
  0xb0   :  { %7000 = vmatpush3.bf16.msra.mxu1 %v10951_v45  ;;  %6978 = vmatprep.subr.bf16.mxu0 %v6977_v62  ;;  %v10958_v62 = vand.u32 4294901760, %v8268_v55  ;;  %v2186_v55 = vand.u32 4294901760, %v8771_v8 }
  0xb1   :  { %7002 = vmatprep.subr.bf16.mxu1 %v10954_v49 }
  0xb2   :  { %v8816_v37 = vsub.f32 %v8771_v8, %v2186_v55  ;;  %v2192_v8 = vand.u32 4294901760, %v134_v1 }
  0xb3   :  { %6980 = vmatpush3.bf16.msra.mxu0 %v6979_v25  ;;  %v7017_v25 = vpack.c.bf16 %v10959_v5, %v10958_v62  ;;  %v7019_v62 = vpack.c.bf16 %v10963_v24, %v10962_v51  ;;  %v10964_v5 = vld [vmem:[#allocation14_spill] sm:$0xff]  ;;  %v8825_v51 = vsub.f32 %v8782_v44, %v2135_v29  ;;  %v2189_v24 = vand.u32 4294901760, %v133_v60 }
  0xb4   :  { %7004 = vmatpush3.bf16.msra.mxu1 %v10957_v52  ;;  %7014 = vmatprep.subr.bf16.mxu0 %v7013_v46  ;;  %v2183_v46 = vand.u32 4294901760, %v8766_v16 }
  0xb5   :  { %7006 = vmatprep.subr.bf16.mxu1 %v10960_v30 }
  0xb6   :  { %1681 = vmatmul.mubr.f32.vlgmr.msra.gmra.mrb[24].mxu0 %v10961_v40  ;;  %v8813_v48 = vsub.f32 %v8766_v16, %v2183_v46  ;;  %v8828_v16 = vsub.f32 %v8787_v26, %v2138_v39  ;;  %v10972_v26 = vand.u32 4294901760, %v8388_v47 }
  0xb7   :  { %7016 = vmatpush3.bf16.msra.mxu0 %v7015_v31  ;;  %1687 = vmatprep.mubr.f32.mxu0 %v8620_v63  ;;  %v10967_v31 = vld [vmem:[#allocation25_spill] sm:$0xff] }
  0xb8   :  { %7008 = vmatpush3.bf16.msra.mxu1 %v10964_v5  ;;  %7018 = vmatprep.subr.bf16.mxu0 %v7017_v25  ;;  %v7023_v25 = vpack.c.bf16 %v10969_v14, %v10968_v57  ;;  %v10973_v57 = vand.u32 4294901760, %v10939_v6  ;;  %v10980_v6 = vand.u32 4294901760, %v8493_v50  ;;  %v10690_v42 = vand.u32 4294901760, %v8813_v48 }
  0xb9   :  { %7010 = vmatprep.subr.bf16.mxu1 %v10967_v31  ;;  %v10975_v31 = vand.u32 4294901760, %v10943_v3  ;;  %v10983_v50 = vand.u32 4294901760, %v8516_v27  ;;  %v10986_v3 = vand.u32 4294901760, %v8560_v7  ;;  %v8893_v27 = vsub.f32 %v134_v1, %v2192_v8 }
  0xba   :  { %1690 = vmatmul.mubr.f32.gmra.mrb[26].mxu0 %v8646_v12  ;;  %v7027_v14 = vpack.c.bf16 %v10973_v57, %v10972_v26  ;;  %v2144_v26 = vand.u32 4294901760, %v118_v10  ;;  %v10687_v7 = vand.u32 4294901760, %v8828_v16  ;;  %v10991_v1 = vand.u32 4294901760, %v8630_v18 }
  0xbb   :  { %7020 = vmatpush3.bf16.msra.mxu0 %v7019_v62  ;;  %1696 = vmatprep.mubr.f32.mxu0 %v8653_v36  ;;  %v117_v62 = vld [vmem:[%s10547_s2 + $0x210] sm:$0xff]  ;;  %v10994_v18 = vand.u32 4294901760, %v8646_v12 }
  0xbc   :  { %7012 = vmatpush3.bf16.msra.mxu1 %v8672_v4  ;;  %7022 = vmatprep.subr.bf16.mxu0 %v7021_v28  ;;  %v10971_v28 = vand.u32 4294901760, %v10938_v2  ;;  %v10974_v4 = vand.u32 4294901760, %v10942_v43  ;;  %v10979_v2 = vand.u32 4294901760, %v8473_v58  ;;  %v10981_v43 = vand.u32 4294901760, %v8503_v38 }
  0xbd   :  { %7046 = vmatprep.subr.bf16.mxu1 %v8276_v15  ;;  %v7031_v15 = vpack.c.bf16 %v10977_v35, %v10976_v23  ;;  %v10689_v58 = vand.u32 4294901760, %v8816_v37  ;;  %v10984_v38 = vand.u32 4294901760, %v8538_v33  ;;  %v10985_v23 = vand.u32 4294901760, %v8545_v20  ;;  %v119_v33 = vld [vmem:[%s10547_s2 + $0x220] sm:$0xff] }
  0xbe   :  { %v7025_v44 = vpack.c.bf16 %v10971_v28, %v10970_v0  ;;  %v7029_v5 = vpack.c.bf16 %v10975_v31, %v10974_v4  ;;  %1699 = vmatmul.mubr.f32.gmra.mrb[28].mxu0 %v8679_v41  ;;  %v8858_v47 = vpack.c.bf16 %v10979_v2, %v10978_v54  ;;  %v8864_v0 = vpack.c.bf16 %v10981_v43, %v10980_v6  ;;  %v10992_v43 = vld [vmem:[#allocation15_spill] sm:$0xff] }
  0xbf   :  { %v10982_v4 = vand.u32 4294901760, %v10961_v40  ;;  %7024 = vmatpush3.bf16.msra.mxu0 %v7023_v25  ;;  %v8880_v35 = vpack.c.bf16 %v10984_v38, %v10983_v50  ;;  %v8886_v31 = vpack.c.bf16 %v10986_v3, %v10985_v23  ;;  %v2141_v28 = vand.u32 4294901760, %v117_v62  ;;  %1995 = vmatprep.mubr.f32.mxu0 %v10992_v43 }
  0xc0   :  { %v10987_v40 = vand.u32 4294901760, %v8620_v63  ;;  %v8891_v25 = vsub.f32 %v133_v60, %v2189_v24  ;;  %v10688_v20 = vand.u32 4294901760, %v8825_v51  ;;  %7026 = vmatprep.subr.bf16.mxu0 %v7025_v44  ;;  %v10989_v63 = vand.u32 4294901760, %v8597_v22 }
  0xc1   :  { %1807 = vmatmul.mubr.f32.vlgmr.msra.gmra.mrb[24].mxu1 %v10982_v4  ;;  %v10990_v60 = vand.u32 4294901760, %v8602_v19  ;;  %v2195_v2 = vand.u32 4294901760, %v135_v59  ;;  %v2198_v6 = vand.u32 4294901760, %v136_v21  ;;  %v8914_v4 = vpack.c.bf16 %v2186_v55, %v2183_v46  ;;  %v120_v19 = vld [vmem:[%s10547_s2 + $0x228] sm:$0xff]  ;;  %v137_v55 = vld [vmem:[%s10547_s2 + $0x2b0] sm:$0xff] }
  0xc2   :  { %7048 = vmatpush3.bf16.msra.mxu1 %v10940_v32  ;;  %1814 = vmatprep.mubr.f32.mxu1 %v10987_v40  ;;  %v10988_v32 = vand.u32 4294901760, %v8568_v13  ;;  %v8916_v44 = vpack.c.bf16 %v2138_v39, %v2135_v29  ;;  %v2392_v13 = vsub.f32 %v8813_v48, %v10690_v42  ;;  %v2399_v22 = vsub.f32 %v8816_v37, %v10689_v58  ;;  %v11014_v58 = vld [vmem:[#allocation25_spill] sm:$0xff] }
  0xc3   :  { %7050 = vmatprep.subr.bf16.mxu1 %v10941_v17  ;;  %v8911_v54 = vpack.c.bf16 %v10991_v1, %v10990_v60  ;;  %7028 = vmatpush3.bf16.msra.mxu0 %v7027_v14  ;;  %v8929_v17 = vpack.c.bf16 %v2192_v8, %v2189_v24  ;;  %v8931_v39 = vsub.f32 %v117_v62, %v2141_v28  ;;  %v2147_v46 = vand.u32 4294901760, %v119_v33  ;;  %v138_v8 = vld [vmem:[%s10547_s2 + $0x2b8] sm:$0xff] }
  0xc4   :  { %v8905_v57 = vpack.c.bf16 %v10989_v63, %v10988_v32  ;;  %10993 = vst [vmem:[#allocation10_spill] sm:$0xff] %v8916_v44  ;;  %v8933_v29 = vsub.f32 %v118_v10, %v2144_v26  ;;  %v10996_v50 = vand.u32 4294901760, %v8653_v36  ;;  %v2280_v12 = vsub.f32 %v8825_v51, %v10688_v20  ;;  %7030 = vmatprep.subr.bf16.mxu0 %v7029_v5  ;;  %v144_v20 = vld [vmem:[%s10547_s2 + $0x2e8] sm:$0xff] }
  0xc5   :  { %1818 = vmatmul.mubr.f32.gmra.mrb[26].mxu1 %v10994_v18  ;;  %10995 = vst [vmem:[#allocation16_spill] sm:$0xff] %v8929_v17  ;;  %v2287_v24 = vsub.f32 %v8828_v16, %v10687_v7  ;;  %v10684_v62 = vand.u32 4294901760, %v8891_v25  ;;  %v10683_v10 = vand.u32 4294901760, %v8893_v27  ;;  %v8953_v36 = vpack.c.bf16 %v2144_v26, %v2141_v28 }
  0xc6   :  { %7052 = vmatpush3.bf16.msra.mxu1 %v10945_v34  ;;  %1825 = vmatprep.mubr.f32.mxu1 %v10996_v50  ;;  %v8955_v34 = vsub.f32 %v135_v59, %v2195_v2  ;;  %v8957_v14 = vsub.f32 %v136_v21, %v2198_v6  ;;  %v2150_v38 = vand.u32 4294901760, %v120_v19  ;;  %v8959_v23 = vpack.c.bf16 %v2198_v6, %v2195_v2  ;;  %v122_v59 = vld [vmem:[%s10547_s2 + $0x238] sm:$0xff] }
  0xc7   :  { %7054 = vmatprep.subr.bf16.mxu1 %v10946_v56  ;;  %10997 = vst [vmem:[#allocation5_spill] sm:$0xff] %v8953_v36  ;;  %v2393_v3 = vand.u32 4294901760, %v2392_v13  ;;  %v2400_v40 = vand.u32 4294901760, %v2399_v22  ;;  %v2201_v32 = vand.u32 4294901760, %v137_v55  ;;  %v10999_v63 = vand.u32 4294901760, %v8679_v41  ;;  %7032 = vmatpush3.bf16.msra.mxu0 %v7031_v15  ;;  %v121_v56 = vld [vmem:[%s10547_s2 + $0x230] sm:$0xff] }
  0xc8   :  { %10998 = vst [vmem:[#allocation6_spill] sm:$0xff] %v8959_v23  ;;  %v8963_v60 = vsub.f32 %v119_v33, %v2147_v46  ;;  %v2204_v5 = vand.u32 4294901760, %v138_v8  ;;  %v10680_v21 = vand.u32 4294901760, %v8931_v39  ;;  %v10678_v28 = vand.u32 4294901760, %v8933_v29  ;;  %7034 = vmatprep.subr.bf16.mxu0 %v8858_v47 }
  0xc9   :  { %1829 = vmatmul.mubr.f32.gmra.mrb[28].mxu1 %v10999_v63  ;;  %v2281_v41 = vand.u32 4294901760, %v2280_v12  ;;  %v2288_v15 = vand.u32 4294901760, %v2287_v24  ;;  %v2406_v26 = vsub.f32 %v8891_v25, %v10684_v62  ;;  %v2413_v33 = vsub.f32 %v8893_v27, %v10683_v10 }
  0xca   :  { %7056 = vmatpush3.bf16.msra.mxu1 %v10947_v9  ;;  %2113 = vmatprep.mubr.f32.mxu1 %v10992_v43  ;;  %v8983_v1 = vpack.c.bf16 %v2150_v38, %v2147_v46  ;;  %v8985_v2 = vsub.f32 %v120_v19, %v2150_v38  ;;  %v139_v9 = vld [vmem:[%s10547_s2 + $0x2c0] sm:$0xff]  ;;  %v10677_v47 = vand.u32 4294901760, %v8955_v34  ;;  %v10679_v6 = vand.u32 4294901760, %v8957_v14 }
  0xcb   :  { %7058 = vmatprep.subr.bf16.mxu1 %v10948_v61  ;;  %v8992_v13 = vpack.c.bf16 %v2400_v40, %v2393_v3  ;;  %v8994_v22 = vsub.f32 %v137_v55, %v2201_v32  ;;  %v2153_v18 = vand.u32 4294901760, %v121_v56  ;;  %v2156_v61 = vand.u32 4294901760, %v122_v59  ;;  %7036 = vmatpush3.bf16.msra.mxu0 %v8864_v0  ;;  %v140_v55 = vld [vmem:[%s10547_s2 + $0x2c8] sm:$0xff]  ;;  %v123_v3 = vld [vmem:[%s10547_s2 + $0x240] sm:$0xff] }
  0xcc   :  { %v8997_v43 = vpack.c.bf16 %v2204_v5, %v2201_v32  ;;  %v8999_v19 = vsub.f32 %v138_v8, %v2204_v5  ;;  %v2294_v46 = vsub.f32 %v8931_v39, %v10680_v21  ;;  %v2301_v50 = vsub.f32 %v8933_v29, %v10678_v28  ;;  %v32_v0 = vld [vmem:[%s10545_s0 + $0x28] sm:$0xff]  ;;  %7038 = vmatprep.subr.bf16.mxu0 %v8880_v35 }
  0xcd   :  { %11000 = vst [vmem:[#allocation17_spill] sm:$0xff] %v8994_v22  ;;  %v9015_v12 = vpack.c.bf16 %v2288_v15, %v2281_v41  ;;  %v2407_v24 = vand.u32 4294901760, %v2406_v26  ;;  %v2414_v8 = vand.u32 4294901760, %v2413_v33  ;;  %v2207_v38 = vand.u32 4294901760, %v139_v9  ;;  %v124_v40 = vld [vmem:[%s10547_s2 + $0x248] sm:$0xff] }
  0xce   :  { %11001 = vst [vmem:[#allocation18_spill] sm:$0xff] %v8999_v19  ;;  %7060 = vmatpush3.bf16.msra.mxu1 %v10950_v11  ;;  %v2420_v11 = vsub.f32 %v8955_v34, %v10677_v47  ;;  %v2427_v35 = vsub.f32 %v8957_v14, %v10679_v6  ;;  %v10682_v32 = vand.u32 4294901760, %v8963_v60  ;;  %v10681_v63 = vand.u32 4294901760, %v8985_v2  ;;  %v141_v6 = vld [vmem:[%s10547_s2 + $0x2d0] sm:$0xff] }
  0xcf   :  { %7062 = vmatprep.subr.bf16.mxu1 %v8413_v53  ;;  %v9032_v5 = vpack.c.bf16 %v2156_v61, %v2153_v18  ;;  %v9034_v41 = vsub.f32 %v121_v56, %v2153_v18  ;;  %v2210_v15 = vand.u32 4294901760, %v140_v55  ;;  %v9036_v26 = vand.u32 4294901760, %v32_v0  ;;  %7040 = vmatpush3.bf16.msra.mxu0 %v8886_v31 }
  0xd0   :  { %v2295_v53 = vand.u32 4294901760, %v2294_v46  ;;  %v2302_v33 = vand.u32 4294901760, %v2301_v50  ;;  %v2159_v47 = vand.u32 4294901760, %v123_v3  ;;  %v2162_v28 = vand.u32 4294901760, %v124_v40  ;;  %7042 = vmatprep.subr.bf16.mxu0 %v8905_v57  ;;  %v142_v57 = vld [vmem:[%s10547_s2 + $0x2d8] sm:$0xff] }
  0xd1   :  { %11002 = vst [vmem:[#allocation19_spill] sm:$0xff] %v9032_v5  ;;  %11003 = vst [vmem:[#allocation7_spill] sm:$0xff] %v9034_v41  ;;  %v9044_v21 = vpack.c.bf16 %v2414_v8, %v2407_v24  ;;  %v9046_v56 = vsub.f32 %v122_v59, %v2156_v61  ;;  %v9048_v18 = vsub.f32 %v139_v9, %v2207_v38  ;;  %v2421_v31 = vand.u32 4294901760, %v2420_v11 }
  0xd2   :  { %11004 = vst [vmem:[#allocation8_spill] sm:$0xff] %v9036_v26  ;;  %7064 = vmatpush3.bf16.msra.mxu1 %v10951_v45  ;;  %v2428_v46 = vand.u32 4294901760, %v2427_v35  ;;  %v2308_v50 = vsub.f32 %v8963_v60, %v10682_v32  ;;  %v2315_v45 = vsub.f32 %v8985_v2, %v10681_v63  ;;  %v2213_v59 = vand.u32 4294901760, %v141_v6 }
  0xd3   :  { %11005 = vst [vmem:[#allocation13_spill] sm:$0xff] %v9046_v56  ;;  %11006 = vst [vmem:[#allocation9_spill] sm:$0xff] %v9048_v18  ;;  %7066 = vmatprep.subr.bf16.mxu1 %v10954_v49  ;;  %v10686_v9 = vand.u32 4294901760, %v8994_v22  ;;  %v10685_v61 = vand.u32 4294901760, %v8999_v19  ;;  %v9063_v49 = vsub.f32 %v32_v0, %v9036_v26  ;;  %7044 = vmatpush3.bf16.msra.mxu0 %v8911_v54  ;;  %v2216_v32 = vand.u32 4294901760, %v142_v57  ;;  %v125_v0 = vld [vmem:[%s10547_s2 + $0x250] sm:$0xff] }
  0xd4   :  { %v9066_v24 = vpack.c.bf16 %v2302_v33, %v2295_v53  ;;  %v9068_v8 = vpack.c.bf16 %v2210_v15, %v2207_v38  ;;  %v9070_v11 = vsub.f32 %v140_v55, %v2210_v15  ;;  %v9072_v35 = vpack.c.bf16 %v2162_v28, %v2159_v47  ;;  %7078 = vmatprep.subr.bf16.mxu0 %v8914_v4  ;;  %v126_v54 = vld [vmem:[%s10547_s2 + $0x258] sm:$0xff]  ;;  %v11010_v53 = vld [vmem:[#allocation23_spill] sm:$0xff] }
  0xd5   :  { %11007 = vst [vmem:[#allocation12_spill] sm:$0xff] %v9063_v49  ;;  %v9076_v63 = vsub.f32 %v123_v3, %v2159_v47  ;;  %v10691_v55 = vand.u32 4294901760, %v9034_v41  ;;  %v10694_v38 = vand.u32 4294901760, %v9046_v56  ;;  %v9089_v15 = vsub.f32 %v124_v40, %v2162_v28  ;;  %v11011_v28 = vld [vmem:[#allocation24_spill] sm:$0xff] }
  0xd6   :  { %11008 = vst [vmem:[#allocation20_spill] sm:$0xff] %v9072_v35  ;;  %7068 = vmatpush3.bf16.msra.mxu1 %v10957_v52  ;;  %v9087_v52 = vpack.c.bf16 %v2428_v46, %v2421_v31  ;;  %v2309_v47 = vand.u32 4294901760, %v2308_v50  ;;  %v2316_v3 = vand.u32 4294901760, %v2315_v45  ;;  %1997 = vmatmul.mubr.f32.vlgmr.msra.gmra.mrb[30].mxu0 %v11010_v53  ;;  %v9092_v33 = vsub.f32 %v141_v6, %v2213_v59  ;;  %v143_v6 = vld [vmem:[%s10547_s2 + $0x2e0] sm:$0xff]  ;;  %v11015_v46 = vld [vmem:[#allocation27_spill] sm:$0xff] }
  0xd7   :  { %7070 = vmatprep.subr.bf16.mxu1 %v10960_v30  ;;  %11009 = vst [vmem:[#allocation21_spill] sm:$0xff] %v9089_v15  ;;  %v2434_v10 = vsub.f32 %v8994_v22, %v10686_v9  ;;  %v2441_v62 = vsub.f32 %v8999_v19, %v10685_v61  ;;  %7080 = vmatpush3.bf16.msra.mxu0 %v8916_v44  ;;  %v2165_v40 = vand.u32 4294901760, %v125_v0  ;;  %v2168_v31 = vand.u32 4294901760, %v126_v54  ;;  %v11012_v45 = vld [vmem:[#allocation14_spill] sm:$0xff] }
  0xd8   :  { %2002 = vmatprep.mubr.f32.mxu0 %v11011_v28  ;;  %7082 = vmatprep.subr.bf16.mxu0 %v8929_v17  ;;  %v9110_v61 = vpack.c.bf16 %v2216_v32, %v2213_v59  ;;  %v2322_v9 = vsub.f32 %v9034_v41, %v10691_v55  ;;  %v2329_v7 = vsub.f32 %v9046_v56, %v10694_v38  ;;  %v2219_v17 = vand.u32 4294901760, %v143_v6  ;;  %v127_v38 = vld [vmem:[%s10547_s2 + $0x260] sm:$0xff] }
  0xd9   :  { %v9122_v42 = vpack.c.bf16 %v2316_v3, %v2309_v47  ;;  %v2435_v55 = vand.u32 4294901760, %v2434_v10  ;;  %v2442_v30 = vand.u32 4294901760, %v2441_v62  ;;  %v11017_v47 = vld [vmem:[#allocation28_spill] sm:$0xff]  ;;  %v9140_v3 = vpack.c.bf16 %v2168_v31, %v2165_v40  ;;  %v11021_v56 = vld [vmem:[#allocation30_spill] sm:$0xff] }
  0xda   :  { %7072 = vmatpush3.bf16.msra.mxu1 %v11012_v45  ;;  %11013 = vst [vmem:[#allocation22_spill] sm:$0xff] %v9110_v61  ;;  %v9124_v45 = vsub.f32 %v142_v57, %v2216_v32  ;;  %2004 = vmatmul.mubr.f32.gmra.mrb[32].mxu0 %v11015_v46  ;;  %v11016_v32 = vand.u32 4294901760, %v9063_v49  ;;  %v2222_v62 = vand.u32 4294901760, %v144_v20  ;;  %v11019_v10 = vand.u32 4294901760, %v9048_v18 }
  0xdb   :  { %7074 = vmatprep.subr.bf16.mxu1 %v11014_v58  ;;  %v128_v58 = vld [vmem:[%s10547_s2 + $0x268] sm:$0xff]  ;;  %7084 = vmatpush3.bf16.msra.mxu0 %v8953_v36  ;;  %11018 = vst [vmem:[#allocation11_spill] sm:$0xff] %v9140_v3  ;;  %v11020_v59 = vand.u32 4294901760, %v9070_v11  ;;  %v9152_v36 = vsub.f32 %v126_v54, %v2168_v31  ;;  %v2330_v41 = vand.u32 4294901760, %v2329_v7  ;;  %v2171_v19 = vand.u32 4294901760, %v127_v38  ;;  %v146_v7 = vld [vmem:[%s10547_s2 + $0x2f8] sm:$0xff] }
  0xdc   :  { %v2233_v57 = vsub.f32 %v9063_v49, %v11016_v32  ;;  %2009 = vmatprep.mubr.f32.mxu0 %v11017_v47  ;;  %v2448_v50 = vsub.f32 %v9048_v18, %v11019_v10  ;;  %7086 = vmatprep.subr.bf16.mxu0 %v8959_v23  ;;  %v9150_v32 = vsub.f32 %v125_v0, %v2165_v40  ;;  %v2323_v49 = vand.u32 4294901760, %v2322_v9  ;;  %v145_v0 = vld [vmem:[%s10547_s2 + $0x2f0] sm:$0xff]  ;;  %v11024_v9 = vld [vmem:[#allocation29_spill] sm:$0xff] }
  0xdd   :  { %v2455_v44 = vsub.f32 %v9070_v11, %v11020_v59  ;;  %v2174_v22 = vand.u32 4294901760, %v128_v58  ;;  %v11022_v10 = vand.u32 4294901760, %v9076_v63  ;;  %v11023_v59 = vand.u32 4294901760, %v9089_v15 }
  0xde   :  { %7076 = vmatpush3.bf16.msra.mxu1 %v11021_v56  ;;  %2011 = vmatmul.mubr.f32.gmra.mrb[34].mxu0 %v11024_v9  ;;  %v10715_v54 = vand.u32 4294901760, %v9092_v33  ;;  %v2234_v31 = vand.u32 4294901760, %v2233_v57  ;;  %v2449_v23 = vand.u32 4294901760, %v2448_v50  ;;  %v9185_v57 = vsub.f32 %v144_v20, %v2222_v62  ;;  %v9199_v20 = vld [vmem:[%s10547_s2 + $0x270] sm:$0xff] }
  0xdf   :  { %7110 = vmatprep.subr.bf16.mxu1 %v8992_v13  ;;  %v2336_v18 = vsub.f32 %v9076_v63, %v11022_v10  ;;  %v2343_v56 = vsub.f32 %v9089_v15, %v11023_v59  ;;  %v9168_v13 = vpack.c.bf16 %v2442_v30, %v2435_v55  ;;  %7088 = vmatpush3.bf16.msra.mxu0 %v8983_v1  ;;  %v2456_v15 = vand.u32 4294901760, %v2455_v44  ;;  %v31_v55 = vld [vmem:[%s10545_s0 + $0x20] sm:$0xff] }
  0xe0   :  { %v9174_v10 = vpack.c.bf16 %v2222_v62, %v2219_v17  ;;  %v9176_v59 = vsub.f32 %v143_v6, %v2219_v17  ;;  %v9183_v30 = vpack.c.bf16 %v2330_v41, %v2323_v49  ;;  %v2228_v40 = vand.u32 4294901760, %v146_v7  ;;  %v40_v17 = vld [vmem:[%s10545_s0 + $0x68] sm:$0xff]  ;;  %7090 = vmatprep.subr.bf16.mxu0 %v8997_v43  ;;  %v9204_v41 = vld [vmem:[%s10547_s2 + $0x278] sm:$0xff]  ;;  %2235 = vmatprep.mubr.f32.mxu0 %v2234_v31 }
  0xe1   :  { %2115 = vmatmul.mubr.f32.vlgmr.msra.gmra.mrb[30].mxu1 %v11010_v53  ;;  %v2225_v53 = vand.u32 4294901760, %v145_v0  ;;  %v9192_v44 = vpack.c.bf16 %v2174_v22, %v2171_v19  ;;  %v9194_v6 = vsub.f32 %v127_v38, %v2171_v19  ;;  %v9206_v49 = vsub.f32 %v128_v58, %v2174_v22 }
  0xe2   :  { %11025 = vst [vmem:[#allocation26_spill] sm:$0xff] %v9174_v10  ;;  %7112 = vmatpush3.bf16.msra.mxu1 %v9015_v12  ;;  %2120 = vmatprep.mubr.f32.mxu1 %v11011_v28  ;;  %v2337_v12 = vand.u32 4294901760, %v2336_v18  ;;  %v2344_v28 = vand.u32 4294901760, %v2343_v56  ;;  %v11027_v19 = vand.u32 4294901760, %v9124_v45  ;;  %v9214_v38 = vand.u32 4294901760, %v31_v55  ;;  %v39_v56 = vld [vmem:[%s10545_s0 + $0x60] sm:$0xff] }
  0xe3   :  { %7114 = vmatprep.subr.bf16.mxu1 %v9044_v21  ;;  %11026 = vst [vmem:[#allocation15_spill] sm:$0xff] %v9192_v44  ;;  %v2462_v21 = vsub.f32 %v9092_v33, %v10715_v54  ;;  %7092 = vmatpush3.bf16.msra.mxu0 %v9032_v5  ;;  %v7125_v50 = vpack.c.bf16 %v2456_v15, %v2449_v23  ;;  %v9220_v58 = vand.u32 4294901760, %v40_v17  ;;  %v2177_v23 = vand.u32 4294901760, %v9199_v20 }
  0xe4   :  { %v2469_v18 = vsub.f32 %v9124_v45, %v11027_v19  ;;  %11028 = vst [vmem:[#allocation23_spill] sm:$0xff] %v9214_v38  ;;  %v9227_v31 = vpack.c.bf16 %v2228_v40, %v2225_v53  ;;  %v2180_v15 = vand.u32 4294901760, %v9204_v41  ;;  %v48_v19 = vld [vmem:[%s10545_s0 + $0xa8] sm:$0x7f]  ;;  %7094 = vmatprep.subr.bf16.mxu0 %v9068_v8  ;;  %v7127_v54 = vpack.c.bf16 %v2344_v28, %v2337_v12 }
  0xe5   :  { %2122 = vmatmul.mubr.f32.gmra.mrb[32].mxu1 %v11015_v46  ;;  %11029 = vst [vmem:[#allocation24_spill] sm:$0xff] %v9220_v58  ;;  %v9229_v46 = vsub.f32 %v145_v0, %v2225_v53  ;;  %v10723_v0 = vand.u32 4294901760, %v9185_v57  ;;  %v2463_v53 = vand.u32 4294901760, %v2462_v21  ;;  %v9243_v62 = vsub.f32 %v31_v55, %v9214_v38  ;;  %v47_v55 = vld [vmem:[%s10545_s0 + $0xa0] sm:$0x7f] }
  0xe6   :  { %7116 = vmatpush3.bf16.msra.mxu1 %v9066_v24  ;;  %2127 = vmatprep.mubr.f32.mxu1 %v11017_v47  ;;  %11030 = vst [vmem:[#allocation14_spill] sm:$0xff] %v9227_v31  ;;  %v9238_v24 = vsub.f32 %v146_v7, %v2228_v40  ;;  %v10720_v47 = vand.u32 4294901760, %v9176_v59  ;;  %v2470_v22 = vand.u32 4294901760, %v2469_v18  ;;  %v9245_v5 = vand.u32 4294901760, %v39_v56 }
  0xe7   :  { %7118 = vmatprep.subr.bf16.mxu1 %v9087_v52  ;;  %11031 = vst [vmem:[#allocation25_spill] sm:$0xff] %v9243_v62  ;;  %7096 = vmatpush3.bf16.msra.mxu0 %v9072_v35  ;;  %v11033_v52 = vand.u32 4294901760, %v9150_v32  ;;  %v11034_v40 = vand.u32 4294901760, %v9152_v36  ;;  %v9256_v28 = vsub.f32 %v40_v17, %v9220_v58  ;;  %v9258_v21 = vand.u32 4294901760, %v48_v19 }
  0xe8   :  { %11032 = vst [vmem:[#allocation27_spill] sm:$0xff] %v9245_v5  ;;  %7098 = vmatprep.subr.bf16.mxu0 %v9110_v61  ;;  %v9269_v18 = vsub.f32 %v9204_v41, %v2180_v15  ;;  %v7129_v41 = vpack.c.bf16 %v2470_v22, %v2463_v53  ;;  %v9285_v17 = vsub.f32 %v39_v56, %v9245_v5  ;;  %v11037_v22 = vand.u32 4294901760, %v9194_v6 }
  0xe9   :  { %2129 = vmatmul.mubr.f32.gmra.mrb[34].mxu1 %v11024_v9  ;;  %v2350_v7 = vsub.f32 %v9150_v32, %v11033_v52  ;;  %v2357_v12 = vsub.f32 %v9152_v36, %v11034_v40  ;;  %11035 = vst [vmem:[#allocation28_spill] sm:$0xff] %v9258_v21  ;;  %v9266_v9 = vsub.f32 %v9199_v20, %v2177_v23  ;;  %v11038_v53 = vand.u32 4294901760, %v9206_v49 }
  0xea   :  { %7120 = vmatpush3.bf16.msra.mxu1 %v9122_v42  ;;  %v2476_v40 = vsub.f32 %v9176_v59, %v10720_v47  ;;  %v2483_v42 = vsub.f32 %v9185_v57, %v10723_v0  ;;  %2501 = vmatprep.mubr.f32.mxu1 %v9036_v26  ;;  %v9292_v20 = vsub.f32 %v48_v19, %v9258_v21  ;;  %v11039_v61 = vand.u32 4294901760, %v9229_v46 }
  0xeb   :  { %7122 = vmatprep.subr.bf16.mxu1 %v9168_v13  ;;  %v9287_v13 = vand.u32 4294901760, %v47_v55  ;;  %7100 = vmatpush3.bf16.msra.mxu0 %v9140_v3  ;;  %v2351_v47 = vand.u32 4294901760, %v2350_v7  ;;  %v2358_v35 = vand.u32 4294901760, %v2357_v12  ;;  %v2364_v56 = vsub.f32 %v9194_v6, %v11037_v22 }
  0xec   :  { %7102 = vmatprep.subr.bf16.mxu0 %v9174_v10  ;;  %v2371_v52 = vsub.f32 %v9206_v49, %v11038_v53  ;;  %v10737_v12 = vand.u32 4294901760, %v9269_v18  ;;  %v2477_v0 = vand.u32 4294901760, %v2476_v40  ;;  %v2484_v19 = vand.u32 4294901760, %v2483_v42 }
  0xed   :  { %11036 = vst [vmem:[#allocation30_spill] sm:$0xff] %v9287_v13  ;;  %v11040_v26 = vand.u32 4294901760, %v9238_v24  ;;  %v9310_v22 = vpack.c.bf16 %v2180_v15, %v2177_v23  ;;  %v11042_v3 = vand.u32 4294901760, %v9243_v62  ;;  %v7131_v40 = vpack.c.bf16 %v2358_v35, %v2351_v47 }
  0xee   :  { %7124 = vmatpush3.bf16.msra.mxu1 %v9183_v30  ;;  %v2490_v30 = vsub.f32 %v9229_v46, %v11039_v61  ;;  %v7141_v61 = vpack.c.bf16 %v8816_v37, %v8813_v48  ;;  %v11043_v42 = vand.u32 4294901760, %v9256_v28  ;;  %v2372_v15 = vand.u32 4294901760, %v2371_v52 }
  0xef   :  { %7126 = vmatprep.subr.bf16.mxu1 %v7125_v50  ;;  %v2497_v10 = vsub.f32 %v9238_v24, %v11040_v26  ;;  %11041 = vst [vmem:[#allocation29_spill] sm:$0xff] %v9310_v22  ;;  %v2239_v53 = vsub.f32 %v9243_v62, %v11042_v3  ;;  %v9317_v50 = vsub.f32 %v47_v55, %v9287_v13  ;;  %v2365_v3 = vand.u32 4294901760, %v2364_v56 }
  0xf0   :  { %7104 = vmatpush3.bf16.msra.mxu0 %v9192_v44  ;;  %v2248_v26 = vsub.f32 %v9256_v28, %v11043_v42  ;;  %v11044_v55 = vand.u32 4294901760, %v9266_v9  ;;  %v2385_v35 = vsub.f32 %v9269_v18, %v10737_v12  ;;  %v7133_v47 = vpack.c.bf16 %v2484_v19, %v2477_v0  ;;  %v147_v12 = vld [vmem:[%s10547_s2 + $0x300] sm:$0xff] }
  0xf1   :  { %7106 = vmatprep.subr.bf16.mxu0 %v9227_v31  ;;  %v2491_v44 = vand.u32 4294901760, %v2490_v30  ;;  %v2498_v62 = vand.u32 4294901760, %v2497_v10  ;;  %v2240_v42 = vand.u32 4294901760, %v2239_v53  ;;  %v11045_v23 = vand.u32 4294901760, %v9285_v17 }
  0xf2   :  { %7128 = vmatpush3.bf16.msra.mxu1 %v7127_v54  ;;  %v2378_v7 = vsub.f32 %v9266_v9, %v11044_v55  ;;  %v10736_v56 = vand.u32 4294901760, %v9317_v50  ;;  %v7143_v52 = vpack.c.bf16 %v8828_v16, %v8825_v51  ;;  %v2249_v55 = vand.u32 4294901760, %v2248_v26 }
  0xf3   :  { %7130 = vmatprep.subr.bf16.mxu1 %v7129_v41  ;;  %v2254_v54 = vsub.f32 %v9285_v17, %v11045_v23  ;;  %v11046_v31 = vand.u32 4294901760, %v9292_v20  ;;  %v7135_v10 = vpack.c.bf16 %v2372_v15, %v2365_v3  ;;  %v7145_v0 = vpack.c.bf16 %v8893_v27, %v8891_v25  ;;  %v11047_v3 = vld [vmem:[#allocation17_spill] sm:$0xff]  ;;  %v11048_v15 = vld [vmem:[#allocation18_spill] sm:$0xff] }
  0xf4   :  { %7108 = vmatpush3.bf16.msra.mxu0 %v9310_v22  ;;  %v2379_v19 = vand.u32 4294901760, %v2378_v7  ;;  %v2386_v30 = vand.u32 4294901760, %v2385_v35  ;;  %v7137_v53 = vpack.c.bf16 %v2498_v62, %v2491_v44  ;;  %v2269_v26 = vsub.f32 %v9317_v50, %v10736_v56 }
  0xf5   :  { %v2263_v41 = vsub.f32 %v9292_v20, %v11046_v31  ;;  %7142 = vmatprep.subr.bf16.mxu0 %v7141_v61  ;;  %v2255_v23 = vand.u32 4294901760, %v2254_v54  ;;  %v7147_v31 = vpack.c.bf16 %v8933_v29, %v8931_v39  ;;  %v7149_v7 = vpack.c.bf16 %v8957_v14, %v8955_v34 }
  0xf6   :  { %7132 = vmatpush3.bf16.msra.mxu1 %v7131_v40  ;;  %v7139_v61 = vpack.c.bf16 %v2386_v30, %v2379_v19  ;;  %v2270_v44 = vand.u32 4294901760, %v2269_v26  ;;  %v7151_v62 = vpack.c.bf16 %v8985_v2, %v8963_v60  ;;  %v7153_v35 = vpack.c.bf16 %v11048_v15, %v11047_v3  ;;  %v11055_v19 = vld [vmem:[#allocation21_spill] sm:$0xff]  ;;  %v11057_v26 = vld [vmem:[#allocation6_spill] sm:$0xff] }
  0xf7   :  { %7134 = vmatprep.subr.bf16.mxu1 %v7133_v47  ;;  %2241 = vmatmul.mubr.f32.vlgmr.msra.gmra.mrb[36].mxu0 %v2240_v42  ;;  %v2264_v40 = vand.u32 4294901760, %v2263_v41  ;;  %v11049_v47 = vld [vmem:[#allocation7_spill] sm:$0xff]  ;;  %v11050_v42 = vld [vmem:[#allocation13_spill] sm:$0xff]  ;;  %v7159_v30 = vpack.c.bf16 %v11055_v19, %v9076_v63 }
  0xf8   :  { %7144 = vmatpush3.bf16.msra.mxu0 %v7143_v52  ;;  %2250 = vmatprep.mubr.f32.mxu0 %v2249_v55  ;;  %v7155_v54 = vpack.c.bf16 %v11050_v42, %v11049_v47  ;;  %v11051_v52 = vld [vmem:[#allocation10_spill] sm:$0xff]  ;;  %v11052_v55 = vld [vmem:[#allocation16_spill] sm:$0xff]  ;;  %v11053_v41 = vld [vmem:[#allocation9_spill] sm:$0xff] }
  0xf9   :  { %7146 = vmatprep.subr.bf16.mxu0 %v7145_v0  ;;  %v11054_v0 = vld [vmem:[#allocation12_spill] sm:$0xff] }
  0xfa   :  { %7136 = vmatpush3.bf16.msra.mxu1 %v7135_v10  ;;  %v7157_v10 = vpack.c.bf16 %v9070_v11, %v11053_v41 }
  0xfb   :  { %7138 = vmatprep.subr.bf16.mxu1 %v7137_v53  ;;  %2256 = vmatmul.mubr.f32.gmra.mrb[38].mxu0 %v2255_v23  ;;  %v11056_v53 = vld [vmem:[#allocation5_spill] sm:$0xff]  ;;  %v7161_v23 = vpack.c.bf16 %v9124_v45, %v9092_v33 }
  0xfc   :  { %7148 = vmatpush3.bf16.msra.mxu0 %v7147_v31  ;;  %2265 = vmatprep.mubr.f32.mxu0 %v2264_v40  ;;  %v7163_v31 = vpack.c.bf16 %v9152_v36, %v9150_v32  ;;  %v7165_v40 = vpack.c.bf16 %v9185_v57, %v9176_v59 }
  0xfd   :  { %7150 = vmatprep.subr.bf16.mxu0 %v7149_v7  ;;  %v11058_v7 = vand.u32 4294901760, %v11054_v0 }
  0xfe   :  { %7140 = vmatpush3.bf16.msra.mxu1 %v7139_v61 }
  0xff   :  { %7174 = vmatprep.subr.bf16.mxu1 %v8914_v4  ;;  %2271 = vmatmul.mubr.f32.gmra.mrb[40].mxu0 %v2270_v44 }
 0x100   :  { %7152 = vmatpush3.bf16.msra.mxu0 %v7151_v62  ;;  %2652 = vmatprep.mubr.f32.mxu0 %v11054_v0  ;;  %v7167_v62 = vpack.c.bf16 %v9206_v49, %v9194_v6  ;;  %v9395_v0 = vld [vmem:[%s10548_s3] ss:$0 sm:$0xff] }
 0x101   :  { %2503 = vmatmul.mubr.f32.vlgmr.msra.gmra.mrb[36].mxu1 %v9214_v38  ;;  %7154 = vmatprep.subr.bf16.mxu0 %v7153_v35  ;;  %v11069_v38 = vand.u32 4294901760, %v8933_v29  ;;  %v11075_v29 = vand.u32 4294901760, %v11048_v15  ;;  %v3109_v15 = vand.u32 4294901760, %v147_v12 }
 0x102   :  { %7176 = vmatpush3.bf16.msra.mxu1 %v11051_v52  ;;  %2508 = vmatprep.mubr.f32.mxu1 %v9220_v58  ;;  %v11068_v58 = vand.u32 4294901760, %v8931_v39  ;;  %v11074_v39 = vand.u32 4294901760, %v11047_v3 }
 0x103   :  { %7178 = vmatprep.subr.bf16.mxu1 %v11052_v55 }
 0x104   :  { %7156 = vmatpush3.bf16.msra.mxu0 %v7155_v54  ;;  %v11059_v54 = vld [vmem:[#allocation19_spill] sm:$0xff] }
 0x105   :  { %2510 = vmatmul.mubr.f32.gmra.mrb[38].mxu1 %v9245_v5  ;;  %7158 = vmatprep.subr.bf16.mxu0 %v7157_v10  ;;  %v7169_v10 = vpack.c.bf16 %v9238_v24, %v9229_v46 }
 0x106   :  { %7180 = vmatpush3.bf16.msra.mxu1 %v11056_v53  ;;  %2515 = vmatprep.mubr.f32.mxu1 %v9258_v21 }
 0x107   :  { %7182 = vmatprep.subr.bf16.mxu1 %v11057_v26 }
 0x108   :  { %7160 = vmatpush3.bf16.msra.mxu0 %v7159_v30  ;;  %v163_v30 = vld [vmem:[%s10547_s2 + $0x380] sm:$0xff] }
 0x109   :  { %2517 = vmatmul.mubr.f32.gmra.mrb[40].mxu1 %v9287_v13  ;;  %7162 = vmatprep.subr.bf16.mxu0 %v7161_v23  ;;  %v5381_v61 = vpop.f32.mrb[0].mxu0  ;;  %v7171_v23 = vpack.c.bf16 %v9269_v18, %v9266_v9  ;;  %v3157_v56 = vand.u32 4294901760, %v163_v30 }
 0x10a   :  { %7184 = vmatpush3.bf16.msra.mxu1 %v8983_v1  ;;  %2777 = vmatprep.mubr.f32.mxu1 %v11058_v7  ;;  %v5382_v44 = vpop.f32.mrb[1].mxu0 }
 0x10b   :  { %7186 = vmatprep.subr.bf16.mxu1 %v8997_v43  ;;  %v5383_v35 = vadd.f32 %v5382_v44, %v5381_v61  ;;  %v11062_v61 = vand.u32 4294901760, %v8816_v37  ;;  %v11063_v44 = vld [vmem:[#allocation22_spill] sm:$0xff] }
 0x10c   :  { %7164 = vmatpush3.bf16.msra.mxu0 %v7163_v31  ;;  %v11060_v31 = vld [vmem:[#allocation20_spill] sm:$0xff] }
 0x10d   :  { %7166 = vmatprep.subr.bf16.mxu0 %v7165_v40  ;;  %v11061_v40 = vand.u32 4294901760, %v8813_v48  ;;  %v295_v13 = vadd.f32 %v5383_v35, %v9395_v0  ;;  %v11065_v48 = vand.u32 4294901760, %v8828_v16  ;;  %v148_v35 = vld [vmem:[%s10547_s2 + $0x308] sm:$0xff]  ;;  %v11071_v16 = vand.u32 4294901760, %v8957_v14 }
 0x10e   :  { %7188 = vmatpush3.bf16.msra.mxu1 %v11059_v54 }
 0x10f   :  { %7190 = vmatprep.subr.bf16.mxu1 %v9068_v8  ;;  %v7205_v7 = vpack.c.bf16 %v11062_v61, %v11061_v40  ;;  %v11066_v40 = vand.u32 4294901760, %v8891_v25  ;;  %v11067_v61 = vand.u32 4294901760, %v8893_v27  ;;  %v11072_v25 = vand.u32 4294901760, %v8963_v60 }
 0x110   :  { %7168 = vmatpush3.bf16.msra.mxu0 %v7167_v62  ;;  %v164_v62 = vld [vmem:[%s10547_s2 + $0x388] sm:$0xff]  ;;  %v11073_v27 = vand.u32 4294901760, %v8985_v2  ;;  %v11079_v60 = vand.u32 4294901760, %v11053_v41  ;;  %v11080_v2 = vand.u32 4294901760, %v9070_v11  ;;  %v11083_v41 = vand.u32 4294901760, %v11055_v19 }
 0x111   :  { %7170 = vmatprep.subr.bf16.mxu0 %v7169_v10  ;;  %v11064_v10 = vand.u32 4294901760, %v8825_v51  ;;  %v7209_v5 = vpack.c.bf16 %v11067_v61, %v11066_v40  ;;  %v11070_v51 = vand.u32 4294901760, %v8955_v34  ;;  %v11078_v40 = vld [vmem:[#allocation11_spill] sm:$0xff]  ;;  %v3160_v3 = vand.u32 4294901760, %v164_v62 }
 0x112   :  { %7192 = vmatpush3.bf16.msra.mxu1 %v11060_v31  ;;  %v5422_v21 = vpop.f32.mrb[0].mxu1  ;;  %v9454_v61 = vpack.c.bf16 %v11080_v2, %v11079_v60  ;;  %v11084_v11 = vand.u32 4294901760, %v9092_v33  ;;  %v11090_v33 = vand.u32 4294901760, %v9185_v57  ;;  %v150_v57 = vld [vmem:[%s10547_s2 + $0x318] sm:$0xff] }
 0x113   :  { %7194 = vmatprep.subr.bf16.mxu1 %v11063_v44  ;;  %v7207_v37 = vpack.c.bf16 %v11065_v48, %v11064_v10  ;;  %v7211_v44 = vpack.c.bf16 %v11069_v38, %v11068_v58  ;;  %v5423_v31 = vpop.f32.mrb[1].mxu1  ;;  %v7213_v10 = vpack.c.bf16 %v11071_v16, %v11070_v51  ;;  %v9435_v48 = vpack.c.bf16 %v11073_v27, %v11072_v25 }
 0x114   :  { %7172 = vmatpush3.bf16.msra.mxu0 %v7171_v23  ;;  %v9441_v38 = vpack.c.bf16 %v11075_v29, %v11074_v39  ;;  %v11076_v58 = vand.u32 4294901760, %v11049_v47  ;;  %v11077_v23 = vand.u32 4294901760, %v11050_v42  ;;  %v5424_v14 = vadd.f32 %v5423_v31, %v5422_v21  ;;  %v165_v47 = vld [vmem:[%s10547_s2 + $0x390] sm:$0xff]  ;;  %v166_v42 = vld [vmem:[%s10547_s2 + $0x398] sm:$0xff]  ;;  %v11081_v21 = vld [vmem:[#allocation26_spill] sm:$0xff] }
 0x115   :  { %7206 = vmatprep.subr.bf16.mxu0 %v7205_v7  ;;  %v11082_v31 = vand.u32 4294901760, %v9076_v63  ;;  %v11085_v51 = vand.u32 4294901760, %v9124_v45  ;;  %v11086_v25 = vand.u32 4294901760, %v9150_v32  ;;  %v11087_v27 = vand.u32 4294901760, %v9152_v36  ;;  %v11088_v63 = vld [vmem:[#allocation25_spill] sm:$0xff] }
 0x116   :  { %v9447_v34 = vpack.c.bf16 %v11077_v23, %v11076_v58  ;;  %7196 = vmatpush3.bf16.msra.mxu1 %v11078_v40  ;;  %v3112_v29 = vand.u32 4294901760, %v148_v35  ;;  %v9481_v58 = vadd.f32 %v5424_v14, %v295_v13  ;;  %v5425_v19 = vpop.f32.mrb[2].mxu1  ;;  %v11089_v23 = vand.u32 4294901760, %v9176_v59  ;;  %v149_v59 = vld [vmem:[%s10547_s2 + $0x310] sm:$0xff] }
 0x117   :  { %7198 = vmatprep.subr.bf16.mxu1 %v11081_v21  ;;  %v9467_v7 = vpack.c.bf16 %v11083_v41, %v11082_v31  ;;  %v9473_v16 = vpack.c.bf16 %v11085_v51, %v11084_v11  ;;  %v9479_v39 = vpack.c.bf16 %v11087_v27, %v11086_v25  ;;  %2655 = vmatmul.mubr.f32.vlgmr.msra.gmra.mrb[42].mxu0 %v11088_v63  ;;  %v11091_v45 = vand.u32 4294901760, %v9194_v6  ;;  %v5426_v6 = vpop.f32.mrb[3].mxu1  ;;  %v167_v51 = vld [vmem:[%s10547_s2 + $0x3a0] sm:$0xff]  ;;  %v11097_v25 = vld [vmem:[#allocation15_spill] sm:$0xff] }
 0x118   :  { %v9488_v60 = vpack.c.bf16 %v11090_v33, %v11089_v23  ;;  %v11092_v32 = vand.u32 4294901760, %v9206_v49  ;;  %v11093_v36 = vand.u32 4294901760, %v9229_v46  ;;  %v11094_v13 = vand.u32 4294901760, %v9238_v24  ;;  %7208 = vmatpush3.bf16.msra.mxu0 %v7207_v37  ;;  %2661 = vmatprep.mubr.f32.mxu0 %v9256_v28  ;;  %v168_v37 = vld [vmem:[%s10547_s2 + $0x3a8] sm:$0xff] }
 0x119   :  { %v11095_v49 = vand.u32 4294901760, %v9266_v9  ;;  %v11096_v46 = vand.u32 4294901760, %v9269_v18  ;;  %v9515_v24 = vsub.f32 %v163_v30, %v3157_v56  ;;  %v3163_v41 = vand.u32 4294901760, %v165_v47  ;;  %7210 = vmatprep.subr.bf16.mxu0 %v7209_v5  ;;  %v5384_v9 = vpop.f32.mrb[2].mxu0  ;;  %v11099_v30 = vld [vmem:[#allocation14_spill] sm:$0xff] }
 0x11a   :  { %v9494_v2 = vpack.c.bf16 %v11092_v32, %v11091_v45  ;;  %v9500_v14 = vpack.c.bf16 %v11094_v13, %v11093_v36  ;;  %v3166_v11 = vand.u32 4294901760, %v166_v42  ;;  %7200 = vmatpush3.bf16.msra.mxu1 %v11097_v25  ;;  %v5427_v27 = vadd.f32 %v5426_v6, %v5425_v19  ;;  %v5385_v33 = vpop.f32.mrb[3].mxu0 }
 0x11b   :  { %v9513_v31 = vpack.c.bf16 %v11096_v46, %v11095_v49  ;;  %v9524_v18 = vsub.f32 %v164_v62, %v3160_v3  ;;  %v9526_v23 = vsub.f32 %v147_v12, %v3109_v15  ;;  %7202 = vmatprep.subr.bf16.mxu1 %v11099_v30  ;;  %v9529_v45 = vpack.c.bf16 %v3160_v3, %v3157_v56  ;;  %v5428_v46 = vpop.f32.mrb[4].mxu1 }
 0x11c   :  { %v9531_v32 = vsub.f32 %v148_v35, %v3112_v29  ;;  %v3115_v36 = vand.u32 4294901760, %v149_v59  ;;  %v3118_v13 = vand.u32 4294901760, %v150_v57  ;;  %2664 = vmatmul.mubr.f32.gmra.mrb[44].mxu0 %v9285_v17  ;;  %v5386_v49 = vadd.f32 %v5385_v33, %v5384_v9  ;;  %v5429_v12 = vpop.f32.mrb[5].mxu1  ;;  %v151_v9 = vld [vmem:[%s10547_s2 + $0x320] sm:$0xff] }
 0x11d   :  { %11098 = vst [vmem:[#allocation17_spill] sm:$0xff] %v9524_v18  ;;  %v9534_v5 = vpack.c.bf16 %v3112_v29, %v3109_v15  ;;  %v3169_v19 = vand.u32 4294901760, %v167_v51  ;;  %v3172_v62 = vand.u32 4294901760, %v168_v37  ;;  %7212 = vmatpush3.bf16.msra.mxu0 %v7211_v44  ;;  %2670 = vmatprep.mubr.f32.mxu0 %v9292_v20  ;;  %v9537_v6 = vpack.c.bf16 %v3166_v11, %v3163_v41  ;;  %v5387_v15 = vpop.f32.mrb[4].mxu0 }
 0x11e   :  { %11100 = vst [vmem:[#allocation18_spill] sm:$0xff] %v9531_v32  ;;  %v9539_v56 = vsub.f32 %v165_v47, %v3163_v41  ;;  %v9541_v35 = vsub.f32 %v166_v42, %v3166_v11  ;;  %7204 = vmatpush3.bf16.msra.mxu1 %v9310_v22  ;;  %7214 = vmatprep.subr.bf16.mxu0 %v7213_v10  ;;  %v152_v47 = vld [vmem:[%s10547_s2 + $0x328] sm:$0xff]  ;;  %v5388_v41 = vpop.f32.mrb[5].mxu0  ;;  %v3121_v22 = vand.u32 4294901760, %v151_v9  ;;  %v11107_v42 = vand.u32 4294901760, %v11088_v63 }
 0x11f   :  { %11101 = vst [vmem:[#allocation7_spill] sm:$0xff] %v9534_v5  ;;  %11102 = vst [vmem:[#allocation13_spill] sm:$0xff] %v9537_v6  ;;  %v310_v44 = vadd.f32 %v5386_v49, %v9395_v0  ;;  %v5430_v29 = vadd.f32 %v5429_v12, %v5428_v46  ;;  %7238 = vmatprep.subr.bf16.mxu1 %v8914_v4  ;;  %v9555_v11 = vpack.c.bf16 %v3118_v13, %v3115_v36 }
 0x120   :  { %11103 = vst [vmem:[#allocation10_spill] sm:$0xff] %v9539_v56  ;;  %11104 = vst [vmem:[#allocation16_spill] sm:$0xff] %v9541_v35  ;;  %v9557_v3 = vsub.f32 %v149_v59, %v3115_v36  ;;  %v9559_v10 = vsub.f32 %v150_v57, %v3118_v13  ;;  %v10750_v49 = vand.u32 4294901760, %v9531_v32  ;;  %2673 = vmatmul.mubr.f32.gmra.mrb[46].mxu0 %v9317_v50  ;;  %v11108_v4 = vand.u32 4294901760, %v9515_v24  ;;  %v169_v36 = vld [vmem:[%s10547_s2 + $0x3b0] sm:$0xff] }
 0x121   :  { %11105 = vst [vmem:[#allocation9_spill] sm:$0xff] %v9555_v11  ;;  %v5389_v46 = vadd.f32 %v5388_v41, %v5387_v15  ;;  %v9563_v12 = vadd.f32 %v5427_v27, %v310_v44  ;;  %v9565_v33 = vpack.c.bf16 %v3172_v62, %v3169_v19  ;;  %2781 = vmatmul.mubr.f32.vlgmr.msra.gmra.mrb[42].mxu1 %v11107_v42  ;;  %v3124_v57 = vand.u32 4294901760, %v152_v47  ;;  %v170_v27 = vld [vmem:[%s10547_s2 + $0x3b8] sm:$0xff] }
 0x122   :  { %7216 = vmatpush3.bf16.msra.mxu0 %v9435_v48  ;;  %v3366_v59 = vsub.f32 %v9515_v24, %v11108_v4  ;;  %v10749_v13 = vand.u32 4294901760, %v9539_v56  ;;  %7240 = vmatpush3.bf16.msra.mxu1 %v11051_v52  ;;  %v11109_v48 = vand.u32 4294901760, %v9256_v28  ;;  %v11110_v15 = vand.u32 4294901760, %v9524_v18 }
 0x123   :  { %11106 = vst [vmem:[#allocation12_spill] sm:$0xff] %v9565_v33  ;;  %v325_v44 = vadd.f32 %v5389_v46, %v9395_v0  ;;  %v11111_v41 = vand.u32 4294901760, %v9526_v23  ;;  %7218 = vmatprep.subr.bf16.mxu0 %v9441_v38  ;;  %7242 = vmatprep.subr.bf16.mxu1 %v11052_v55  ;;  %v9593_v63 = vsub.f32 %v167_v51, %v3169_v19  ;;  %v11112_v46 = vld [vmem:[#allocation8_spill] sm:$0xff]  ;;  %v154_v38 = vld [vmem:[%s10547_s2 + $0x338] sm:$0xff]  ;;  %v11114_v51 = vand.u32 4294901760, %v9285_v17 }
 0x124   :  { %2788 = vmatprep.mubr.f32.mxu1 %v11109_v48  ;;  %v3373_v42 = vsub.f32 %v9524_v18, %v11110_v15  ;;  %v9595_v52 = vsub.f32 %v168_v37, %v3172_v62  ;;  %v3261_v28 = vsub.f32 %v9531_v32, %v10750_v49  ;;  %2969 = vmatprep.mubr.f32.mxu0 %v11112_v46  ;;  %v3175_v15 = vand.u32 4294901760, %v169_v36  ;;  %v153_v55 = vld [vmem:[%s10547_s2 + $0x330] sm:$0xff] }
 0x125   :  { %v3254_v4 = vsub.f32 %v9526_v23, %v11111_v41  ;;  %v9600_v0 = vadd.f32 %v5430_v29, %v325_v44  ;;  %v9603_v48 = vsub.f32 %v151_v9, %v3121_v22  ;;  %v3178_v41 = vand.u32 4294901760, %v170_v27  ;;  %2792 = vmatmul.mubr.f32.gmra.mrb[44].mxu1 %v11114_v51  ;;  %v171_v44 = vld [vmem:[%s10547_s2 + $0x3c0] sm:$0xff] }
 0x126   :  { %7220 = vmatpush3.bf16.msra.mxu0 %v9447_v34  ;;  %v3367_v37 = vand.u32 4294901760, %v3366_v59  ;;  %v9614_v19 = vpack.c.bf16 %v3124_v57, %v3121_v22  ;;  %v3380_v62 = vsub.f32 %v9539_v56, %v10749_v13  ;;  %v11116_v9 = vand.u32 4294901760, %v9541_v35  ;;  %7244 = vmatpush3.bf16.msra.mxu1 %v11056_v53 }
 0x127   :  { %11113 = vst [vmem:[#allocation21_spill] sm:$0xff] %v9603_v48  ;;  %v11117_v17 = vand.u32 4294901760, %v9292_v20  ;;  %v3374_v34 = vand.u32 4294901760, %v3373_v42  ;;  %v3255_v22 = vand.u32 4294901760, %v3254_v4  ;;  %v10757_v59 = vand.u32 4294901760, %v9557_v3  ;;  %7222 = vmatprep.subr.bf16.mxu0 %v9454_v61  ;;  %7246 = vmatprep.subr.bf16.mxu1 %v11057_v26  ;;  %v172_v20 = vld [vmem:[%s10547_s2 + $0x3c8] sm:$0xff] }
 0x128   :  { %11115 = vst [vmem:[#allocation5_spill] sm:$0xff] %v9614_v19  ;;  %v3387_v29 = vsub.f32 %v9541_v35, %v11116_v9  ;;  %v10756_v51 = vand.u32 4294901760, %v9559_v10  ;;  %v3262_v9 = vand.u32 4294901760, %v3261_v28  ;;  %v3127_v13 = vand.u32 4294901760, %v153_v55 }
 0x129   :  { %2799 = vmatprep.mubr.f32.mxu1 %v11117_v17  ;;  %v3130_v49 = vand.u32 4294901760, %v154_v38  ;;  %v10755_v35 = vand.u32 4294901760, %v9593_v63  ;;  %v9633_v56 = vsub.f32 %v152_v47, %v3124_v57  ;;  %v9635_v53 = vpack.c.bf16 %v3178_v41, %v3175_v15 }
 0x12a   :  { %v3181_v42 = vand.u32 4294901760, %v171_v44  ;;  %v11120_v61 = vand.u32 4294901760, %v9317_v50  ;;  %7224 = vmatpush3.bf16.msra.mxu0 %v9467_v7  ;;  %v9644_v26 = vsub.f32 %v169_v36, %v3175_v15  ;;  %v9646_v28 = vsub.f32 %v170_v27, %v3178_v41  ;;  %7248 = vmatpush3.bf16.msra.mxu1 %v8983_v1  ;;  %v5463_v7 = vpop.f32.mrb[6].mxu0  ;;  %v155_v15 = vld [vmem:[%s10547_s2 + $0x340] sm:$0xff]  ;;  %v156_v41 = vld [vmem:[%s10547_s2 + $0x348] sm:$0xff] }
 0x12b   :  { %11118 = vst [vmem:[#allocation6_spill] sm:$0xff] %v9633_v56  ;;  %11119 = vst [vmem:[#allocation19_spill] sm:$0xff] %v9635_v53  ;;  %v3381_v47 = vand.u32 4294901760, %v3380_v62  ;;  %v3388_v57 = vand.u32 4294901760, %v3387_v29  ;;  %7226 = vmatprep.subr.bf16.mxu0 %v9473_v16  ;;  %v9650_v17 = vpack.c.bf16 %v3374_v34, %v3367_v37  ;;  %v3268_v4 = vsub.f32 %v9557_v3, %v10757_v59  ;;  %v11128_v59 = vld [vmem:[#allocation20_spill] sm:$0xff] }
 0x12c   :  { %2803 = vmatmul.mubr.f32.gmra.mrb[46].mxu1 %v11120_v61  ;;  %11121 = vst [vmem:[#allocation11_spill] sm:$0xff] %v9644_v26  ;;  %v3275_v50 = vsub.f32 %v9559_v10, %v10756_v51  ;;  %7250 = vmatprep.subr.bf16.mxu1 %v8997_v43  ;;  %v9660_v36 = vpack.c.bf16 %v3262_v9, %v3255_v22  ;;  %v3184_v16 = vand.u32 4294901760, %v172_v20  ;;  %v5464_v43 = vpop.f32.mrb[7].mxu0  ;;  %v11125_v29 = vand.u32 4294901760, %v9595_v52 }
 0x12d   :  { %3087 = vmatprep.mubr.f32.mxu1 %v11112_v46  ;;  %v9662_v1 = vpack.c.bf16 %v3130_v49, %v3127_v13  ;;  %v3394_v27 = vsub.f32 %v9593_v63, %v10755_v35  ;;  %v9673_v37 = vsub.f32 %v153_v55, %v3127_v13  ;;  %v9675_v46 = vsub.f32 %v154_v38, %v3130_v49  ;;  %v173_v49 = vld [vmem:[%s10547_s2 + $0x3d0] sm:$0xff]  ;;  %v34_v13 = vld [vmem:[%s10545_s0 + $0x38] sm:$0xff] }
 0x12e   :  { %v9677_v62 = vsub.f32 %v171_v44, %v3181_v42  ;;  %v3401_v34 = vsub.f32 %v9595_v52, %v11125_v29  ;;  %v5465_v22 = vadd.f32 %v5464_v43, %v5463_v7  ;;  %7228 = vmatpush3.bf16.msra.mxu0 %v9479_v39  ;;  %v9683_v9 = vpack.c.bf16 %v3388_v57, %v3381_v47  ;;  %v5466_v57 = vpop.f32.mrb[8].mxu0  ;;  %v174_v29 = vld [vmem:[%s10547_s2 + $0x3d8] sm:$0xff] }
 0x12f   :  { %11122 = vst [vmem:[#allocation26_spill] sm:$0xff] %v9673_v37  ;;  %11123 = vst [vmem:[#allocation25_spill] sm:$0xff] %v9675_v46  ;;  %v10758_v61 = vand.u32 4294901760, %v9603_v48  ;;  %v10759_v35 = vand.u32 4294901760, %v9633_v56  ;;  %7252 = vmatpush3.bf16.msra.mxu1 %v11059_v54  ;;  %7230 = vmatprep.subr.bf16.mxu0 %v9488_v60  ;;  %v3269_v55 = vand.u32 4294901760, %v3268_v4  ;;  %v3276_v39 = vand.u32 4294901760, %v3275_v50 }
 0x130   :  { %11124 = vst [vmem:[#allocation15_spill] sm:$0xff] %v9677_v62  ;;  %v3133_v38 = vand.u32 4294901760, %v155_v15  ;;  %v3136_v44 = vand.u32 4294901760, %v156_v41  ;;  %v709_v47 = vadd.f32 %v5465_v22, %v9481_v58  ;;  %7254 = vmatprep.subr.bf16.mxu1 %v9068_v8  ;;  %v9697_v7 = vpack.c.bf16 %v3184_v16, %v3181_v42  ;;  %v5467_v51 = vpop.f32.mrb[9].mxu0  ;;  %v157_v58 = vld [vmem:[%s10547_s2 + $0x350] sm:$0xff] }
 0x131   :  { %v3395_v43 = vand.u32 4294901760, %v3394_v27  ;;  %v3402_v60 = vand.u32 4294901760, %v3401_v34  ;;  %v3187_v4 = vand.u32 4294901760, %v173_v49  ;;  %v9707_v22 = vand.u32 4294901760, %v34_v13 }
 0x132   :  { %v5468_v8 = vadd.f32 %v5467_v51, %v5466_v57  ;;  %7232 = vmatpush3.bf16.msra.mxu0 %v9494_v2  ;;  %v9710_v42 = vsub.f32 %v172_v20, %v3184_v16  ;;  %v3282_v27 = vsub.f32 %v9603_v48, %v10758_v61  ;;  %v3289_v34 = vsub.f32 %v9633_v56, %v10759_v35  ;;  %v5469_v16 = vpop.f32.mrb[10].mxu0  ;;  %v11131_v57 = vld [vmem:[#allocation22_spill] sm:$0xff] }
 0x133   :  { %11126 = vst [vmem:[#allocation14_spill] sm:$0xff] %v9707_v22  ;;  %7256 = vmatpush3.bf16.msra.mxu1 %v11128_v59  ;;  %7234 = vmatprep.subr.bf16.mxu0 %v9500_v14  ;;  %v9720_v50 = vpack.c.bf16 %v3276_v39, %v3269_v55  ;;  %v9722_v54 = vpack.c.bf16 %v3136_v44, %v3133_v38  ;;  %v3190_v2 = vand.u32 4294901760, %v174_v29  ;;  %v11132_v35 = vand.u32 4294901760, %v9644_v26  ;;  %v158_v14 = vld [vmem:[%s10547_s2 + $0x358] sm:$0xff]  ;;  %v5504_v39 = vpop.f32.mrb[6].mxu1 }
 0x134   :  { %11127 = vst [vmem:[#allocation8_spill] sm:$0xff] %v9710_v42  ;;  %v9724_v51 = vsub.f32 %v155_v15, %v3133_v38  ;;  %v718_v20 = vadd.f32 %v5468_v8, %v9563_v12  ;;  %7258 = vmatprep.subr.bf16.mxu1 %v11131_v57  ;;  %v9728_v61 = vsub.f32 %v156_v41, %v3136_v44  ;;  %v3139_v55 = vand.u32 4294901760, %v157_v58  ;;  %v5470_v15 = vpop.f32.mrb[11].mxu0 }
 0x135   :  { %11129 = vst [vmem:[#allocation20_spill] sm:$0xff] %v9722_v54  ;;  %v3408_v59 = vsub.f32 %v9644_v26, %v11132_v35  ;;  %v9736_v38 = vpack.c.bf16 %v3402_v60, %v3395_v43  ;;  %v9738_v56 = vsub.f32 %v173_v49, %v3187_v4  ;;  %v11133_v12 = vand.u32 4294901760, %v9646_v28  ;;  %v5505_v35 = vpop.f32.mrb[7].mxu1  ;;  %v175_v49 = vld [vmem:[%s10547_s2 + $0x3e0] sm:$0xff] }
 0x136   :  { %11130 = vst [vmem:[#allocation31_spill] sm:$0xff] %v9724_v51  ;;  %v9744_v44 = vsub.f32 %v34_v13, %v9707_v22  ;;  %v5471_v8 = vadd.f32 %v5470_v15, %v5469_v16  ;;  %7236 = vmatpush3.bf16.msra.mxu0 %v9513_v31  ;;  %v3283_v57 = vand.u32 4294901760, %v3282_v27  ;;  %v3290_v26 = vand.u32 4294901760, %v3289_v34 }
 0x137   :  { %v3415_v41 = vsub.f32 %v9646_v28, %v11133_v12  ;;  %v10766_v48 = vand.u32 4294901760, %v9673_v37  ;;  %v5506_v43 = vadd.f32 %v5505_v35, %v5504_v39  ;;  %7260 = vmatpush3.bf16.msra.mxu1 %v11078_v40  ;;  %7270 = vmatprep.subr.bf16.mxu0 %v9529_v45  ;;  %v9753_v60 = vpack.c.bf16 %v3190_v2, %v3187_v4  ;;  %v5507_v39 = vpop.f32.mrb[8].mxu1  ;;  %v11137_v40 = vld [vmem:[#allocation23_spill] sm:$0xff] }
 0x138   :  { %11134 = vst [vmem:[#allocation22_spill] sm:$0xff] %v9744_v44  ;;  %v3142_v13 = vand.u32 4294901760, %v158_v14  ;;  %v727_v31 = vadd.f32 %v5471_v8, %v9600_v0  ;;  %7262 = vmatprep.subr.bf16.mxu1 %v11081_v21  ;;  %v9758_v27 = vsub.f32 %v174_v29, %v3190_v2  ;;  %v3409_v34 = vand.u32 4294901760, %v3408_v59  ;;  %v176_v4 = vld [vmem:[%s10547_s2 + $0x3e8] sm:$0xff]  ;;  %v5508_v8 = vpop.f32.mrb[9].mxu1  ;;  %v11138_v21 = vld [vmem:[#allocation24_spill] sm:$0xff] }
 0x139   :  { %11135 = vst [vmem:[#allocation32_spill] sm:$0xff] %v9753_v60  ;;  %v9760_v15 = vsub.f32 %v157_v58, %v3139_v55  ;;  %v9762_v12 = vadd.f32 %v5506_v43, %v709_v47  ;;  %2971 = vmatmul.mubr.f32.vlgmr.msra.gmra.mrb[48].mxu0 %v11137_v40  ;;  %v3416_v35 = vand.u32 4294901760, %v3415_v41  ;;  %v3193_v16 = vand.u32 4294901760, %v175_v49  ;;  %v159_v2 = vld [vmem:[%s10547_s2 + $0x360] sm:$0xff]  ;;  %v11141_v58 = vld [vmem:[#allocation27_spill] sm:$0xff] }
 0x13a   :  { %11136 = vst [vmem:[#allocation33_spill] sm:$0xff] %v9758_v27  ;;  %7272 = vmatpush3.bf16.msra.mxu0 %v9534_v5  ;;  %2976 = vmatprep.mubr.f32.mxu0 %v11138_v21  ;;  %v9771_v29 = vpack.c.bf16 %v3290_v26, %v3283_v57  ;;  %v3296_v47 = vsub.f32 %v9673_v37, %v10766_v48  ;;  %v11140_v43 = vand.u32 4294901760, %v9675_v46  ;;  %v3196_v48 = vand.u32 4294901760, %v176_v4  ;;  %v11146_v5 = vld [vmem:[#allocation29_spill] sm:$0xff] }
 0x13b   :  { %v5509_v59 = vadd.f32 %v5508_v8, %v5507_v39  ;;  %7264 = vmatpush3.bf16.msra.mxu1 %v11097_v25  ;;  %7274 = vmatprep.subr.bf16.mxu0 %v9537_v6  ;;  %v9780_v41 = vpack.c.bf16 %v3142_v13, %v3139_v55  ;;  %v9786_v57 = vsub.f32 %v158_v14, %v3142_v13  ;;  %v5510_v55 = vpop.f32.mrb[10].mxu1  ;;  %v11142_v14 = vand.u32 4294901760, %v9744_v44  ;;  %v177_v6 = vld [vmem:[%s10547_s2 + $0x3f0] sm:$0xff] }
 0x13c   :  { %v3303_v26 = vsub.f32 %v9675_v46, %v11140_v43  ;;  %7266 = vmatprep.subr.bf16.mxu1 %v11099_v30  ;;  %v9796_v0 = vpack.c.bf16 %v3416_v35, %v3409_v34  ;;  %v9798_v43 = vsub.f32 %v175_v49, %v3193_v16  ;;  %v160_v30 = vld [vmem:[%s10547_s2 + $0x368] sm:$0xff]  ;;  %v5511_v39 = vpop.f32.mrb[11].mxu1  ;;  %v11144_v25 = vand.u32 4294901760, %v9677_v62 }
 0x13d   :  { %11139 = vst [vmem:[#allocation23_spill] sm:$0xff] %v9780_v41  ;;  %v9793_v8 = vadd.f32 %v5509_v59, %v718_v20  ;;  %2978 = vmatmul.mubr.f32.gmra.mrb[50].mxu0 %v11141_v58  ;;  %v3207_v13 = vsub.f32 %v9744_v44, %v11142_v14  ;;  %v11143_v20 = vld [vmem:[#allocation28_spill] sm:$0xff]  ;;  %v3297_v59 = vand.u32 4294901760, %v3296_v47  ;;  %v11145_v49 = vand.u32 4294901760, %v9710_v42 }
 0x13e   :  { %7276 = vmatpush3.bf16.msra.mxu0 %v9555_v11  ;;  %2983 = vmatprep.mubr.f32.mxu0 %v11143_v20  ;;  %v3422_v34 = vsub.f32 %v9677_v62, %v11144_v25  ;;  %v5512_v44 = vadd.f32 %v5511_v39, %v5510_v55  ;;  %v3304_v47 = vand.u32 4294901760, %v3303_v26  ;;  %v3145_v11 = vand.u32 4294901760, %v159_v2  ;;  %v178_v25 = vld [vmem:[%s10547_s2 + $0x3f8] sm:$0xff] }
 0x13f   :  { %v3429_v35 = vsub.f32 %v9710_v42, %v11145_v49  ;;  %7268 = vmatpush3.bf16.msra.mxu1 %v11146_v5  ;;  %7278 = vmatprep.subr.bf16.mxu0 %v9565_v33  ;;  %v9825_v49 = vpack.c.bf16 %v3196_v48, %v3193_v16  ;;  %v3148_v42 = vand.u32 4294901760, %v160_v30  ;;  %v11148_v14 = vand.u32 4294901760, %v9724_v51  ;;  %v11150_v33 = vld [vmem:[#allocation30_spill] sm:$0xff] }
 0x140   :  { %7302 = vmatprep.subr.bf16.mxu1 %v9650_v17  ;;  %v11149_v5 = vand.u32 4294901760, %v9728_v61  ;;  %v9833_v55 = vadd.f32 %v5512_v44, %v727_v31  ;;  %v9836_v46 = vsub.f32 %v176_v4, %v3196_v48  ;;  %v3199_v62 = vand.u32 4294901760, %v177_v6  ;;  %v161_v17 = vld [vmem:[%s10547_s2 + $0x370] sm:$0xff]  ;;  %v162_v48 = vld [vmem:[%s10547_s2 + $0x378] sm:$0xff] }
 0x141   :  { %11147 = vst [vmem:[#allocation24_spill] sm:$0xff] %v9825_v49  ;;  %v3310_v39 = vsub.f32 %v9724_v51, %v11148_v14  ;;  %2985 = vmatmul.mubr.f32.gmra.mrb[52].mxu0 %v11150_v33  ;;  %v3208_v16 = vand.u32 4294901760, %v3207_v13  ;;  %v3423_v14 = vand.u32 4294901760, %v3422_v34  ;;  %v3430_v51 = vand.u32 4294901760, %v3429_v35  ;;  %v33_v4 = vld [vmem:[%s10545_s0 + $0x30] sm:$0xff] }
 0x142   :  { %v3317_v26 = vsub.f32 %v9728_v61, %v11149_v5  ;;  %3089 = vmatmul.mubr.f32.vlgmr.msra.gmra.mrb[48].mxu1 %v11137_v40  ;;  %7280 = vmatpush3.bf16.msra.mxu0 %v9614_v19  ;;  %v3202_v37 = vand.u32 4294901760, %v178_v25  ;;  %v11151_v44 = vand.u32 4294901760, %v9738_v56  ;;  %v9854_v40 = vpack.c.bf16 %v3304_v47, %v3297_v59 }
 0x143   :  { %7304 = vmatpush3.bf16.msra.mxu1 %v9660_v36  ;;  %3094 = vmatprep.mubr.f32.mxu1 %v11138_v21  ;;  %v9856_v13 = vsub.f32 %v159_v2, %v3145_v11  ;;  %v11152_v34 = vand.u32 4294901760, %v9758_v27  ;;  %v9867_v36 = vpack.c.bf16 %v3148_v42, %v3145_v11  ;;  %v3311_v21 = vand.u32 4294901760, %v3310_v39  ;;  %v50_v39 = vld [vmem:[%s10545_s0 + $0xb8] sm:$0x7f] }
 0x144   :  { %v3436_v31 = vsub.f32 %v9738_v56, %v11151_v44  ;;  %v42_v44 = vld [vmem:[%s10545_s0 + $0x78] sm:$0xff]  ;;  %7282 = vmatprep.subr.bf16.mxu0 %v9635_v53  ;;  %7306 = vmatprep.subr.bf16.mxu1 %v9683_v9  ;;  %v3318_v59 = vand.u32 4294901760, %v3317_v26  ;;  %v3151_v2 = vand.u32 4294901760, %v161_v17  ;;  %v9869_v47 = vsub.f32 %v160_v30, %v3148_v42  ;;  %v41_v42 = vld [vmem:[%s10545_s0 + $0x70] sm:$0xff] }
 0x145   :  { %v3443_v35 = vsub.f32 %v9758_v27, %v11152_v34  ;;  %11153 = vst [vmem:[#allocation27_spill] sm:$0xff] %v9867_v36  ;;  %v9871_v19 = vsub.f32 %v177_v6, %v3199_v62  ;;  %v3154_v34 = vand.u32 4294901760, %v162_v48  ;;  %3209 = vmatprep.mubr.f32.mxu0 %v3208_v16  ;;  %v9873_v5 = vand.u32 4294901760, %v33_v4 }
 0x146   :  { %3096 = vmatmul.mubr.f32.gmra.mrb[50].mxu1 %v11141_v58  ;;  %7284 = vmatpush3.bf16.msra.mxu0 %v9662_v1  ;;  %v7317_v53 = vpack.c.bf16 %v3430_v51, %v3423_v14  ;;  %v9877_v27 = vpack.c.bf16 %v3202_v37, %v3199_v62  ;;  %v3437_v11 = vand.u32 4294901760, %v3436_v31  ;;  %v9879_v9 = vand.u32 4294901760, %v42_v44 }
 0x147   :  { %11154 = vst [vmem:[#allocation28_spill] sm:$0xff] %v9873_v5  ;;  %7308 = vmatpush3.bf16.msra.mxu1 %v9720_v50  ;;  %3101 = vmatprep.mubr.f32.mxu1 %v11143_v20  ;;  %v3444_v6 = vand.u32 4294901760, %v3443_v35  ;;  %v11157_v30 = vand.u32 4294901760, %v9760_v15  ;;  %v10795_v62 = vand.u32 4294901760, %v9786_v57  ;;  %v10793_v51 = vand.u32 4294901760, %v9798_v43 }
 0x148   :  { %11155 = vst [vmem:[#allocation29_spill] sm:$0xff] %v9877_v27  ;;  %11156 = vst [vmem:[#allocation30_spill] sm:$0xff] %v9879_v9  ;;  %7286 = vmatprep.subr.bf16.mxu0 %v9697_v7  ;;  %7310 = vmatprep.subr.bf16.mxu1 %v9736_v38  ;;  %v7319_v50 = vpack.c.bf16 %v3318_v59, %v3311_v21  ;;  %v9898_v20 = vsub.f32 %v178_v25, %v3202_v37  ;;  %v10794_v16 = vand.u32 4294901760, %v9836_v46 }
 0x149   :  { %v9889_v58 = vsub.f32 %v9760_v15, %v11157_v30  ;;  %v9900_v26 = vsub.f32 %v161_v17, %v3151_v2  ;;  %v9903_v14 = vpack.c.bf16 %v3154_v34, %v3151_v2  ;;  %v9906_v31 = vsub.f32 %v33_v4, %v9873_v5  ;;  %v49_v4 = vld [vmem:[%s10545_s0 + $0xb0] sm:$0x7f]  ;;  %v5545_v59 = vpop.f32.mrb[12].mxu0 }
 0x14a   :  { %v10796_v35 = vand.u32 4294901760, %v9856_v13  ;;  %v9909_v30 = vand.u32 4294901760, %v41_v42  ;;  %3103 = vmatmul.mubr.f32.gmra.mrb[52].mxu1 %v11150_v33  ;;  %7288 = vmatpush3.bf16.msra.mxu0 %v9722_v54  ;;  %v9913_v38 = vsub.f32 %v162_v48, %v3154_v34  ;;  %v10801_v37 = vand.u32 4294901760, %v9869_v47 }
 0x14b   :  { %11158 = vst [vmem:[#allocation34_spill] sm:$0xff] %v9906_v31  ;;  %v9917_v25 = vsub.f32 %v42_v44, %v9879_v9  ;;  %v9919_v17 = vand.u32 4294901760, %v50_v39  ;;  %7312 = vmatpush3.bf16.msra.mxu1 %v9771_v29  ;;  %7290 = vmatprep.subr.bf16.mxu0 %v9753_v60  ;;  %v7321_v33 = vpack.c.bf16 %v3444_v6, %v3437_v11  ;;  %v3325_v21 = vand.u32 4294901760, %v9889_v58  ;;  %v5546_v6 = vpop.f32.mrb[13].mxu0 }
 0x14c   :  { %11159 = vst [vmem:[#allocation35_spill] sm:$0xff] %v9909_v30  ;;  %11160 = vst [vmem:[#allocation36_spill] sm:$0xff] %v9913_v38  ;;  %v3331_v48 = vsub.f32 %v9786_v57, %v10795_v62  ;;  %v3450_v44 = vsub.f32 %v9798_v43, %v10793_v51  ;;  %7314 = vmatprep.subr.bf16.mxu1 %v9796_v0  ;;  %v3457_v29 = vsub.f32 %v9836_v46, %v10794_v16 }
 0x14d   :  { %11161 = vst [vmem:[#allocation37_spill] sm:$0xff] %v9917_v25  ;;  %11162 = vst [vmem:[#allocation38_spill] sm:$0xff] %v9919_v17  ;;  %v7333_v2 = vpack.c.bf16 %v9524_v18, %v9515_v24  ;;  %3475 = vmatprep.mubr.f32.mxu1 %v9707_v22  ;;  %v3338_v0 = vsub.f32 %v9856_v13, %v10796_v35  ;;  %v9947_v51 = vsub.f32 %v41_v42, %v9909_v30 }
 0x14e   :  { %v9949_v16 = vand.u32 4294901760, %v49_v4  ;;  %v5547_v62 = vadd.f32 %v5546_v6, %v5545_v59  ;;  %7292 = vmatpush3.bf16.msra.mxu0 %v9780_v41  ;;  %v3345_v11 = vsub.f32 %v9869_v47, %v10801_v37  ;;  %v9957_v58 = vsub.f32 %v50_v39, %v9919_v17  ;;  %v5548_v41 = vpop.f32.mrb[14].mxu0 }
 0x14f   :  { %7316 = vmatpush3.bf16.msra.mxu1 %v9854_v40  ;;  %7294 = vmatprep.subr.bf16.mxu0 %v9825_v49  ;;  %v3332_v42 = vand.u32 4294901760, %v3331_v48  ;;  %v3451_v35 = vand.u32 4294901760, %v3450_v44  ;;  %v3458_v37 = vand.u32 4294901760, %v3457_v29  ;;  %v11164_v34 = vand.u32 4294901760, %v9871_v19  ;;  %v5549_v49 = vpop.f32.mrb[15].mxu0 }
 0x150   :  { %11163 = vst [vmem:[#allocation39_spill] sm:$0xff] %v9949_v16  ;;  %v1025_v6 = vadd.f32 %v5547_v62, %v9762_v12  ;;  %7318 = vmatprep.subr.bf16.mxu1 %v7317_v53  ;;  %v11165_v60 = vand.u32 4294901760, %v9898_v20  ;;  %v11166_v48 = vand.u32 4294901760, %v9906_v31  ;;  %v3339_v22 = vand.u32 4294901760, %v3338_v0 }
 0x151   :  { %v3464_v39 = vsub.f32 %v9871_v19, %v11164_v34  ;;  %v9975_v12 = vsub.f32 %v49_v4, %v9949_v16  ;;  %v5550_v53 = vadd.f32 %v5549_v49, %v5548_v41  ;;  %v3346_v62 = vand.u32 4294901760, %v3345_v11  ;;  %v5551_v11 = vpop.f32.mrb[16].mxu0 }
 0x152   :  { %v3471_v40 = vsub.f32 %v9898_v20, %v11165_v60  ;;  %v3213_v44 = vsub.f32 %v9906_v31, %v11166_v48  ;;  %7296 = vmatpush3.bf16.msra.mxu0 %v9867_v36  ;;  %v11167_v29 = vand.u32 4294901760, %v9917_v25  ;;  %v7323_v48 = vpack.c.bf16 %v3332_v42, %v3325_v21  ;;  %v5586_v60 = vpop.f32.mrb[12].mxu1 }
 0x153   :  { %7320 = vmatpush3.bf16.msra.mxu1 %v7319_v50  ;;  %7298 = vmatprep.subr.bf16.mxu0 %v9877_v27  ;;  %v11168_v0 = vand.u32 4294901760, %v9900_v26  ;;  %v11169_v4 = vand.u32 4294901760, %v9913_v38  ;;  %v1032_v49 = vadd.f32 %v5550_v53, %v9793_v8  ;;  %v7325_v36 = vpack.c.bf16 %v3458_v37, %v3451_v35  ;;  %v5552_v50 = vpop.f32.mrb[17].mxu0  ;;  %v5587_v18 = vpop.f32.mrb[13].mxu1 }
 0x154   :  { %v3222_v34 = vsub.f32 %v9917_v25, %v11167_v29  ;;  %7322 = vmatprep.subr.bf16.mxu1 %v7321_v33  ;;  %v3465_v29 = vand.u32 4294901760, %v3464_v39  ;;  %v3472_v25 = vand.u32 4294901760, %v3471_v40  ;;  %v3214_v31 = vand.u32 4294901760, %v3213_v44  ;;  %v11172_v40 = vld [vmem:[#allocation10_spill] sm:$0xff]  ;;  %v11173_v44 = vld [vmem:[#allocation16_spill] sm:$0xff] }
 0x155   :  { %v3352_v59 = vsub.f32 %v9900_v26, %v11168_v0  ;;  %v3359_v41 = vsub.f32 %v9913_v38, %v11169_v4  ;;  %v7335_v21 = vpack.c.bf16 %v9531_v32, %v9526_v23  ;;  %v11170_v42 = vand.u32 4294901760, %v9947_v51 }
 0x156   :  { %v5553_v4 = vadd.f32 %v5552_v50, %v5551_v11  ;;  %7300 = vmatpush3.bf16.msra.mxu0 %v9903_v14  ;;  %v7327_v8 = vpack.c.bf16 %v3346_v62, %v3339_v22  ;;  %v3223_v35 = vand.u32 4294901760, %v3222_v34  ;;  %v11171_v37 = vand.u32 4294901760, %v9957_v58  ;;  %v5589_v22 = vpop.f32.mrb[14].mxu1 }
 0x157   :  { %v3228_v0 = vsub.f32 %v9947_v51, %v11170_v42  ;;  %v5588_v39 = vadd.f32 %v5587_v18, %v5586_v60  ;;  %7324 = vmatpush3.bf16.msra.mxu1 %v7323_v48  ;;  %7334 = vmatprep.subr.bf16.mxu0 %v7333_v2  ;;  %v7337_v53 = vpack.c.bf16 %v11173_v44, %v11172_v40  ;;  %v3353_v32 = vand.u32 4294901760, %v3352_v59  ;;  %v5590_v60 = vpop.f32.mrb[15].mxu1 }
 0x158   :  { %v3237_v33 = vsub.f32 %v9957_v58, %v11171_v37  ;;  %v3360_v42 = vand.u32 4294901760, %v3359_v41  ;;  %v1039_v27 = vadd.f32 %v5553_v4, %v9833_v55  ;;  %7326 = vmatprep.subr.bf16.mxu1 %v7325_v36  ;;  %v7329_v11 = vpack.c.bf16 %v3472_v25, %v3465_v29  ;;  %v11175_v29 = vld [vmem:[#allocation21_spill] sm:$0xff] }
 0x159   :  { %v10003_v50 = vadd.f32 %v5588_v39, %v1025_v6  ;;  %3215 = vmatmul.mubr.f32.vlgmr.msra.gmra.mrb[54].mxu0 %v3214_v31  ;;  %v3229_v62 = vand.u32 4294901760, %v3228_v0  ;;  %v11174_v34 = vand.u32 4294901760, %v9975_v12  ;;  %v7339_v2 = vpack.c.bf16 %v9559_v10, %v9557_v3  ;;  %v11179_v37 = vld [vmem:[#allocation25_spill] sm:$0xff]  ;;  %v11180_v39 = vld [vmem:[#allocation7_spill] sm:$0xff] }
 0x15a   :  { %7336 = vmatpush3.bf16.msra.mxu0 %v7335_v21  ;;  %3224 = vmatprep.mubr.f32.mxu0 %v3223_v35  ;;  %v3238_v59 = vand.u32 4294901760, %v3237_v33  ;;  %v5591_v48 = vadd.f32 %v5590_v60, %v5589_v22  ;;  %v7331_v55 = vpack.c.bf16 %v3360_v42, %v3353_v32  ;;  %v7341_v36 = vpack.c.bf16 %v9595_v52, %v9593_v63  ;;  %v5592_v25 = vpop.f32.mrb[16].mxu1  ;;  %v11176_v21 = vld [vmem:[#allocation6_spill] sm:$0xff]  ;;  %v11177_v32 = vld [vmem:[#allocation11_spill] sm:$0xff]  ;;  %v11187_v60 = vld [vmem:[#allocation33_spill] sm:$0xff] }
 0x15b   :  { %v3243_v18 = vsub.f32 %v9975_v12, %v11174_v34  ;;  %7328 = vmatpush3.bf16.msra.mxu1 %v7327_v8  ;;  %7338 = vmatprep.subr.bf16.mxu0 %v7337_v53  ;;  %v5593_v41 = vpop.f32.mrb[17].mxu1  ;;  %v7343_v0 = vpack.c.bf16 %v11176_v21, %v11175_v29  ;;  %v7345_v8 = vpack.c.bf16 %v9646_v28, %v11177_v32  ;;  %v11181_v53 = vld [vmem:[#allocation13_spill] sm:$0xff]  ;;  %v11182_v42 = vld [vmem:[#allocation15_spill] sm:$0xff] }
 0x15c   :  { %7330 = vmatprep.subr.bf16.mxu1 %v7329_v11  ;;  %v1150_v31 = vadd.f32 %v5591_v48, %v1032_v49  ;;  %v5594_v4 = vadd.f32 %v5593_v41, %v5592_v25  ;;  %v11178_v49 = vld [vmem:[#allocation26_spill] sm:$0xff]  ;;  %v11183_v11 = vld [vmem:[#allocation8_spill] sm:$0xff]  ;;  %v7355_v48 = vpack.c.bf16 %v9786_v57, %v9760_v15 }
 0x15d   :  { %3230 = vmatmul.mubr.f32.gmra.mrb[56].mxu0 %v3229_v62  ;;  %v3244_v6 = vand.u32 4294901760, %v3243_v18  ;;  %v7347_v33 = vpack.c.bf16 %v11179_v37, %v11178_v49  ;;  %v7349_v22 = vpack.c.bf16 %v11183_v11, %v11182_v42  ;;  %v11184_v62 = vld [vmem:[#allocation22_spill] sm:$0xff]  ;;  %v11186_v18 = vld [vmem:[#allocation9_spill] sm:$0xff] }
 0x15e   :  { %7340 = vmatpush3.bf16.msra.mxu0 %v7339_v2  ;;  %3239 = vmatprep.mubr.f32.mxu0 %v3238_v59  ;;  %v1157_v35 = vadd.f32 %v5594_v4, %v1039_v27  ;;  %v11185_v27 = vld [vmem:[#allocation31_spill] sm:$0xff]  ;;  %v7353_v2 = vpack.c.bf16 %v11187_v60, %v9738_v56  ;;  %v11188_v59 = vld [vmem:[#allocation12_spill] sm:$0xff]  ;;  %v11191_v41 = vand.u32 4294901760, %v11184_v62 }
 0x15f   :  { %7332 = vmatpush3.bf16.msra.mxu1 %v7331_v55  ;;  %7342 = vmatprep.subr.bf16.mxu0 %v7341_v36  ;;  %v7351_v34 = vpack.c.bf16 %v9728_v61, %v11185_v27  ;;  %v11189_v55 = vld [vmem:[#allocation5_spill] sm:$0xff]  ;;  %v7357_v36 = vpack.c.bf16 %v9836_v46, %v9798_v43 }
 0x160   :  { %7366 = vmatprep.subr.bf16.mxu1 %v9529_v45 }
 0x161   :  { %3245 = vmatmul.mubr.f32.gmra.mrb[58].mxu0 %v3244_v6  ;;  %v11190_v6 = vld [vmem:[#allocation19_spill] sm:$0xff] }
 0x162   :  { %3477 = vmatmul.mubr.f32.vlgmr.msra.gmra.mrb[54].mxu1 %v9873_v5  ;;  %7344 = vmatpush3.bf16.msra.mxu0 %v7343_v0 }
 0x163   :  { %7368 = vmatpush3.bf16.msra.mxu1 %v11180_v39  ;;  %3482 = vmatprep.mubr.f32.mxu1 %v9879_v9 }
 0x164   :  { %7346 = vmatprep.subr.bf16.mxu0 %v7345_v8  ;;  %7370 = vmatprep.subr.bf16.mxu1 %v11181_v53  ;;  %v7359_v8 = vpack.c.bf16 %v9869_v47, %v9856_v13 }
 0x165   :  { %3626 = vmatprep.mubr.f32.mxu0 %v11184_v62 }
 0x166   :  { %3484 = vmatmul.mubr.f32.gmra.mrb[56].mxu1 %v9909_v30  ;;  %7348 = vmatpush3.bf16.msra.mxu0 %v7347_v33  ;;  %v7361_v33 = vpack.c.bf16 %v9898_v20, %v9871_v19 }
 0x167   :  { %7372 = vmatpush3.bf16.msra.mxu1 %v11186_v18  ;;  %3489 = vmatprep.mubr.f32.mxu1 %v9919_v17 }
 0x168   :  { %7350 = vmatprep.subr.bf16.mxu0 %v7349_v22  ;;  %7374 = vmatprep.subr.bf16.mxu1 %v11188_v59 }
 0x169   :  { %v5627_v25 = vpop.f32.mrb[18].mxu0 }
 0x16a   :  { %3491 = vmatmul.mubr.f32.gmra.mrb[58].mxu1 %v9949_v16  ;;  %7352 = vmatpush3.bf16.msra.mxu0 %v7351_v34  ;;  %v5628_v0 = vpop.f32.mrb[19].mxu0 }
 0x16b   :  { %7376 = vmatpush3.bf16.msra.mxu1 %v11189_v55  ;;  %7354 = vmatprep.subr.bf16.mxu0 %v7353_v2  ;;  %v5629_v4 = vadd.f32 %v5628_v0, %v5627_v25  ;;  %v11192_v25 = vand.u32 4294901760, %v9515_v24  ;;  %v11200_v24 = vand.u32 4294901760, %v11172_v40 }
 0x16c   :  { %7378 = vmatprep.subr.bf16.mxu1 %v11190_v6  ;;  %3751 = vmatprep.mubr.f32.mxu1 %v11191_v41 }
 0x16d   :  { %v1269_v22 = vadd.f32 %v5629_v4, %v10003_v50  ;;  %v5630_v34 = vpop.f32.mrb[20].mxu0  ;;  %v11195_v50 = vld [vmem:[#allocation32_spill] sm:$0xff] }
 0x16e   :  { %7356 = vmatpush3.bf16.msra.mxu0 %v7355_v48  ;;  %v5631_v2 = vpop.f32.mrb[21].mxu0  ;;  %v7363_v48 = vpack.c.bf16 %v9913_v38, %v9900_v26  ;;  %v11199_v38 = vld [vmem:[#allocation23_spill] sm:$0xff] }
 0x16f   :  { %7380 = vmatpush3.bf16.msra.mxu1 %v9662_v1  ;;  %7358 = vmatprep.subr.bf16.mxu0 %v7357_v36  ;;  %v5632_v62 = vadd.f32 %v5631_v2, %v5630_v34  ;;  %v11193_v36 = vld [vmem:[#allocation17_spill] sm:$0xff]  ;;  %v11197_v2 = vld [vmem:[#allocation18_spill] sm:$0xff] }
 0x170   :  { %7382 = vmatprep.subr.bf16.mxu1 %v9697_v7  ;;  %v11194_v41 = vand.u32 4294901760, %v11193_v36  ;;  %v11198_v5 = vand.u32 4294901760, %v11197_v2  ;;  %v11202_v36 = vld [vmem:[#allocation24_spill] sm:$0xff] }
 0x171   :  { %v1284_v16 = vadd.f32 %v5632_v62, %v1150_v31  ;;  %v5633_v17 = vpop.f32.mrb[22].mxu0  ;;  %v11201_v31 = vand.u32 4294901760, %v11173_v44  ;;  %v11209_v44 = vand.u32 4294901760, %v9595_v52  ;;  %v11214_v52 = vand.u32 4294901760, %v9646_v28 }
 0x172   :  { %7360 = vmatpush3.bf16.msra.mxu0 %v7359_v8  ;;  %v7397_v0 = vpack.c.bf16 %v11194_v41, %v11192_v25  ;;  %v5668_v4 = vpop.f32.mrb[18].mxu1  ;;  %v5634_v30 = vpop.f32.mrb[23].mxu0  ;;  %v11196_v8 = vand.u32 4294901760, %v9526_v23  ;;  %v11204_v41 = vld [vmem:[#allocation37_spill] sm:$0xff]  ;;  %v11219_v28 = vand.u32 4294901760, %v11182_v42  ;;  %v11226_v42 = vand.u32 4294901760, %v9738_v56 }
 0x173   :  { %7384 = vmatpush3.bf16.msra.mxu1 %v9722_v54  ;;  %7362 = vmatprep.subr.bf16.mxu0 %v7361_v33  ;;  %v5635_v9 = vadd.f32 %v5634_v30, %v5633_v17  ;;  %v5669_v34 = vpop.f32.mrb[19].mxu1  ;;  %v7401_v62 = vpack.c.bf16 %v11201_v31, %v11200_v24  ;;  %v11231_v56 = vand.u32 4294901760, %v9798_v43  ;;  %v11235_v43 = vand.u32 4294901760, %v9871_v19 }
 0x174   :  { %7386 = vmatprep.subr.bf16.mxu1 %v11195_v50  ;;  %v7399_v54 = vpack.c.bf16 %v11198_v5, %v11196_v8  ;;  %v5670_v33 = vadd.f32 %v5669_v34, %v5668_v4  ;;  %v11205_v5 = vand.u32 4294901760, %v9557_v3  ;;  %v11207_v34 = vld [vmem:[#allocation27_spill] sm:$0xff]  ;;  %v11211_v3 = vand.u32 4294901760, %v11175_v29 }
 0x175   :  { %v1299_v25 = vadd.f32 %v5635_v9, %v1157_v35  ;;  %v11208_v9 = vand.u32 4294901760, %v9593_v63  ;;  %v11213_v63 = vand.u32 4294901760, %v11177_v32  ;;  %v11216_v29 = vand.u32 4294901760, %v11178_v49 }
 0x176   :  { %7364 = vmatpush3.bf16.msra.mxu0 %v7363_v48  ;;  %v1531_v30 = vadd.f32 %v5670_v33, %v1269_v22  ;;  %v5671_v17 = vpop.f32.mrb[20].mxu1  ;;  %v11203_v48 = vld [vmem:[#allocation34_spill] sm:$0xff]  ;;  %v11210_v22 = vld [vmem:[#allocation29_spill] sm:$0xff]  ;;  %v11220_v32 = vand.u32 4294901760, %v11183_v11  ;;  %v11222_v49 = vand.u32 4294901760, %v9947_v51  ;;  %v11227_v11 = vand.u32 4294901760, %v11187_v60 }
 0x177   :  { %7388 = vmatpush3.bf16.msra.mxu1 %v11199_v38  ;;  %7398 = vmatprep.subr.bf16.mxu0 %v7397_v0  ;;  %v5672_v23 = vpop.f32.mrb[21].mxu1  ;;  %v11206_v0 = vand.u32 4294901760, %v9559_v10  ;;  %v7405_v35 = vpack.c.bf16 %v11209_v44, %v11208_v9  ;;  %v11212_v10 = vand.u32 4294901760, %v11176_v21  ;;  %v11217_v21 = vand.u32 4294901760, %v11179_v37  ;;  %v11238_v44 = vld [vmem:[#allocation36_spill] sm:$0xff] }
 0x178   :  { %7390 = vmatprep.subr.bf16.mxu1 %v11202_v36  ;;  %v5673_v40 = vadd.f32 %v5672_v23, %v5671_v17  ;;  %v11223_v37 = vand.u32 4294901760, %v11185_v27  ;;  %v11230_v27 = vand.u32 4294901760, %v9786_v57  ;;  %v11234_v57 = vand.u32 4294901760, %v9869_v47 }
 0x179   :  { %3629 = vmatmul.mubr.f32.vlgmr.msra.gmra.mrb[60].mxu0 %v11203_v48  ;;  %v7403_v4 = vpack.c.bf16 %v11206_v0, %v11205_v5  ;;  %v7407_v33 = vpack.c.bf16 %v11212_v10, %v11211_v3  ;;  %v7411_v17 = vpack.c.bf16 %v11217_v21, %v11216_v29  ;;  %v11239_v47 = vand.u32 4294901760, %v11238_v44  ;;  %v11245_v21 = vld [vmem:[#allocation39_spill] sm:$0xff] }
 0x17a   :  { %7400 = vmatpush3.bf16.msra.mxu0 %v7399_v54  ;;  %3635 = vmatprep.mubr.f32.mxu0 %v11204_v41  ;;  %v1538_v8 = vadd.f32 %v5673_v40, %v1284_v16  ;;  %v5674_v54 = vpop.f32.mrb[22].mxu1  ;;  %v7409_v16 = vpack.c.bf16 %v11214_v52, %v11213_v63 }
 0x17b   :  { %7392 = vmatpush3.bf16.msra.mxu1 %v11207_v34  ;;  %7402 = vmatprep.subr.bf16.mxu0 %v7401_v62  ;;  %v5675_v2 = vpop.f32.mrb[23].mxu1  ;;  %v11215_v62 = vand.u32 4294901760, %v11203_v48  ;;  %v11221_v48 = vld [vmem:[#allocation14_spill] sm:$0xff] }
 0x17c   :  { %7394 = vmatprep.subr.bf16.mxu1 %v11210_v22  ;;  %v5676_v24 = vadd.f32 %v5675_v2, %v5674_v54  ;;  %v11240_v54 = vld [vmem:[#allocation20_spill] sm:$0xff] }
 0x17d   :  { %3638 = vmatmul.mubr.f32.gmra.mrb[62].mxu0 %v9947_v51  ;;  %v11228_v51 = vand.u32 4294901760, %v9975_v12 }
 0x17e   :  { %7404 = vmatpush3.bf16.msra.mxu0 %v7403_v4  ;;  %3644 = vmatprep.mubr.f32.mxu0 %v9957_v58  ;;  %v1545_v31 = vadd.f32 %v5676_v24, %v1299_v25  ;;  %v7413_v25 = vpack.c.bf16 %v11220_v32, %v11219_v28  ;;  %v11241_v24 = vld [vmem:[#allocation28_spill] sm:$0xff] }
 0x17f   :  { %7396 = vmatpush3.bf16.msra.mxu1 %v9903_v14  ;;  %7406 = vmatprep.subr.bf16.mxu0 %v7405_v35 }
 0x180   :  { %7430 = vmatprep.subr.bf16.mxu1 %v9529_v45  ;;  %v11218_v45 = vand.u32 4294901760, %v11204_v41  ;;  %v7417_v41 = vpack.c.bf16 %v11227_v11, %v11226_v42 }
 0x181   :  { %3647 = vmatmul.mubr.f32.gmra.mrb[64].mxu0 %v9975_v12 }
 0x182   :  { %3755 = vmatmul.mubr.f32.vlgmr.msra.gmra.mrb[60].mxu1 %v11215_v62  ;;  %7408 = vmatpush3.bf16.msra.mxu0 %v7407_v33  ;;  %v11243_v62 = vld [vmem:[#allocation35_spill] sm:$0xff] }
 0x183   :  { %7432 = vmatpush3.bf16.msra.mxu1 %v11180_v39  ;;  %3762 = vmatprep.mubr.f32.mxu1 %v11218_v45  ;;  %v11224_v39 = vand.u32 4294901760, %v9728_v61  ;;  %v11229_v61 = vand.u32 4294901760, %v9760_v15  ;;  %v11233_v15 = vand.u32 4294901760, %v9856_v13  ;;  %v11237_v13 = vand.u32 4294901760, %v9900_v26 }
 0x184   :  { %7410 = vmatprep.subr.bf16.mxu0 %v7409_v16  ;;  %7434 = vmatprep.subr.bf16.mxu1 %v11181_v53  ;;  %v11225_v53 = vand.u32 4294901760, %v9957_v58  ;;  %v11232_v58 = vand.u32 4294901760, %v9836_v46  ;;  %v11236_v46 = vand.u32 4294901760, %v9898_v20 }
 0x185   :  { %3943 = vmatprep.mubr.f32.mxu0 %v11221_v48  ;;  %v7415_v23 = vpack.c.bf16 %v11224_v39, %v11223_v37  ;;  %v7423_v0 = vpack.c.bf16 %v11234_v57, %v11233_v15  ;;  %v7427_v35 = vpack.c.bf16 %v11239_v47, %v11237_v13  ;;  %v7599_v15 = vmov 0.0|0.0  }
 0x186   :  { %3766 = vmatmul.mubr.f32.gmra.mrb[62].mxu1 %v11222_v49  ;;  %7412 = vmatpush3.bf16.msra.mxu0 %v7411_v17  ;;  %v7421_v60 = vpack.c.bf16 %v11232_v58, %v11231_v56  ;;  %v4095_v49 = vld [vmem:[%s10550_s5 + $0x18] sm:$0xff]  ;;  %v4096_v58 = vld [vmem:[%s10550_s5 + $0x20] sm:$0xff] }
 0x187   :  { %7436 = vmatpush3.bf16.msra.mxu1 %v11186_v18  ;;  %3773 = vmatprep.mubr.f32.mxu1 %v11225_v53  ;;  %v7419_v18 = vpack.c.bf16 %v11230_v27, %v11229_v61  ;;  %v4120_v42 = vand.u32 4294901760, %v4095_v49 }
 0x188   :  { %7414 = vmatprep.subr.bf16.mxu0 %v7413_v25  ;;  %7438 = vmatprep.subr.bf16.mxu1 %v11188_v59 }
 0x189   :  { %v5709_v5 = vpop.f32.mrb[24].mxu0  ;;  %v10194_v56 = vsub.f32 %v4095_v49, %v4120_v42 }
 0x18a   :  { %3777 = vmatmul.mubr.f32.gmra.mrb[64].mxu1 %v11228_v51  ;;  %7416 = vmatpush3.bf16.msra.mxu0 %v7415_v23  ;;  %v5710_v12 = vpop.f32.mrb[25].mxu0 }
 0x18b   :  { %7440 = vmatpush3.bf16.msra.mxu1 %v11189_v55  ;;  %7418 = vmatprep.subr.bf16.mxu0 %v7417_v41  ;;  %v5711_v59 = vadd.f32 %v5710_v12, %v5709_v5  ;;  %v7425_v55 = vpack.c.bf16 %v11236_v46, %v11235_v43  ;;  %v4237_v43 = vand.u32 4294901760, %v10194_v56  ;;  %v4123_v46 = vand.u32 4294901760, %v4096_v58 }
 0x18c   :  { %7442 = vmatprep.subr.bf16.mxu1 %v11190_v6  ;;  %4061 = vmatprep.mubr.f32.mxu1 %v11221_v48  ;;  %v4094_v48 = vld [vmem:[%s10550_s5 + $0x10] sm:$0xff] }
 0x18d   :  { %v1683_v4 = vadd.f32 %v5711_v59, %v1531_v30  ;;  %v5712_v6 = vpop.f32.mrb[26].mxu0  ;;  %v4117_v53 = vand.u32 4294901760, %v4094_v48  ;;  %v4238_v47 = vsub.f32 %v10194_v56, %v4237_v43 }
 0x18e   :  { %7420 = vmatpush3.bf16.msra.mxu0 %v7419_v18  ;;  %v5713_v40 = vpop.f32.mrb[27].mxu0 }
 0x18f   :  { %7444 = vmatpush3.bf16.msra.mxu1 %v9662_v1  ;;  %7422 = vmatprep.subr.bf16.mxu0 %v7421_v60  ;;  %v5714_v9 = vadd.f32 %v5713_v40, %v5712_v6  ;;  %v10192_v27 = vsub.f32 %v4094_v48, %v4117_v53  ;;  %v4097_v60 = vld [vmem:[%s10550_s5 + $0x28] sm:$0xff] }
 0x190   :  { %7446 = vmatprep.subr.bf16.mxu1 %v9697_v7  ;;  %v4126_v6 = vand.u32 4294901760, %v4097_v60 }
 0x191   :  { %v1692_v1 = vadd.f32 %v5714_v9, %v1538_v8  ;;  %v5715_v19 = vpop.f32.mrb[28].mxu0  ;;  %v11242_v8 = vld [vmem:[#allocation30_spill] sm:$0xff] }
 0x192   :  { %7424 = vmatpush3.bf16.msra.mxu0 %v7423_v0  ;;  %v5716_v30 = vpop.f32.mrb[29].mxu0  ;;  %v4230_v0 = vand.u32 4294901760, %v10192_v27 }
 0x193   :  { %7448 = vmatpush3.bf16.msra.mxu1 %v11240_v54  ;;  %7426 = vmatprep.subr.bf16.mxu0 %v7425_v55  ;;  %v5717_v2 = vadd.f32 %v5716_v30, %v5715_v19  ;;  %v4098_v54 = vld [vmem:[%s10550_s5 + $0x30] sm:$0xff]  ;;  %v10224_v30 = vpack.c.bf16 %v4120_v42, %v4117_v53 }
 0x194   :  { %7450 = vmatprep.subr.bf16.mxu1 %v11195_v50  ;;  %v5750_v20 = vpop.f32.mrb[24].mxu1  ;;  %v4231_v44 = vsub.f32 %v10192_v27, %v4230_v0 }
 0x195   :  { %v5751_v3 = vpop.f32.mrb[25].mxu1  ;;  %v1701_v10 = vadd.f32 %v5717_v2, %v1545_v31  ;;  %v11244_v31 = vld [vmem:[#allocation38_spill] sm:$0xff]  ;;  %v10226_v2 = vsub.f32 %v4097_v60, %v4126_v6 }
 0x196   :  { %7428 = vmatpush3.bf16.msra.mxu0 %v7427_v35  ;;  %v5752_v7 = vadd.f32 %v5751_v3, %v5750_v20  ;;  %v10216_v35 = vsub.f32 %v4096_v58, %v4123_v46  ;;  %v4129_v3 = vand.u32 4294901760, %v4098_v54 }
 0x197   :  { %7452 = vmatpush3.bf16.msra.mxu1 %v11199_v38  ;;  %7461 = vmatprep.subr.bf16.mxu0 %v7599_v15 }
 0x198   :  { %7454 = vmatprep.subr.bf16.mxu1 %v11202_v36  ;;  %v1809_v26 = vadd.f32 %v5752_v7, %v1683_v4  ;;  %v5753_v33 = vpop.f32.mrb[26].mxu1 }
 0x199   :  { %3945 = vmatmul.mubr.f32.vlgmr.msra.gmra.mrb[66].mxu0 %v11241_v24  ;;  %v5754_v63 = vpop.f32.mrb[27].mxu1 }
 0x19a   :  { %3950 = vmatprep.mubr.f32.mxu0 %v11242_v8  ;;  %v5755_v52 = vadd.f32 %v5754_v63, %v5753_v33  ;;  %v4244_v33 = vand.u32 4294901760, %v10216_v35  ;;  %v4251_v63 = vand.u32 4294901760, %v10226_v2 }
 0x19b   :  { %7456 = vmatpush3.bf16.msra.mxu1 %v11207_v34  ;;  %v4092_v34 = vld [vmem:[%s10550_s5] sm:$0xff] }
 0x19c   :  { %7458 = vmatprep.subr.bf16.mxu1 %v11210_v22  ;;  %v1820_v50 = vadd.f32 %v5755_v52, %v1692_v1  ;;  %v5756_v16 = vpop.f32.mrb[28].mxu1  ;;  %v4111_v22 = vand.u32 4294901760, %v4092_v34  ;;  %v4099_v1 = vld [vmem:[%s10550_s5 + $0x38] sm:$0xff]  ;;  %v10233_v52 = vsub.f32 %v4098_v54, %v4129_v3 }
 0x19d   :  { %3952 = vmatmul.mubr.f32.gmra.mrb[68].mxu0 %v11243_v62  ;;  %v5757_v38 = vpop.f32.mrb[29].mxu1 }
 0x19e   :  { %3957 = vmatprep.mubr.f32.mxu0 %v11244_v31  ;;  %v5758_v36 = vadd.f32 %v5757_v38, %v5756_v16  ;;  %v10174_v28 = vsub.f32 %v4092_v34, %v4111_v22 }
 0x19f   :  { %7460 = vmatpush3.bf16.msra.mxu1 %v9903_v14  ;;  %v4093_v14 = vld [vmem:[%s10550_s5 + $0x8] sm:$0xff] }
 0x1a0   :  { %v10160_v29 = vadd.f32 %v5758_v36, %v1701_v10  ;;  %v4114_v17 = vand.u32 4294901760, %v4093_v14  ;;  %v4216_v39 = vand.u32 4294901760, %v10174_v28  ;;  %7473 = vmatprep.subr.bf16.mxu1 %v7599_v15  ;;  %v4232_v10 = vand.u32 4294901760, %v4231_v44  ;;  %v4091_v44 = vld [vmem:[%s10546_s1 + $0x10] sm:$0x7f] }
 0x1a1   :  { %3959 = vmatmul.mubr.f32.gmra.mrb[70].mxu0 %v11245_v21 }
 0x1a2   :  { %4063 = vmatmul.mubr.f32.vlgmr.msra.gmra.mrb[66].mxu1 %v11241_v24  ;;  %v10176_v32 = vsub.f32 %v4093_v14, %v4114_v17  ;;  %v4217_v51 = vsub.f32 %v10174_v28, %v4216_v39  ;;  %v10202_v12 = vpack.c.bf16 %v4114_v17, %v4111_v22  ;;  %v4258_v14 = vand.u32 4294901760, %v10233_v52 }
 0x1a3   :  { %4068 = vmatprep.mubr.f32.mxu1 %v11242_v8  ;;  %v4132_v8 = vand.u32 4294901760, %v4099_v1 }
 0x1a4   :  { %v4223_v23 = vand.u32 4294901760, %v10176_v32  ;;  %v4218_v59 = vand.u32 4294901760, %v4217_v51  ;;  %7463 = vmatpush3.bf16.msra.mxu0 %v10202_v12  ;;  %v4259_v48 = vsub.f32 %v10233_v52, %v4258_v14 }
 0x1a5   :  { %7464 = vmatprep.subr.bf16.mxu0 %v7599_v15  ;;  %v10249_v34 = vsub.f32 %v4099_v1, %v4132_v8  ;;  %v10264_v51 = vpack.c.bf16 %v4132_v8, %v4129_v3  ;;  %v4108_v1 = vsel %vm4100_vm0, %v4091_v44, 0  ;;  %v7489_v3 = vpack.c.bf16 %v10194_v56, %v10192_v27 }
 0x1a6   :  { %4070 = vmatmul.mubr.f32.gmra.mrb[68].mxu1 %v11243_v62  ;;  %v4224_v61 = vsub.f32 %v10176_v32, %v4223_v23  ;;  %v7516_v27 = vpack.c.bf16 %v4251_v63, %v4244_v33 }
 0x1a7   :  { %4075 = vmatprep.mubr.f32.mxu1 %v11244_v31  ;;  %v4245_v31 = vsub.f32 %v10216_v35, %v4244_v33  ;;  %v4265_v49 = vand.u32 4294901760, %v10249_v34  ;;  %v4085_v33 = vld [vmem:[%s10549_s4] sm:$0xff] }
 0x1a8   :  { %v4225_v57 = vand.u32 4294901760, %v4224_v61  ;;  %7466 = vmatpush3.bf16.msra.mxu0 %v10224_v30  ;;  %v4260_v61 = vand.u32 4294901760, %v4259_v48 }
 0x1a9   :  { %v5791_v45 = vpop.f32.mrb[30].mxu0  ;;  %7467 = vmatprep.subr.bf16.mxu0 %v7599_v15  ;;  %v4246_v17 = vand.u32 4294901760, %v4245_v31 }
 0x1aa   :  { %4077 = vmatmul.mubr.f32.gmra.mrb[70].mxu1 %v11245_v21  ;;  %v5792_v25 = vpop.f32.mrb[31].mxu0  ;;  %v7474_v13 = vpack.c.bf16 %v4225_v57, %v4218_v59  ;;  %v4252_v21 = vsub.f32 %v10226_v2, %v4251_v63  ;;  %v4090_v59 = vld [vmem:[%s10546_s1 + $0x8] sm:$0xff] }
 0x1ab   :  { %v5793_v37 = vadd.f32 %v5792_v25, %v5791_v45  ;;  %v4086_v63 = vld [vmem:[%s10549_s4 + $0x8] sm:$0xff] }
 0x1ac   :  { %7475 = vmatpush3.bf16.msra.mxu1 %v7474_v13  ;;  %v4253_v25 = vand.u32 4294901760, %v4252_v21  ;;  %v7486_v13 = vpack.c.bf16 %v10176_v32, %v10174_v28  ;;  %v7513_v28 = vpack.c.bf16 %v4237_v43, %v4230_v0 }
 0x1ad   :  { %v1999_v11 = vadd.f32 %v5793_v37, %v1809_v26  ;;  %v5794_v41 = vpop.f32.mrb[32].mxu0  ;;  %v4239_v26 = vand.u32 4294901760, %v4238_v47  ;;  %7476 = vmatprep.subr.bf16.mxu1 %v7599_v15 }
 0x1ae   :  { %v5795_v18 = vpop.f32.mrb[33].mxu0 }
 0x1af   :  { %v5796_v5 = vadd.f32 %v5795_v18, %v5794_v41  ;;  %v7477_v38 = vpack.c.bf16 %v4239_v26, %v4232_v10  ;;  %v7480_v41 = vpack.c.bf16 %v4253_v25, %v4246_v17  ;;  %v4266_v18 = vsub.f32 %v10249_v34, %v4265_v49 }
 0x1b0   :  { %v7495_v17 = vpack.c.bf16 %v10249_v34, %v10233_v52  ;;  %v4747_v34 = vand.u32 4294901760, %v4086_v63 }
 0x1b1   :  { %v2006_v55 = vadd.f32 %v5796_v5, %v1820_v50  ;;  %v5797_v4 = vpop.f32.mrb[34].mxu0  ;;  %v4089_v50 = vld [vmem:[%s10546_s1] sm:$0xff]  ;;  %7478 = vmatpush3.bf16.msra.mxu1 %v7477_v38  ;;  %v4267_v5 = vand.u32 4294901760, %v4266_v18 }
 0x1b2   :  { %v5798_v9 = vpop.f32.mrb[35].mxu0  ;;  %v4102_v45 = vsel %vm4100_vm0, %v4089_v50, 0  ;;  %7479 = vmatprep.subr.bf16.mxu1 %v7599_v15  ;;  %v7492_v50 = vpack.c.bf16 %v10226_v2, %v10216_v35  ;;  %v7519_v35 = vpack.c.bf16 %v4265_v49, %v4258_v14 }
 0x1b3   :  { %v5799_v19 = vadd.f32 %v5798_v9, %v5797_v4  ;;  %v10259_v37 = vand.u32 4294901760, %v4102_v45  ;;  %v7601_v4 = vmov 0.0  }
 0x1b4   :  { %v5832_v40 = vpop.f32.mrb[30].mxu1  ;;  %6457 = vmatprep.mubr.msk.f32.mxu0 %vm7600_vm1, %v7601_v4  ;;  %6482 = vmatprep.mubr.msk.f32.mxu1 %vm7600_vm1, %v7601_v4 }
 0x1b5   :  { %v5833_v20 = vpop.f32.mrb[31].mxu1  ;;  %v2013_v24 = vadd.f32 %v5799_v19, %v10160_v29  ;;  %v10244_v29 = vpack.c.bf16 %v4126_v6, %v4123_v46  ;;  %v10270_v60 = vsub.f32 %v4102_v45, %v10259_v37  ;;  %7481 = vmatpush3.bf16.msra.mxu1 %v7480_v41  ;;  %v4105_v6 = vsel %vm4100_vm0, %v4090_v59, 0  ;;  %v4087_v59 = vld [vmem:[%s10549_s4 + $0x10] sm:$0xff] }
 0x1b6   :  { %v5834_v7 = vadd.f32 %v5833_v20, %v5832_v40  ;;  %7482 = vmatprep.subr.bf16.mxu1 %v7599_v15  ;;  %v10289_v9 = vand.u32 4294901760, %v4105_v6  ;;  %v10301_v19 = vand.u32 4294901760, %v4108_v1 }
 0x1b7   :  { %7469 = vmatpush3.bf16.msra.mxu0 %v10244_v29  ;;  %v4185_v46 = vand.u32 4294901760, %v10270_v60 }
 0x1b8   :  { %v10238_v16 = vadd.f32 %v5834_v7, %v1999_v11  ;;  %v5835_v62 = vpop.f32.mrb[32].mxu1  ;;  %7470 = vmatprep.subr.bf16.mxu0 %v7599_v15  ;;  %v10298_v54 = vsub.f32 %v4105_v6, %v10289_v9  ;;  %v10309_v7 = vsub.f32 %v4108_v1, %v10301_v19 }
 0x1b9   :  { %v5836_v36 = vpop.f32.mrb[33].mxu1  ;;  %v4186_v40 = vsub.f32 %v10270_v60, %v4185_v46 }
 0x1ba   :  { %v5837_v22 = vadd.f32 %v5836_v36, %v5835_v62  ;;  %v4195_v20 = vand.u32 4294901760, %v10298_v54  ;;  %v4205_v26 = vand.u32 4294901760, %v10309_v7 }
 0x1bb   :  { %7472 = vmatpush3.bf16.msra.mxu0 %v10264_v51  ;;  %v4187_v47 = vand.u32 4294901760, %v4186_v40  ;;  %v4750_v40 = vand.u32 4294901760, %v4087_v59 }
 0x1bc   :  { %v10261_v53 = vadd.f32 %v5837_v22, %v2006_v55  ;;  %v5838_v42 = vpop.f32.mrb[34].mxu1  ;;  %7485 = vmatprep.subr.bf16.mxu0 %v7599_v15  ;;  %v7483_v55 = vpack.c.bf16 %v4267_v5, %v4260_v61  ;;  %v4196_v10 = vsub.f32 %v10298_v54, %v4195_v20  ;;  %v4206_v62 = vsub.f32 %v10309_v7, %v4205_v26 }
 0x1bd   :  { %v5839_v11 = vpop.f32.mrb[35].mxu1 }
 0x1be   :  { %v5840_v58 = vadd.f32 %v5839_v11, %v5838_v42  ;;  %7484 = vmatpush3.bf16.msra.mxu1 %v7483_v55  ;;  %6458 = vmatmul.mubr.f32.vlgmr.msra.gmra.mrb[72].mxu0 %v4187_v47  ;;  %v4207_v36 = vand.u32 4294901760, %v4206_v62  ;;  %v7510_v42 = vpack.c.bf16 %v4223_v23, %v4216_v39 }
 0x1bf   :  { %7497 = vmatprep.subr.bf16.mxu1 %v7599_v15  ;;  %7487 = vmatpush3.bf16.msra.mxu0 %v7486_v13 }
 0x1c0   :  { %v10276_v57 = vadd.f32 %v5840_v58, %v2013_v24  ;;  %7488 = vmatprep.subr.bf16.mxu0 %v7599_v15  ;;  %6460 = vmatprep.mubr.msk.f32.mxu0 %vm7600_vm1, %v7601_v4  ;;  %v4197_v24 = vand.u32 4294901760, %v4196_v10 }
 0x1c1   :  { %6483 = vmatmul.mubr.f32.vlgmr.msra.gmra.mrb[72].mxu1 %v10259_v37 }
 0x1c2   :  { %7499 = vmatpush3.bf16.msra.mxu1 %v10202_v12  ;;  %6485 = vmatprep.mubr.msk.f32.mxu1 %vm7600_vm1, %v7601_v4 }
 0x1c3   :  { %7500 = vmatprep.subr.bf16.mxu1 %v7599_v15  ;;  %7490 = vmatpush3.bf16.msra.mxu0 %v7489_v3 }
 0x1c4   :  { %7491 = vmatprep.subr.bf16.mxu0 %v7599_v15  ;;  %6461 = vmatmul.mubr.f32.gmra.mrb[74].mxu0 %v4197_v24 }
 0x1c5   :  { %6486 = vmatmul.mubr.f32.gmra.mrb[74].mxu1 %v10289_v9  ;;  %6463 = vmatprep.mubr.msk.f32.mxu0 %vm7600_vm1, %v7601_v4 }
 0x1c6   :  { %7502 = vmatpush3.bf16.msra.mxu1 %v10224_v30  ;;  %6488 = vmatprep.mubr.msk.f32.mxu1 %vm7600_vm1, %v7601_v4 }
 0x1c7   :  { %7503 = vmatprep.subr.bf16.mxu1 %v7599_v15  ;;  %7493 = vmatpush3.bf16.msra.mxu0 %v7492_v50 }
 0x1c8   :  { %7494 = vmatprep.subr.bf16.mxu0 %v7599_v15  ;;  %6464 = vmatmul.mubr.f32.gmra.mrb[76].mxu0 %v4207_v36 }
 0x1c9   :  { %6489 = vmatmul.mubr.f32.gmra.mrb[76].mxu1 %v10301_v19  ;;  %6507 = vmatprep.mubr.msk.f32.mxu0 %vm7600_vm1, %v7601_v4 }
 0x1ca   :  { %v5873_v8 = vpop.f32.mrb[36].mxu0  ;;  %7505 = vmatpush3.bf16.msra.mxu1 %v10244_v29  ;;  %6532 = vmatprep.mubr.msk.f32.mxu1 %vm7600_vm1, %v7601_v4 }
 0x1cb   :  { %v5874_v38 = vpop.f32.mrb[37].mxu0  ;;  %7506 = vmatprep.subr.bf16.mxu1 %v7599_v15  ;;  %7496 = vmatpush3.bf16.msra.mxu0 %v7495_v17 }
 0x1cc   :  { %v5875_v31 = vadd.f32 %v5874_v38, %v5873_v8  ;;  %7509 = vmatprep.subr.bf16.mxu0 %v7599_v15 }
 0x1ce   :  { %v2243_v21 = vadd.f32 %v5875_v31, %v10238_v16  ;;  %v5876_v22 = vpop.f32.mrb[38].mxu0  ;;  %7508 = vmatpush3.bf16.msra.mxu1 %v10264_v51  ;;  %6508 = vmatmul.mubr.f32.vlgmr.msra.gmra.mrb[78].mxu0 %v10270_v60 }
 0x1cf   :  { %v5877_v45 = vpop.f32.mrb[39].mxu0  ;;  %7521 = vmatprep.subr.bf16.mxu1 %v7599_v15  ;;  %7511 = vmatpush3.bf16.msra.mxu0 %v7510_v42 }
 0x1d0   :  { %v5878_v25 = vadd.f32 %v5877_v45, %v5876_v22  ;;  %7512 = vmatprep.subr.bf16.mxu0 %v7599_v15  ;;  %6510 = vmatprep.mubr.msk.f32.mxu0 %vm7600_vm1, %v7601_v4 }
 0x1d1   :  { %6533 = vmatmul.mubr.f32.vlgmr.msra.gmra.mrb[78].mxu1 %v4185_v46 }
 0x1d2   :  { %v2258_v16 = vadd.f32 %v5878_v25, %v10261_v53  ;;  %v5879_v48 = vpop.f32.mrb[40].mxu0  ;;  %7523 = vmatpush3.bf16.msra.mxu1 %v10202_v12  ;;  %6535 = vmatprep.mubr.msk.f32.mxu1 %vm7600_vm1, %v7601_v4 }
 0x1d3   :  { %v5880_v41 = vpop.f32.mrb[41].mxu0  ;;  %7524 = vmatprep.subr.bf16.mxu1 %v7599_v15  ;;  %6511 = vmatmul.mubr.f32.gmra.mrb[80].mxu0 %v10298_v54  ;;  %v10437_v54 = vsub.f32 %v4087_v59, %v4750_v40 }
 0x1d4   :  { %v5914_v11 = vpop.f32.mrb[36].mxu1  ;;  %v5881_v61 = vadd.f32 %v5880_v41, %v5879_v48  ;;  %7514 = vmatpush3.bf16.msra.mxu0 %v7513_v28  ;;  %6513 = vmatprep.mubr.msk.f32.mxu0 %vm7600_vm1, %v7601_v4 }
 0x1d5   :  { %v5915_v18 = vpop.f32.mrb[37].mxu1  ;;  %6536 = vmatmul.mubr.f32.gmra.mrb[80].mxu1 %v4195_v20  ;;  %7515 = vmatprep.subr.bf16.mxu0 %v7599_v15  ;;  %v4859_v24 = vand.u32 4294901760, %v10437_v54 }
 0x1d6   :  { %v5916_v58 = vadd.f32 %v5915_v18, %v5914_v11  ;;  %v2273_v53 = vadd.f32 %v5881_v61, %v10276_v57  ;;  %7526 = vmatpush3.bf16.msra.mxu1 %v10224_v30  ;;  %6538 = vmatprep.mubr.msk.f32.mxu1 %vm7600_vm1, %v7601_v4  ;;  %v4088_v57 = vld [vmem:[%s10549_s4 + $0x18] sm:$0xff] }
 0x1d7   :  { %7527 = vmatprep.subr.bf16.mxu1 %v7599_v15  ;;  %6514 = vmatmul.mubr.f32.gmra.mrb[82].mxu0 %v10309_v7  ;;  %v4860_v36 = vsub.f32 %v10437_v54, %v4859_v24 }
 0x1d8   :  { %v2505_v32 = vadd.f32 %v5916_v58, %v2243_v21  ;;  %v5917_v39 = vpop.f32.mrb[38].mxu1  ;;  %7517 = vmatpush3.bf16.msra.mxu0 %v7516_v27  ;;  %6557 = vmatprep.mubr.msk.f32.mxu0 %vm7600_vm1, %v7601_v4 }
 0x1d9   :  { %v5918_v23 = vpop.f32.mrb[39].mxu1  ;;  %6539 = vmatmul.mubr.f32.gmra.mrb[82].mxu1 %v4205_v26  ;;  %7518 = vmatprep.subr.bf16.mxu0 %v7599_v15  ;;  %v4861_v25 = vand.u32 4294901760, %v4860_v36 }
 0x1da   :  { %v5919_v60 = vadd.f32 %v5918_v23, %v5917_v39  ;;  %7529 = vmatpush3.bf16.msra.mxu1 %v10244_v29  ;;  %6582 = vmatprep.mubr.msk.f32.mxu1 %vm7600_vm1, %v7601_v4  ;;  %v4744_v29 = vand.u32 4294901760, %v4085_v33 }
 0x1db   :  { %7530 = vmatprep.subr.bf16.mxu1 %v7599_v15 }
 0x1dc   :  { %v2512_v56 = vadd.f32 %v5919_v60, %v2258_v16  ;;  %v5920_v12 = vpop.f32.mrb[40].mxu1  ;;  %7520 = vmatpush3.bf16.msra.mxu0 %v7519_v35  ;;  %v10419_v49 = vsub.f32 %v4085_v33, %v4744_v29 }
 0x1dd   :  { %v5921_v0 = vpop.f32.mrb[41].mxu1  ;;  %7533 = vmatprep.subr.bf16.mxu0 %v7599_v15 }
 0x1de   :  { %v5922_v43 = vadd.f32 %v5921_v0, %v5920_v12  ;;  %7532 = vmatpush3.bf16.msra.mxu1 %v10264_v51  ;;  %v4845_v55 = vand.u32 4294901760, %v10419_v49 }
 0x1df   :  { %7539 = vmatprep.subr.bf16.mxu1 %v7599_v15  ;;  %6558 = vmatmul.mubr.f32.vlgmr.msra.gmra.mrb[84].mxu0 %v10259_v37 }
 0x1e0   :  { %v2519_v30 = vadd.f32 %v5922_v43, %v2273_v53  ;;  %6560 = vmatprep.mubr.msk.f32.mxu0 %vm7600_vm1, %v7601_v4  ;;  %v4846_v44 = vsub.f32 %v10419_v49, %v4845_v55  ;;  %v10447_v53 = vpack.c.bf16 %v4747_v34, %v4744_v29 }
 0x1e1   :  { %6583 = vmatmul.mubr.f32.vlgmr.msra.gmra.mrb[84].mxu1 %v10259_v37  ;;  %v10421_v37 = vsub.f32 %v4086_v63, %v4747_v34 }
 0x1e2   :  { %6585 = vmatprep.mubr.msk.f32.mxu1 %vm7600_vm1, %v7601_v4  ;;  %v4847_v10 = vand.u32 4294901760, %v4846_v44  ;;  %7535 = vmatpush3.bf16.msra.mxu0 %v10447_v53 }
 0x1e3   :  { %6561 = vmatmul.mubr.f32.gmra.mrb[86].mxu0 %v10289_v9  ;;  %v4852_v6 = vand.u32 4294901760, %v10421_v37  ;;  %7536 = vmatprep.subr.bf16.mxu0 %v7599_v15  ;;  %v7546_v39 = vpack.c.bf16 %v10421_v37, %v10419_v49 }
 0x1e4   :  { %6563 = vmatprep.mubr.msk.f32.mxu0 %vm7600_vm1, %v7601_v4 }
 0x1e5   :  { %6586 = vmatmul.mubr.f32.gmra.mrb[86].mxu1 %v10289_v9  ;;  %v4753_v9 = vand.u32 4294901760, %v4088_v57  ;;  %v4853_v47 = vsub.f32 %v10421_v37, %v4852_v6  ;;  %v10459_v33 = vpack.c.bf16 %v4852_v6, %v4845_v55 }
 0x1e6   :  { %6588 = vmatprep.mubr.msk.f32.mxu1 %vm7600_vm1, %v7601_v4 }
 0x1e7   :  { %6564 = vmatmul.mubr.f32.gmra.mrb[88].mxu0 %v10301_v19  ;;  %v10439_v1 = vsub.f32 %v4088_v57, %v4753_v9  ;;  %v4854_v26 = vand.u32 4294901760, %v4853_v47 }
 0x1e8   :  { %6599 = vmatprep.mubr.msk.f32.mxu0 %vm7600_vm1, %v7601_v4 }
 0x1e9   :  { %6589 = vmatmul.mubr.f32.gmra.mrb[88].mxu1 %v10301_v19  ;;  %v4866_v8 = vand.u32 4294901760, %v10439_v1  ;;  %v7540_v31 = vpack.c.bf16 %v4854_v26, %v4847_v10  ;;  %v7549_v60 = vpack.c.bf16 %v10439_v1, %v10437_v54 }
 0x1ea   :  { %v5955_v2 = vpop.f32.mrb[42].mxu0  ;;  %6616 = vmatprep.mubr.msk.f32.mxu1 %vm7600_vm1, %v7601_v4 }
 0x1eb   :  { %v5956_v52 = vpop.f32.mrb[43].mxu0  ;;  %v4867_v21 = vsub.f32 %v10439_v1, %v4866_v8  ;;  %7541 = vmatpush3.bf16.msra.mxu1 %v7540_v31 }
 0x1ec   :  { %v5957_v14 = vadd.f32 %v5956_v52, %v5955_v2  ;;  %7542 = vmatprep.subr.bf16.mxu1 %v7599_v15 }
 0x1ed   :  { %v4868_v16 = vand.u32 4294901760, %v4867_v21 }
 0x1ee   :  { %v2657_v51 = vadd.f32 %v5957_v14, %v2505_v32  ;;  %v10451_v32 = vpack.c.bf16 %v4753_v9, %v4750_v40 }
 0x1ef   :  { %v5958_v5 = vpop.f32.mrb[44].mxu0  ;;  %v7543_v11 = vpack.c.bf16 %v4868_v16, %v4861_v25 }
 0x1f0   :  { %v5959_v46 = vpop.f32.mrb[45].mxu0  ;;  %7538 = vmatpush3.bf16.msra.mxu0 %v10451_v32 }
 0x1f1   :  { %v5960_v13 = vadd.f32 %v5959_v46, %v5958_v5  ;;  %7544 = vmatpush3.bf16.msra.mxu1 %v7543_v11  ;;  %7545 = vmatprep.subr.bf16.mxu0 %v7599_v15  ;;  %v10461_v5 = vpack.c.bf16 %v4866_v8, %v4859_v24 }
 0x1f2   :  { %7551 = vmatprep.subr.bf16.mxu1 %v7599_v15 }
 0x1f3   :  { %v2666_v19 = vadd.f32 %v5960_v13, %v2512_v56  ;;  %v5961_v20 = vpop.f32.mrb[46].mxu0 }
 0x1f4   :  { %v5996_v3 = vpop.f32.mrb[42].mxu1  ;;  %v5962_v7 = vpop.f32.mrb[47].mxu0 }
 0x1f5   :  { %v5963_v50 = vadd.f32 %v5962_v7, %v5961_v20  ;;  %v5997_v62 = vpop.f32.mrb[43].mxu1 }
 0x1f6   :  { %v5998_v38 = vadd.f32 %v5997_v62, %v5996_v3 }
 0x1f7   :  { %v2675_v22 = vadd.f32 %v5963_v50, %v2519_v30 }
 0x1f8   :  { %v2783_v17 = vadd.f32 %v5998_v38, %v2657_v51  ;;  %v5999_v45 = vpop.f32.mrb[44].mxu1 }
 0x1f9   :  { %v6000_v48 = vpop.f32.mrb[45].mxu1 }
 0x1fa   :  { %v6001_v42 = vadd.f32 %v6000_v48, %v5999_v45 }
 0x1fc   :  { %v2794_v41 = vadd.f32 %v6001_v42, %v2666_v19 }
 0x1ff   :  { %v6002_v61 = vpop.f32.mrb[46].mxu1 }
 0x200   :  { %v6003_v18 = vpop.f32.mrb[47].mxu1 }
 0x201   :  { %v6004_v58 = vadd.f32 %v6003_v18, %v6002_v61 }
 0x203   :  { %v2805_v28 = vadd.f32 %v6004_v58, %v2675_v22 }
 0x20c   :  { %v6037_v23 = vpop.f32.mrb[48].mxu0 }
 0x20d   :  { %v6038_v27 = vpop.f32.mrb[49].mxu0 }
 0x20e   :  { %v6039_v56 = vadd.f32 %v6038_v27, %v6037_v23 }
 0x210   :  { %v2973_v12 = vadd.f32 %v6039_v56, %v2783_v17  ;;  %v6040_v0 = vpop.f32.mrb[50].mxu0 }
 0x211   :  { %v6041_v43 = vpop.f32.mrb[51].mxu0 }
 0x212   :  { %v6042_v35 = vadd.f32 %v6041_v43, %v6040_v0 }
 0x214   :  { %v2980_v30 = vadd.f32 %v6042_v35, %v2794_v41  ;;  %v6043_v2 = vpop.f32.mrb[52].mxu0 }
 0x215   :  { %v6078_v63 = vpop.f32.mrb[48].mxu1  ;;  %v6044_v52 = vpop.f32.mrb[53].mxu0 }
 0x216   :  { %v6045_v29 = vadd.f32 %v6044_v52, %v6043_v2  ;;  %v6079_v34 = vpop.f32.mrb[49].mxu1 }
 0x217   :  { %v6080_v14 = vadd.f32 %v6079_v34, %v6078_v63 }
 0x218   :  { %v2987_v51 = vadd.f32 %v6045_v29, %v2805_v28 }
 0x219   :  { %v3091_v59 = vadd.f32 %v6080_v14, %v2973_v12  ;;  %v6081_v57 = vpop.f32.mrb[50].mxu1 }
 0x21a   :  { %v6082_v46 = vpop.f32.mrb[51].mxu1 }
 0x21b   :  { %v6083_v40 = vadd.f32 %v6082_v46, %v6081_v57 }
 0x21d   :  { %v3098_v9 = vadd.f32 %v6083_v40, %v2980_v30  ;;  %v6084_v13 = vpop.f32.mrb[52].mxu1 }
 0x21e   :  { %v6085_v44 = vpop.f32.mrb[53].mxu1 }
 0x21f   :  { %v6086_v47 = vadd.f32 %v6085_v44, %v6084_v13 }
 0x221   :  { %v3105_v19 = vadd.f32 %v6086_v47, %v2987_v51 }
 0x22c   :  { %v6119_v20 = vpop.f32.mrb[54].mxu0 }
 0x22d   :  { %v6120_v55 = vpop.f32.mrb[55].mxu0 }
 0x22e   :  { %v6121_v6 = vadd.f32 %v6120_v55, %v6119_v20 }
 0x230   :  { %v3217_v3 = vadd.f32 %v6121_v6, %v3091_v59  ;;  %v6122_v7 = vpop.f32.mrb[56].mxu0 }
 0x231   :  { %v6123_v10 = vpop.f32.mrb[57].mxu0 }
 0x232   :  { %v6124_v26 = vadd.f32 %v6123_v10, %v6122_v7 }
 0x234   :  { %v3232_v50 = vadd.f32 %v6124_v26, %v3098_v9  ;;  %v6125_v62 = vpop.f32.mrb[58].mxu0 }
 0x235   :  { %v6160_v24 = vpop.f32.mrb[54].mxu1  ;;  %v6126_v8 = vpop.f32.mrb[59].mxu0 }
 0x236   :  { %v6127_v38 = vadd.f32 %v6126_v8, %v6125_v62  ;;  %v6161_v31 = vpop.f32.mrb[55].mxu1 }
 0x237   :  { %v6162_v36 = vadd.f32 %v6161_v31, %v6160_v24 }
 0x238   :  { %v3247_v21 = vadd.f32 %v6127_v38, %v3105_v19 }
 0x239   :  { %v3479_v22 = vadd.f32 %v6162_v36, %v3217_v3  ;;  %v6163_v17 = vpop.f32.mrb[56].mxu1 }
 0x23a   :  { %v6164_v45 = vpop.f32.mrb[57].mxu1 }
 0x23b   :  { %v6165_v25 = vadd.f32 %v6164_v45, %v6163_v17 }
 0x23d   :  { %v3486_v16 = vadd.f32 %v6165_v25, %v3232_v50  ;;  %v6166_v48 = vpop.f32.mrb[58].mxu1 }
 0x23e   :  { %v6167_v42 = vpop.f32.mrb[59].mxu1 }
 0x23f   :  { %v6168_v11 = vadd.f32 %v6167_v42, %v6166_v48 }
 0x241   :  { %v3493_v41 = vadd.f32 %v6168_v11, %v3247_v21 }
 0x24c   :  { %v6201_v61 = vpop.f32.mrb[60].mxu0 }
 0x24d   :  { %v6202_v18 = vpop.f32.mrb[61].mxu0 }
 0x24e   :  { %v6203_v58 = vadd.f32 %v6202_v18, %v6201_v61 }
 0x250   :  { %v3631_v28 = vadd.f32 %v6203_v58, %v3479_v22  ;;  %v6204_v23 = vpop.f32.mrb[62].mxu0 }
 0x251   :  { %v6205_v27 = vpop.f32.mrb[63].mxu0 }
 0x252   :  { %v6206_v56 = vadd.f32 %v6205_v27, %v6204_v23 }
 0x254   :  { %v3640_v12 = vadd.f32 %v6206_v56, %v3486_v16  ;;  %v6207_v0 = vpop.f32.mrb[64].mxu0 }
 0x255   :  { %v6242_v43 = vpop.f32.mrb[60].mxu1  ;;  %v6208_v35 = vpop.f32.mrb[65].mxu0 }
 0x256   :  { %v6209_v30 = vadd.f32 %v6208_v35, %v6207_v0  ;;  %v6243_v2 = vpop.f32.mrb[61].mxu1 }
 0x257   :  { %v6244_v63 = vadd.f32 %v6243_v2, %v6242_v43 }
 0x258   :  { %v3649_v52 = vadd.f32 %v6209_v30, %v3493_v41 }
 0x259   :  { %v3757_v29 = vadd.f32 %v6244_v63, %v3631_v28  ;;  %v6245_v34 = vpop.f32.mrb[62].mxu1 }
 0x25a   :  { %v6246_v14 = vpop.f32.mrb[63].mxu1 }
 0x25b   :  { %v6247_v51 = vadd.f32 %v6246_v14, %v6245_v34 }
 0x25d   :  { %v3768_v59 = vadd.f32 %v6247_v51, %v3640_v12  ;;  %v6248_v57 = vpop.f32.mrb[64].mxu1 }
 0x25e   :  { %v6249_v46 = vpop.f32.mrb[65].mxu1 }
 0x25f   :  { %v6250_v40 = vadd.f32 %v6249_v46, %v6248_v57 }
 0x261   :  { %v3779_v9 = vadd.f32 %v6250_v40, %v3649_v52 }
 0x26c   :  { %v6283_v13 = vpop.f32.mrb[66].mxu0 }
 0x26d   :  { %v6284_v44 = vpop.f32.mrb[67].mxu0 }
 0x26e   :  { %v6285_v47 = vadd.f32 %v6284_v44, %v6283_v13 }
 0x270   :  { %v3947_v19 = vadd.f32 %v6285_v47, %v3757_v29  ;;  %v6286_v20 = vpop.f32.mrb[68].mxu0 }
 0x271   :  { %v6287_v55 = vpop.f32.mrb[69].mxu0 }
 0x272   :  { %v6288_v6 = vadd.f32 %v6287_v55, %v6286_v20 }
 0x274   :  { %v3954_v3 = vadd.f32 %v6288_v6, %v3768_v59  ;;  %v6289_v7 = vpop.f32.mrb[70].mxu0 }
 0x275   :  { %v6324_v10 = vpop.f32.mrb[66].mxu1  ;;  %v6290_v26 = vpop.f32.mrb[71].mxu0 }
 0x276   :  { %v6291_v50 = vadd.f32 %v6290_v26, %v6289_v7  ;;  %v6325_v62 = vpop.f32.mrb[67].mxu1 }
 0x277   :  { %v6326_v24 = vadd.f32 %v6325_v62, %v6324_v10 }
 0x278   :  { %v3961_v8 = vadd.f32 %v6291_v50, %v3779_v9 }
 0x279   :  { %v4065_v38 = vadd.f32 %v6326_v24, %v3947_v19  ;;  %v6327_v31 = vpop.f32.mrb[68].mxu1 }
 0x27a   :  { %v6328_v36 = vpop.f32.mrb[69].mxu1 }
 0x27b   :  { %v4082_v21 = vmax.f32 %v4065_v38, 0.0  ;;  %v6329_v22 = vadd.f32 %v6328_v36, %v6327_v31 }
 0x27d   :  { %v4735_v17 = vsel %vm4733_vm2, %v4082_v21, 0  ;;  %v4072_v45 = vadd.f32 %v6329_v22, %v3954_v3  ;;  %v6330_v25 = vpop.f32.mrb[70].mxu1 }
 0x27e   :  { %v10464_v16 = vand.u32 4294901760, %v4735_v17  ;;  %v6331_v48 = vpop.f32.mrb[71].mxu1 }
 0x27f   :  { %v4083_v42 = vmax.f32 %v4072_v45, 0.0  ;;  %v6332_v11 = vadd.f32 %v6331_v48, %v6330_v25 }
 0x280   :  { %v4813_v41 = vsub.f32 %v4735_v17, %v10464_v16  ;;  %6617 = vmatmul.mubr.f32.vlgmr.msra.gmra.mrb[90].mxu1 %v10464_v16 }
 0x281   :  { %v4738_v61 = vsel %vm4733_vm2, %v4083_v42, 0  ;;  %v4079_v18 = vadd.f32 %v6332_v11, %v3961_v8  ;;  %6619 = vmatprep.mubr.msk.f32.mxu1 %vm7600_vm1, %v7601_v4  ;;  %7553 = vmatpush3.bf16.msra.mxu1 %v10447_v53 }
 0x282   :  { %v4814_v58 = vand.u32 4294901760, %v4813_v41  ;;  %v10472_v28 = vand.u32 4294901760, %v4738_v61  ;;  %7554 = vmatprep.subr.bf16.mxu1 %v7599_v15 }
 0x283   :  { %v4084_v23 = vmax.f32 %v4079_v18, 0.0 }
 0x284   :  { %v4815_v27 = vsub.f32 %v4813_v41, %v4814_v58  ;;  %v4823_v56 = vsub.f32 %v4738_v61, %v10472_v28  ;;  %6620 = vmatmul.mubr.f32.gmra.mrb[92].mxu1 %v10472_v28 }
 0x285   :  { %v4741_v12 = vsel %vm4733_vm2, %v4084_v23, 0  ;;  %6622 = vmatprep.mubr.msk.f32.mxu1 %vm7600_vm1, %v7601_v4  ;;  %7556 = vmatpush3.bf16.msra.mxu1 %v10451_v32 }
 0x286   :  { %v4816_v0 = vand.u32 4294901760, %v4815_v27  ;;  %v4832_v43 = vand.u32 4294901760, %v4741_v12  ;;  %v4824_v35 = vand.u32 4294901760, %v4823_v56  ;;  %7563 = vmatprep.subr.bf16.mxu1 %v7599_v15 }
 0x288   :  { %v4833_v30 = vsub.f32 %v4741_v12, %v4832_v43  ;;  %6600 = vmatmul.mubr.f32.vlgmr.msra.gmra.mrb[90].mxu0 %v4816_v0  ;;  %6623 = vmatmul.mubr.f32.gmra.mrb[94].mxu1 %v4832_v43  ;;  %v4825_v2 = vsub.f32 %v4823_v56, %v4824_v35 }
 0x289   :  { %7547 = vmatpush3.bf16.msra.mxu0 %v7546_v39  ;;  %6602 = vmatprep.mubr.msk.f32.mxu0 %vm7600_vm1, %v7601_v4 }
 0x28a   :  { %6650 = vmatprep.mubr.msk.f32.mxu1 %vm7600_vm1, %v7601_v4  ;;  %v4826_v63 = vand.u32 4294901760, %v4825_v2  ;;  %7548 = vmatprep.subr.bf16.mxu0 %v7599_v15  ;;  %v4834_v52 = vand.u32 4294901760, %v4833_v30 }
 0x28c   :  { %6603 = vmatmul.mubr.f32.gmra.mrb[92].mxu0 %v4826_v63  ;;  %6651 = vmatmul.mubr.f32.vlgmr.msra.gmra.mrb[96].mxu1 %v4814_v58  ;;  %v4835_v29 = vsub.f32 %v4833_v30, %v4834_v52 }
 0x28d   :  { %7550 = vmatpush3.bf16.msra.mxu0 %v7549_v60  ;;  %6605 = vmatprep.mubr.msk.f32.mxu0 %vm7600_vm1, %v7601_v4 }
 0x28e   :  { %6653 = vmatprep.mubr.msk.f32.mxu1 %vm7600_vm1, %v7601_v4  ;;  %v4836_v49 = vand.u32 4294901760, %v4835_v29  ;;  %7565 = vmatpush3.bf16.msra.mxu1 %v10447_v53 }
 0x28f   :  { %7557 = vmatprep.subr.bf16.mxu0 %v7599_v15  ;;  %7566 = vmatprep.subr.bf16.mxu1 %v7599_v15 }
 0x290   :  { %6606 = vmatmul.mubr.f32.gmra.mrb[94].mxu0 %v4836_v49  ;;  %6654 = vmatmul.mubr.f32.gmra.mrb[98].mxu1 %v4824_v35 }
 0x291   :  { %6633 = vmatprep.mubr.msk.f32.mxu0 %vm7600_vm1, %v7601_v4  ;;  %6656 = vmatprep.mubr.msk.f32.mxu1 %vm7600_vm1, %v7601_v4  ;;  %v4189_v37 = vpop.f32.mrb[72].mxu0 }
 0x292   :  { %7568 = vmatpush3.bf16.msra.mxu1 %v10451_v32  ;;  %v6459_v1 = vpop.f32.mrb[73].mxu0 }
 0x294   :  { %6634 = vmatmul.mubr.f32.vlgmr.msra.gmra.mrb[96].mxu0 %v4813_v41  ;;  %6657 = vmatmul.mubr.f32.gmra.mrb[100].mxu1 %v4834_v52  ;;  %v4320_v54 = vpop.f32.mrb[72].mxu1 }
 0x295   :  { %7559 = vmatpush3.bf16.msra.mxu0 %v10459_v33  ;;  %6636 = vmatprep.mubr.msk.f32.mxu0 %vm7600_vm1, %v7601_v4  ;;  %v4321_v53 = vadd.f32 %v4320_v54, %v4189_v37  ;;  %v6484_v32 = vpop.f32.mrb[73].mxu1 }
 0x296   :  { %6684 = vmatprep.mubr.msk.f32.mxu1 %vm7600_vm1, %v7601_v4  ;;  %7560 = vmatprep.subr.bf16.mxu0 %v7599_v15 }
 0x297   :  { %v4199_v60 = vpop.f32.mrb[74].mxu0 }
 0x298   :  { %6637 = vmatmul.mubr.f32.gmra.mrb[98].mxu0 %v4823_v56  ;;  %6685 = vmatmul.mubr.f32.vlgmr.msra.gmra.mrb[102].mxu1 %v10464_v16  ;;  %v4326_v15 = vpop.f32.mrb[74].mxu1  ;;  %v6462_v33 = vpop.f32.mrb[75].mxu0 }
 0x299   :  { %7562 = vmatpush3.bf16.msra.mxu0 %v10461_v5  ;;  %6639 = vmatprep.mubr.msk.f32.mxu0 %vm7600_vm1, %v7601_v4  ;;  %v6487_v39 = vpop.f32.mrb[75].mxu1  ;;  %v4327_v5 = vadd.f32 %v4326_v15, %v4199_v60 }
 0x29a   :  { %6687 = vmatprep.mubr.msk.f32.mxu1 %vm7600_vm1, %v7601_v4 }
 0x29b   :  { %v4209_v34 = vpop.f32.mrb[76].mxu0 }
 0x29c   :  { %6640 = vmatmul.mubr.f32.gmra.mrb[100].mxu0 %v4833_v30  ;;  %6688 = vmatmul.mubr.f32.gmra.mrb[104].mxu1 %v10472_v28  ;;  %v6465_v14 = vpop.f32.mrb[77].mxu0  ;;  %v4332_v51 = vpop.f32.mrb[76].mxu1 }
 0x29d   :  { %6667 = vmatprep.mubr.msk.f32.mxu0 %vm7600_vm1, %v7601_v4  ;;  %6690 = vmatprep.mubr.msk.f32.mxu1 %vm7600_vm1, %v7601_v4  ;;  %v4333_v59 = vadd.f32 %v4332_v51, %v4209_v34  ;;  %v6490_v57 = vpop.f32.mrb[77].mxu1 }
 0x2a0   :  { %6668 = vmatmul.mubr.f32.vlgmr.msra.gmra.mrb[102].mxu0 %v10464_v16  ;;  %6691 = vmatmul.mubr.f32.gmra.mrb[106].mxu1 %v4832_v43 }
 0x2a1   :  { %6670 = vmatprep.mubr.msk.f32.mxu0 %vm7600_vm1, %v7601_v4  ;;  %v4420_v46 = vpop.f32.mrb[78].mxu0 }
 0x2a2   :  { %v4421_v9 = vadd.f32 %v4420_v46, %v4321_v53  ;;  %v6509_v13 = vpop.f32.mrb[79].mxu0 }
 0x2a4   :  { %6671 = vmatmul.mubr.f32.gmra.mrb[104].mxu0 %v10472_v28  ;;  %v4515_v40 = vpop.f32.mrb[78].mxu1 }
 0x2a5   :  { %6673 = vmatprep.mubr.msk.f32.mxu0 %vm7600_vm1, %v7601_v4  ;;  %v6534_v44 = vpop.f32.mrb[79].mxu1  ;;  %v4516_v47 = vadd.f32 %v4515_v40, %v4421_v9 }
 0x2a6   :  { %v4427_v19 = vpop.f32.mrb[80].mxu0 }
 0x2a7   :  { %v4428_v55 = vadd.f32 %v4427_v19, %v4327_v5  ;;  %v6512_v6 = vpop.f32.mrb[81].mxu0 }
 0x2a8   :  { %6674 = vmatmul.mubr.f32.gmra.mrb[106].mxu0 %v4832_v43  ;;  %v4523_v20 = vpop.f32.mrb[80].mxu1 }
 0x2a9   :  { %v6537_v3 = vpop.f32.mrb[81].mxu1  ;;  %v4524_v7 = vadd.f32 %v4523_v20, %v4428_v55 }
 0x2aa   :  { %v4434_v10 = vpop.f32.mrb[82].mxu0 }
 0x2ab   :  { %v4435_v4 = vadd.f32 %v4434_v10, %v4333_v59  ;;  %v6515_v50 = vpop.f32.mrb[83].mxu0 }
 0x2ac   :  { %v4531_v26 = vpop.f32.mrb[82].mxu1 }
 0x2ad   :  { %v6540_v62 = vpop.f32.mrb[83].mxu1  ;;  %v4532_v24 = vadd.f32 %v4531_v26, %v4435_v4 }
 0x2b2   :  { %v4626_v8 = vpop.f32.mrb[84].mxu0 }
 0x2b3   :  { %v4627_v31 = vadd.f32 %v4626_v8, %v4516_v47  ;;  %v6559_v36 = vpop.f32.mrb[85].mxu0 }
 0x2b4   :  { %v4717_v38 = vpop.f32.mrb[84].mxu1 }
 0x2b5   :  { %v6584_v21 = vpop.f32.mrb[85].mxu1  ;;  %v4718_v22 = vadd.f32 %v4717_v38, %v4627_v31 }
 0x2b6   :  { %v4632_v17 = vpop.f32.mrb[86].mxu0 }
 0x2b7   :  { %v4633_v25 = vadd.f32 %v4632_v17, %v4524_v7  ;;  %v6562_v16 = vpop.f32.mrb[87].mxu0 }
 0x2b8   :  { %v4723_v45 = vpop.f32.mrb[86].mxu1 }
 0x2b9   :  { %v6587_v48 = vpop.f32.mrb[87].mxu1  ;;  %v4724_v42 = vadd.f32 %v4723_v45, %v4633_v25 }
 0x2ba   :  { %v4638_v11 = vpop.f32.mrb[88].mxu0 }
 0x2bb   :  { %v4639_v61 = vadd.f32 %v4638_v11, %v4532_v24  ;;  %v6565_v58 = vpop.f32.mrb[89].mxu0  ;;  %v5348_v24 = vld [vmem:[%s10551_s6] ss:$0 sm:$0xff]  ;;  %s7575_s6 = scalar_lea.vmem %s5337_s29, 384 }
 0x2bc   :  { %v4729_v41 = vpop.f32.mrb[88].mxu1  ;;  %p7576_p0 = scmp.ne.s32.totalorder %s5337_s29, %s7575_s6  ;;  %p7581_p2 = scmp.lt.s32.totalorder %s7575_s6, %s7575_s6 }
 0x2bd   :  { %v6590_v18 = vpop.f32.mrb[89].mxu1  ;;  %v4730_v28 = vadd.f32 %v4729_v41, %v4639_v61 }
 0x2be   :  { %p7582_p3 = por %p7581_p2, %p7580_p1 }
 0x2c0   :  { %p7583_p4 = pnand %p7582_p3, %p7576_p0 }
 0x353   :  { %v4929_v23 = vpop.f32.mrb[90].mxu1 }
 0x354   :  { %v6618_v27 = vpop.f32.mrb[91].mxu1 }
 0x357   :  { %v4935_v56 = vpop.f32.mrb[92].mxu1 }
 0x358   :  { %v6621_v12 = vpop.f32.mrb[93].mxu1 }
 0x35b   :  { %v4818_v0 = vpop.f32.mrb[90].mxu0  ;;  %v4941_v43 = vpop.f32.mrb[94].mxu1 }
 0x35c   :  { %v4819_v35 = vadd.f32 %v4818_v0, %v4718_v22  ;;  %v6601_v30 = vpop.f32.mrb[91].mxu0  ;;  %v6624_v2 = vpop.f32.mrb[95].mxu1 }
 0x35e   :  { %v4930_v63 = vadd.f32 %v4929_v23, %v4819_v35 }
 0x35f   :  { %v4828_v52 = vpop.f32.mrb[92].mxu0  ;;  %v5112_v29 = vpop.f32.mrb[96].mxu1 }
 0x360   :  { %v4829_v49 = vadd.f32 %v4828_v52, %v4724_v42  ;;  %v6604_v37 = vpop.f32.mrb[93].mxu0  ;;  %v6652_v54 = vpop.f32.mrb[97].mxu1 }
 0x362   :  { %v4936_v1 = vadd.f32 %v4935_v56, %v4829_v49 }
 0x363   :  { %v4838_v53 = vpop.f32.mrb[94].mxu0  ;;  %v5120_v32 = vpop.f32.mrb[98].mxu1 }
 0x364   :  { %v4839_v15 = vadd.f32 %v4838_v53, %v4730_v28  ;;  %v6607_v39 = vpop.f32.mrb[95].mxu0  ;;  %v6655_v60 = vpop.f32.mrb[99].mxu1 }
 0x366   :  { %v4942_v33 = vadd.f32 %v4941_v43, %v4839_v15 }
 0x367   :  { %v5021_v5 = vpop.f32.mrb[96].mxu0  ;;  %v5128_v34 = vpop.f32.mrb[100].mxu1 }
 0x368   :  { %v5022_v14 = vadd.f32 %v5021_v5, %v4930_v63  ;;  %v6635_v51 = vpop.f32.mrb[97].mxu0  ;;  %v6658_v59 = vpop.f32.mrb[101].mxu1 }
 0x36a   :  { %v5113_v57 = vadd.f32 %v5112_v29, %v5022_v14 }
 0x36b   :  { %v5028_v46 = vpop.f32.mrb[98].mxu0  ;;  %v5298_v40 = vpop.f32.mrb[102].mxu1 }
 0x36c   :  { %v5029_v9 = vadd.f32 %v5028_v46, %v4936_v1  ;;  %v6638_v13 = vpop.f32.mrb[99].mxu0  ;;  %v6686_v44 = vpop.f32.mrb[103].mxu1 }
 0x36e   :  { %v5121_v47 = vadd.f32 %v5120_v32, %v5029_v9 }
 0x36f   :  { %v5035_v19 = vpop.f32.mrb[100].mxu0  ;;  %v5304_v20 = vpop.f32.mrb[104].mxu1 }
 0x370   :  { %v5036_v55 = vadd.f32 %v5035_v19, %v4942_v33  ;;  %v6641_v6 = vpop.f32.mrb[101].mxu0  ;;  %v6689_v3 = vpop.f32.mrb[105].mxu1 }
 0x372   :  { %v5129_v7 = vadd.f32 %v5128_v34, %v5036_v55 }
 0x373   :  { %v5211_v10 = vpop.f32.mrb[102].mxu0  ;;  %v5310_v26 = vpop.f32.mrb[106].mxu1 }
 0x374   :  { %v5212_v4 = vadd.f32 %v5211_v10, %v5113_v57  ;;  %v6669_v50 = vpop.f32.mrb[103].mxu0  ;;  %v6692_v62 = vpop.f32.mrb[107].mxu1 }
 0x376   :  { %v5299_v8 = vadd.f32 %v5298_v40, %v5212_v4 }
 0x377   :  { %v5217_v38 = vpop.f32.mrb[104].mxu0 }
 0x378   :  { %v5321_v31 = vadd.f32 %v5348_v24, %v5299_v8  ;;  %v5218_v36 = vadd.f32 %v5217_v38, %v5121_v47  ;;  %v6672_v21 = vpop.f32.mrb[105].mxu0 }
 0x37a   :  { %v5324_v22 = vmax.f32 %v5321_v31, 0.0  ;;  %v5305_v17 = vadd.f32 %v5304_v20, %v5218_v36 }
 0x37b   :  { %v5223_v45 = vpop.f32.mrb[106].mxu0 }
 0x37c   :  { %5327 = vst.msk [vmem:[#allocation2] sm:$0xff] %vm4733_vm2, %v5324_v22  ;;  %v5322_v25 = vadd.f32 %v5348_v24, %v5305_v17  ;;  %v5224_v16 = vadd.f32 %v5223_v45, %v5129_v7  ;;  %v6675_v48 = vpop.f32.mrb[107].mxu0 }
 0x37e   :  { %v5325_v42 = vmax.f32 %v5322_v25, 0.0  ;;  %v5311_v11 = vadd.f32 %v5310_v26, %v5224_v16 }
 0x380   :  { %5328 = vst.msk [vmem:[#allocation2 + $0x8] sm:$0xff] %vm4733_vm2, %v5325_v42  ;;  %v5323_v41 = vadd.f32 %v5348_v24, %v5311_v11 }
 0x382   :  { %v5326_v61 = vmax.f32 %v5323_v41, 0.0 }
 0x384   :  { %5330 = vst.msk [vmem:[#allocation2 + $0x10] sm:$0x7f] %vm5329_vm3, %v5326_v61 }
 0x385   :  { %7586 = shalt.err (!%p7583_p4)
}
 0x386   :  { %s7587_s9 = scalar_lea.hbm %s10552_s7, 384 }
 0x387   :  { %p7588_p5 = scmp.ne.s32.totalorder %s10552_s7, %s7587_s9  ;;  %p7591_p6 = scmp.lt.u32.totalorder %s7587_s9, %s10552_s7 }
 0x389   :  { %p7593_p7 = pnand %p7591_p6, %p7588_p5 }
 0x38b   :  { %7596 = shalt.err (!%p7593_p7)
}
 0x38c   :  { %s7603_s14 = smov 128   ;;  %s7604_s15 = smov 8  }
 0x38d   :  { %5342 = dma.vmem_to_hbm [thread:$0]  %s5337_s29, 384, %s10552_s7, [#allocation3], %s7603_s14, %s7603_s14, %s7604_s15  }
 0x38e   :  { %7597 = dma.done.wait [#allocation3], 384  }
 0x38f   :  { %7598 = vsyncadd [#allocation3], 4294966912 }
 0x390   :  { %5346 = vsyncpa [#allocation3], 1 }

</bundles_post_ra>
